<compile_context>
chip_gen: v5e
topology: v5e:2x2
jax: 0.10.0
libtpu: 0.0.40
codegen_flags: <defaults>
</compile_context>

<pallas_src>
import math

import jax
import jax.numpy as jnp
from jax.experimental import pallas as pl
from jax.experimental.pallas import tpu as pltpu

HIDDEN = 256   # PSCN output dim == GRU hidden size == head width


# ------------------------------ small helpers -------------------------------
def _round_up(x, m):
    return -(-x // m) * m


def _head_pad(action_dim):
    # packed lane-dense [logits | value | pad], padded to a multiple of 8 lanes
    return max(8, _round_up(action_dim + 1, 8))


_BIAS_SEG_WIDTHS = [
    ("b0", 256), ("g0", 256), ("b1", 128), ("g1", 128),
    ("b2", 64), ("g2", 64), ("b3", 32), ("g3", 32),
    ("bih", 3 * HIDDEN), ("bhh", 3 * HIDDEN),
    ("bac1", 2 * HIDDEN), ("gac1", 2 * HIDDEN),
]


def _bias_layout(a_pad):
    """All small f32 bias/gain vectors packed into one (1, N) slab; every
    segment starts at a 128-lane-aligned offset so in-kernel slices are cheap."""
    segs = _BIAS_SEG_WIDTHS + [("bhead2", a_pad)]
    layout, off = {}, 0
    for name, n in segs:
        layout[name] = (off, n)
        off += _round_up(n, 128)
    return layout, off


# ------------------------------ fused kernel --------------------------------
def _make_kernel(bias_layout, a_pad):
    H = HIDDEN

    def _silu(v):
        return v * jax.nn.sigmoid(v)

    def _rms_scale(v, eps=1e-6):
        return jax.lax.rsqrt(jnp.mean(v * v, axis=-1, keepdims=True) + eps)

    def _mm(x, w_ref):
        # bf16 weights in VMEM; MXU bf16 x bf16 with f32 accumulation.
        return jnp.dot(x.astype(jnp.bfloat16), w_ref[...],
                       preferred_element_type=jnp.float32)

    def kernel(x_ref, h0_ref,
               w0_ref, w1_ref, w2_ref, w3_ref,
               wih_ref, whh_ref, wac1_ref, whead2_ref, bias_ref,
               head_ref, newh_ref,
               h_scr):
        t = pl.program_id(0)

        # Recurrent state lives in VMEM scratch across the whole T grid.
        @pl.when(t == 0)
        def _():
            h_scr[...] = h0_ref[...]

        def seg(name):
            off, n = bias_layout[name]
            return bias_ref[:, off:off + n]

        def stage(v, w_ref, bname, gname):
            y = _silu(_mm(v, w_ref) + seg(bname))
            return y * _rms_scale(y) * seg(gname)

        x = x_ref[0]             # (B, state_dim)
        h = h_scr[...]           # (B, H)

        # ---- PSCN shared trunk (progressive split-concat) ----
        y0 = stage(x, w0_ref, "b0", "g0")              # (B, 256)
        p0, r0 = y0[:, :128], y0[:, 128:]
        y1 = stage(r0, w1_ref, "b1", "g1")             # (B, 128)
        p1, r1 = y1[:, :64], y1[:, 64:]
        y2 = stage(r1, w2_ref, "b2", "g2")             # (B, 64)
        p2, r2 = y2[:, :32], y2[:, 32:]
        y3 = stage(r2, w3_ref, "b3", "g3")             # (B, 32)
        shared = jnp.concatenate([p0, p1, p2, y3], axis=-1)   # (B, 256)

        # ---- GRU single step (URNN: rnn_out == new hidden state) ----
        gi = _mm(shared, wih_ref) + seg("bih")         # (B, 3H)
        gh = _mm(h, whh_ref) + seg("bhh")              # (B, 3H)
        r = jax.nn.sigmoid(gi[:, :H] + gh[:, :H])
        z = jax.nn.sigmoid(gi[:, H:2 * H] + gh[:, H:2 * H])
        n = jnp.tanh(gi[:, 2 * H:] + r * gh[:, 2 * H:])
        new_h = (1.0 - z) * n + z * h                  # (B, H)
        h_scr[...] = new_h

        # ---- fused actor | critic heads ----
        ac = _silu(_mm(new_h, wac1_ref) + seg("bac1"))          # (B, 512)
        a, c = ac[:, :H], ac[:, H:]
        ac_n = jnp.concatenate([a * _rms_scale(a), c * _rms_scale(c)],
                               axis=-1) * seg("gac1")           # per-head RMSNorm
        # final layer kept f32 (tiny) -> [logits | value | pad]
        head = jnp.dot(ac_n, whead2_ref[...],
                       preferred_element_type=jnp.float32) + seg("bhead2")

        head_ref[0] = head          # per-step output, DMA'd back each step
        newh_ref[...] = new_h       # constant block index -> written back once

    return kernel


# --------------------------------- wrapper ----------------------------------
_WEIGHT_ORDER = ["w0", "w1", "w2", "w3", "wih", "whh", "wac1", "whead2", "bias"]


def _cost_estimate(T, B, state_dim, a_pad, weight_arrays):
    matmul_kn = (state_dim * 256 + 128 * 128 + 64 * 64 + 32 * 32
                 + 256 * 3 * HIDDEN          # W_ih (fused K=256)
                 + 256 * 3 * HIDDEN          # W_hh
                 + 256 * 2 * HIDDEN          # fused head layer 1
                 + 2 * HIDDEN * a_pad)       # fused head layer 2
    flops = 2 * T * B * matmul_kn
    transcendentals = T * B * (256 + 128 + 64 + 32 + 2 * HIDDEN + 3 * HIDDEN
                               + HIDDEN + 8)
    bytes_accessed = sum(int(a.size) * a.dtype.itemsize for a in weight_arrays)
    bytes_accessed += T * B * (state_dim + a_pad) * 4 + 2 * B * HIDDEN * 4
    return pl.CostEstimate(flops=flops, transcendentals=transcendentals,
                           bytes_accessed=bytes_accessed)


def actor_critic_rollout(xs, h0, params, action_dim):
    """T sequential steps in one pallas_call.  xs: (T, B, state_dim),
    h0: (B, HIDDEN) -> (logits (T,B,A), value (T,B,1), new_h (B,HIDDEN))."""
    T, B, sd = xs.shape
    BP = max(16, _round_up(B, 16))     # bf16 packs 16 sublanes per vreg
    if BP != B:
        xs = jnp.pad(xs, ((0, 0), (0, BP - B), (0, 0)))
        h0 = jnp.pad(h0, ((0, BP - B), (0, 0)))

    a_pad = _head_pad(action_dim)
    layout, _ = _bias_layout(a_pad)
    kernel = _make_kernel(layout, a_pad)
    weights = [params[k] for k in _WEIGHT_ORDER]

    def resident(a):  # full-array block, constant index map -> DMA'd once
        return pl.BlockSpec(a.shape, lambda t: (0,) * a.ndim)

    grid_spec = pltpu.PrefetchScalarGridSpec(
        num_scalar_prefetch=0,
        grid=(T,),
        in_specs=[pl.BlockSpec((1, BP, sd), lambda t: (t, 0, 0)),     # x_t
                  pl.BlockSpec((BP, HIDDEN), lambda t: (0, 0))]       # h0
                 + [resident(w) for w in weights],
        out_specs=(pl.BlockSpec((1, BP, a_pad), lambda t: (t, 0, 0)),  # head_t
                   pl.BlockSpec((BP, HIDDEN), lambda t: (0, 0))),      # final h
        scratch_shapes=[pltpu.VMEM((BP, HIDDEN), jnp.float32)],        # h carry
    )

    head, new_h = pl.pallas_call(
        kernel,
        out_shape=(jax.ShapeDtypeStruct((T, BP, a_pad), jnp.float32),
                   jax.ShapeDtypeStruct((BP, HIDDEN), jnp.float32)),
        grid_spec=grid_spec,
        compiler_params=pltpu.CompilerParams(
            dimension_semantics=("arbitrary",)),   # sequential recurrence
        cost_estimate=_cost_estimate(T, BP, sd, a_pad, weights),
    )(xs, h0, *weights)

    logits = head[:, :B, :action_dim]
    value = head[:, :B, action_dim:action_dim + 1]
    return logits, value, new_h[:B]


def actor_critic_forward(x, hidden_state, params, action_dim):
    """Single URNN/ActorCritic step (T=1 of the rollout kernel)."""
    logits, value, new_h = actor_critic_rollout(x[None], hidden_state,
                                                params, action_dim)
    return logits[0], value[0], new_h


# --------------------------- parameter construction -------------------------
def init_params(key, state_dim, action_dim):
    """f32 params mirroring the PyTorch init (weights pre-transposed to (in,out))."""
    keys = iter(jax.random.split(key, 16))
    sqrt2 = math.sqrt(2.0)

    def fc(k, in_dim, out_dim, std):
        w = jax.nn.initializers.orthogonal(scale=std)(k, (out_dim, in_dim), jnp.float32)
        return w.T, jnp.zeros((1, out_dim), jnp.float32)

    p = {}
    for i, (din, dout) in enumerate([(state_dim, 256), (128, 128), (64, 64), (32, 32)]):
        p[f"w{i}"], p[f"b{i}"] = fc(next(keys), din, dout, sqrt2)
        p[f"g{i}"] = jnp.ones((1, dout), jnp.float32)

    # GRU(256 -> 256), PyTorch default uniform(-1/sqrt(H), 1/sqrt(H)) init
    H = HIDDEN
    bound = 1.0 / math.sqrt(H)
    p["wih"] = jax.random.uniform(next(keys), (3 * H, H), jnp.float32, -bound, bound).T
    p["whh"] = jax.random.uniform(next(keys), (3 * H, H), jnp.float32, -bound, bound).T
    p["bih"] = jax.random.uniform(next(keys), (1, 3 * H), jnp.float32, -bound, bound)
    p["bhh"] = jax.random.uniform(next(keys), (1, 3 * H), jnp.float32, -bound, bound)

    # actor = MLP([256, 256, action_dim], last_std=0.001)
    p["wa1"], p["ba1"] = fc(next(keys), H, 256, sqrt2)
    p["ga1"] = jnp.ones((1, 256), jnp.float32)
    p["wa2"], p["ba2"] = fc(next(keys), 256, action_dim, 0.001)

    # critic = MLP([256, 256, 1], last_std=1.0)
    p["wc1"], p["bc1"] = fc(next(keys), H, 256, sqrt2)
    p["gc1"] = jnp.ones((1, 256), jnp.float32)
    p["wc2"], p["bc2"] = fc(next(keys), 256, 1, 1.0)
    return p


def prepare_params(p, action_dim):
    """Kernel-ready params: bf16 weight matrices, fused W_ih / head-1, tiny f32
    final head layer, all biases/gains packed into one lane-aligned slab."""
    bf = lambda a: a.astype(jnp.bfloat16)
    H = HIDDEN
    A = action_dim
    a_pad = _head_pad(action_dim)
    layout, total = _bias_layout(a_pad)

    q = {f"w{i}": bf(p[f"w{i}"]) for i in range(4)}
    q["wih"] = bf(p["wih"])                                      # (256, 3H) fused
    q["whh"] = bf(p["whh"])
    q["wac1"] = bf(jnp.concatenate([p["wa1"], p["wc1"]], axis=1))  # (256, 512)

    # final actor/critic layer kept f32, block-diag packed -> [logits|value|pad]
    w2 = jnp.zeros((2 * H, a_pad), jnp.float32)
    w2 = w2.at[:H, :A].set(p["wa2"])
    w2 = w2.at[H:, A:A + 1].set(p["wc2"])
    q["whead2"] = w2

    bhead2 = jnp.zeros((1, a_pad), jnp.float32)
    bhead2 = bhead2.at[:, :A].set(p["ba2"]).at[:, A:A + 1].set(p["bc2"])

    vecs = {
        "b0": p["b0"], "g0": p["g0"], "b1": p["b1"], "g1": p["g1"],
        "b2": p["b2"], "g2": p["g2"], "b3": p["b3"], "g3": p["g3"],
        "bih": p["bih"], "bhh": p["bhh"],
        "bac1": jnp.concatenate([p["ba1"], p["bc1"]], axis=1),
        "gac1": jnp.concatenate([p["ga1"], p["gc1"]], axis=1),
        "bhead2": bhead2,
    }
    slab = jnp.zeros((1, total), jnp.float32)
    for name, val in vecs.items():
        off, n = layout[name]
        slab = slab.at[:, off:off + n].set(val)
    q["bias"] = slab
    return q


# ----------------------- pure-JAX reference (f32, unfused) ------------------
def reference_forward(x, h, p):
    def silu(v):
        return v * jax.nn.sigmoid(v)

    def rms(v, g):
        return v * jax.lax.rsqrt(jnp.mean(v * v, -1, keepdims=True) + 1e-6) * g

    y0 = rms(silu(x @ p["w0"] + p["b0"]), p["g0"])
    p0, r0 = y0[:, :128], y0[:, 128:]
    y1 = rms(silu(r0 @ p["w1"] + p["b1"]), p["g1"])
    p1, r1 = y1[:, :64], y1[:, 64:]
    y2 = rms(silu(r1 @ p["w2"] + p["b2"]), p["g2"])
    p2, r2 = y2[:, :32], y2[:, 32:]
    y3 = rms(silu(r2 @ p["w3"] + p["b3"]), p["g3"])
    shared = jnp.concatenate([p0, p1, p2, y3], -1)
    H = HIDDEN
    gi = shared @ p["wih"] + p["bih"]
    gh = h @ p["whh"] + p["bhh"]
    r = jax.nn.sigmoid(gi[:, :H] + gh[:, :H])
    z = jax.nn.sigmoid(gi[:, H:2 * H] + gh[:, H:2 * H])
    n = jnp.tanh(gi[:, 2 * H:] + r * gh[:, 2 * H:])
    nh = (1.0 - z) * n + z * h
    a = rms(silu(nh @ p["wa1"] + p["ba1"]), p["ga1"])
    c = rms(silu(nh @ p["wc1"] + p["bc1"]), p["gc1"])
    return a @ p["wa2"] + p["ba2"], c @ p["wc2"] + p["bc2"], nh


# ---------------------------------- main -------------------------------------
if __name__ == "__main__":
    state_dim, action_dim, batch, T = 16, 6, 2, 4
    key = jax.random.PRNGKey(0)
    kp, kx, kh = jax.random.split(key, 3)

    params_f32 = init_params(kp, state_dim, action_dim)
    params = prepare_params(params_f32, action_dim)

    xs = jax.random.normal(kx, (T, batch, state_dim), jnp.float32)
    h0 = jax.random.normal(kh, (batch, HIDDEN), jnp.float32)

    # ---- single step (URNN semantics: rnn_out == new hidden for one GRU step)
    logits, value, new_h = actor_critic_forward(xs[0], h0, params, action_dim)
    jax.block_until_ready((logits, value, new_h))
    assert logits.shape == (batch, action_dim)
    assert value.shape == (batch, 1)
    assert new_h.shape == (batch, HIDDEN)
    assert bool(jnp.all(jnp.isfinite(logits)))
    assert bool(jnp.all(jnp.isfinite(value)))
    assert bool(jnp.all(jnp.isfinite(new_h)))

    ref_logits, ref_value, ref_h = reference_forward(xs[0], h0, params_f32)
    assert bool(jnp.allclose(logits, ref_logits, rtol=0.2, atol=0.02))
    assert bool(jnp.allclose(value, ref_value, rtol=0.2, atol=0.15))
    assert bool(jnp.allclose(new_h, ref_h, rtol=0.2, atol=0.1))

    # ---- T-step rollout: weights DMA'd once, hidden carried in VMEM scratch
    r_logits, r_value, r_h = actor_critic_rollout(xs, h0, params, action_dim)
    jax.block_until_ready((r_logits, r_value, r_h))
    assert r_logits.shape == (T, batch, action_dim)
    assert r_value.shape == (T, batch, 1)
    assert r_h.shape == (batch, HIDDEN)
    assert bool(jnp.all(jnp.isfinite(r_logits)))
    assert bool(jnp.all(jnp.isfinite(r_value)))
    assert bool(jnp.all(jnp.isfinite(r_h)))

    # Rollout must match chained single-step kernel calls (same math, same order)
    h = h0
    for t in range(T):
        lt, vt, h = actor_critic_forward(xs[t], h, params, action_dim)
        assert bool(jnp.allclose(lt, r_logits[t], rtol=1e-5, atol=1e-5))
        assert bool(jnp.allclose(vt, r_value[t], rtol=1e-5, atol=1e-5))
    assert bool(jnp.allclose(h, r_h, rtol=1e-5, atol=1e-5))

    print("KERNEL_OK")
</pallas_src>

<mosaic_0001>
module attributes {stable_mosaic.version = 11 : i64} {
  func.func @kernel(%arg0: i32, %arg1: memref<1x16x16xf32, #tpu.memory_space<vmem>>, %arg2: memref<16x256xf32, #tpu.memory_space<vmem>>, %arg3: memref<16x256xbf16, #tpu.memory_space<vmem>>, %arg4: memref<128x128xbf16, #tpu.memory_space<vmem>>, %arg5: memref<64x64xbf16, #tpu.memory_space<vmem>>, %arg6: memref<32x32xbf16, #tpu.memory_space<vmem>>, %arg7: memref<256x768xbf16, #tpu.memory_space<vmem>>, %arg8: memref<256x768xbf16, #tpu.memory_space<vmem>>, %arg9: memref<256x512xbf16, #tpu.memory_space<vmem>>, %arg10: memref<512x8xf32, #tpu.memory_space<vmem>>, %arg11: memref<1x3968xf32, #tpu.memory_space<vmem>>, %arg12: memref<1x16x8xf32, #tpu.memory_space<vmem>>, %arg13: memref<16x256xf32, #tpu.memory_space<vmem>>, %arg14: memref<16x256xf32, #tpu.memory_space<vmem>>) attributes {dimension_semantics = [#tpu.dimension_semantics<arbitrary>], iteration_bounds = array<i64: 1>, scalar_prefetch = 0 : i64, scratch_operands = 1 : i64, tpu.core_type = #tpu.core_type<tc>, window_params = [{transform_indices = @transform_0, window_bounds = array<i64: 1, 16, 16>}, {pipeline_mode = #tpu.pipeline_mode<synchronous>, transform_indices = @transform_1, window_bounds = array<i64: 16, 256>}, {pipeline_mode = #tpu.pipeline_mode<synchronous>, transform_indices = @transform_2, window_bounds = array<i64: 16, 256>}, {pipeline_mode = #tpu.pipeline_mode<synchronous>, transform_indices = @transform_3, window_bounds = array<i64: 128, 128>}, {pipeline_mode = #tpu.pipeline_mode<synchronous>, transform_indices = @transform_4, window_bounds = array<i64: 64, 64>}, {pipeline_mode = #tpu.pipeline_mode<synchronous>, transform_indices = @transform_5, window_bounds = array<i64: 32, 32>}, {pipeline_mode = #tpu.pipeline_mode<synchronous>, transform_indices = @transform_6, window_bounds = array<i64: 256, 768>}, {pipeline_mode = #tpu.pipeline_mode<synchronous>, transform_indices = @transform_7, window_bounds = array<i64: 256, 768>}, {pipeline_mode = #tpu.pipeline_mode<synchronous>, transform_indices = @transform_8, window_bounds = array<i64: 256, 512>}, {pipeline_mode = #tpu.pipeline_mode<synchronous>, transform_indices = @transform_9, window_bounds = array<i64: 512, 8>}, {pipeline_mode = #tpu.pipeline_mode<synchronous>, transform_indices = @transform_10, window_bounds = array<i64: 1, 3968>}, {transform_indices = @transform_11, window_bounds = array<i64: 1, 16, 8>}, {pipeline_mode = #tpu.pipeline_mode<synchronous>, transform_indices = @transform_12, window_bounds = array<i64: 16, 256>}]} {
    %c0_i32 = arith.constant 0 : i32
    %0 = arith.cmpi eq, %arg0, %c0_i32 : i32
    %1 = arith.extui %0 : i1 to i32
    %c0_i32_0 = arith.constant 0 : i32
    %2 = arith.cmpi ne, %1, %c0_i32_0 : i32
    scf.if %2 {
      %c0_75 = arith.constant 0 : index
      %c0_76 = arith.constant 0 : index
      %199 = vector.load %arg2[%c0_75, %c0_76] : memref<16x256xf32, #tpu.memory_space<vmem>>, vector<16x256xf32>
      %c0_77 = arith.constant 0 : index
      %c0_78 = arith.constant 0 : index
      %200 = vector.load %arg14[%c0_77, %c0_78] : memref<16x256xf32, #tpu.memory_space<vmem>>, vector<16x256xf32>
      tpu.vector_store %arg14[%c0_77, %c0_78], %199 {strides = array<i32>} : memref<16x256xf32, #tpu.memory_space<vmem>>, vector<16x256xf32>,
    } else {
    }
    %c0 = arith.constant 0 : index
    %c0_1 = arith.constant 0 : index
    %c0_2 = arith.constant 0 : index
    %3 = vector.load %arg1[%c0, %c0_1, %c0_2] : memref<1x16x16xf32, #tpu.memory_space<vmem>>, vector<1x16x16xf32>
    %4 = vector.shape_cast %3 : vector<1x16x16xf32> to vector<16x16xf32>
    %c0_3 = arith.constant 0 : index
    %c0_4 = arith.constant 0 : index
    %5 = vector.load %arg14[%c0_3, %c0_4] : memref<16x256xf32, #tpu.memory_space<vmem>>, vector<16x256xf32>
    %6 = arith.truncf %4 : vector<16x16xf32> to vector<16x16xbf16>
    %c0_5 = arith.constant 0 : index
    %c0_6 = arith.constant 0 : index
    %7 = vector.load %arg3[%c0_5, %c0_6] : memref<16x256xbf16, #tpu.memory_space<vmem>>, vector<16x256xbf16>
    %cst = arith.constant dense<0.000000e+00> : vector<16x256xf32>
    %8 = tpu.matmul %6, %7, %cst {dimension_numbers = #tpu.dot_dimension_numbers<[1], [0], [0], [1], [0, 0, 1, 1], [], []>} : vector<16x16xbf16>, vector<16x256xbf16>, vector<16x256xf32> -> vector<16x256xf32>
    %c0_7 = arith.constant 0 : index
    %c0_8 = arith.constant 0 : index
    %9 = vector.load %arg11[%c0_7, %c0_8] : memref<1x3968xf32, #tpu.memory_space<vmem>>, vector<1x256xf32>
    %10 = vector.broadcast %9 : vector<1x256xf32> to vector<16x256xf32>
    %11 = arith.addf %8, %10 : vector<16x256xf32>
    %12 = arith.negf %11 : vector<16x256xf32>
    %13 = math.exp %12 : vector<16x256xf32>
    %cst_9 = arith.constant 1.000000e+00 : f32
    %14 = vector.broadcast %cst_9 : f32 to vector<16x256xf32>
    %15 = arith.addf %14, %13 : vector<16x256xf32>
    %16 = arith.divf %14, %15 : vector<16x256xf32>
    %17 = arith.mulf %11, %16 : vector<16x256xf32>
    %18 = arith.mulf %17, %17 : vector<16x256xf32>
    %cst_10 = arith.constant dense<0.000000e+00> : vector<16xf32>
    %19 = vector.multi_reduction <add>, %18, %cst_10 [1] : vector<16x256xf32> to vector<16xf32>
    %20 = vector.shape_cast %19 : vector<16xf32> to vector<16x1xf32>
    %cst_11 = arith.constant 2.560000e+02 : f32
    %21 = vector.broadcast %cst_11 : f32 to vector<16x1xf32>
    %22 = arith.divf %20, %21 : vector<16x1xf32>
    %cst_12 = arith.constant 9.99999997E-7 : f32
    %23 = vector.broadcast %cst_12 : f32 to vector<16x1xf32>
    %24 = arith.addf %22, %23 : vector<16x1xf32>
    %25 = math.rsqrt %24 : vector<16x1xf32>
    %26 = vector.broadcast %25 : vector<16x1xf32> to vector<16x256xf32>
    %27 = arith.mulf %17, %26 : vector<16x256xf32>
    %c0_13 = arith.constant 0 : index
    %c256 = arith.constant 256 : index
    %28 = vector.load %arg11[%c0_13, %c256] : memref<1x3968xf32, #tpu.memory_space<vmem>>, vector<1x256xf32>
    %29 = vector.broadcast %28 : vector<1x256xf32> to vector<16x256xf32>
    %30 = arith.mulf %27, %29 : vector<16x256xf32>
    %31 = vector.extract_strided_slice %30 {offsets = [0, 0], sizes = [16, 128], strides = [1, 1]} : vector<16x256xf32> to vector<16x128xf32>
    %32 = vector.extract_strided_slice %30 {offsets = [0, 128], sizes = [16, 128], strides = [1, 1]} : vector<16x256xf32> to vector<16x128xf32>
    %33 = arith.truncf %32 : vector<16x128xf32> to vector<16x128xbf16>
    %c0_14 = arith.constant 0 : index
    %c0_15 = arith.constant 0 : index
    %34 = vector.load %arg4[%c0_14, %c0_15] : memref<128x128xbf16, #tpu.memory_space<vmem>>, vector<128x128xbf16>
    %cst_16 = arith.constant dense<0.000000e+00> : vector<16x128xf32>
    %35 = tpu.matmul %33, %34, %cst_16 {dimension_numbers = #tpu.dot_dimension_numbers<[1], [0], [0], [1], [0, 0, 1, 1], [], []>} : vector<16x128xbf16>, vector<128x128xbf16>, vector<16x128xf32> -> vector<16x128xf32>
    %c0_17 = arith.constant 0 : index
    %c512 = arith.constant 512 : index
    %36 = vector.load %arg11[%c0_17, %c512] : memref<1x3968xf32, #tpu.memory_space<vmem>>, vector<1x128xf32>
    %37 = vector.broadcast %36 : vector<1x128xf32> to vector<16x128xf32>
    %38 = arith.addf %35, %37 : vector<16x128xf32>
    %39 = arith.negf %38 : vector<16x128xf32>
    %40 = math.exp %39 : vector<16x128xf32>
    %cst_18 = arith.constant 1.000000e+00 : f32
    %41 = vector.broadcast %cst_18 : f32 to vector<16x128xf32>
    %42 = arith.addf %41, %40 : vector<16x128xf32>
    %43 = arith.divf %41, %42 : vector<16x128xf32>
    %44 = arith.mulf %38, %43 : vector<16x128xf32>
    %45 = arith.mulf %44, %44 : vector<16x128xf32>
    %cst_19 = arith.constant dense<0.000000e+00> : vector<16xf32>
    %46 = vector.multi_reduction <add>, %45, %cst_19 [1] : vector<16x128xf32> to vector<16xf32>
    %47 = vector.shape_cast %46 : vector<16xf32> to vector<16x1xf32>
    %cst_20 = arith.constant 1.280000e+02 : f32
    %48 = vector.broadcast %cst_20 : f32 to vector<16x1xf32>
    %49 = arith.divf %47, %48 : vector<16x1xf32>
    %cst_21 = arith.constant 9.99999997E-7 : f32
    %50 = vector.broadcast %cst_21 : f32 to vector<16x1xf32>
    %51 = arith.addf %49, %50 : vector<16x1xf32>
    %52 = math.rsqrt %51 : vector<16x1xf32>
    %53 = vector.broadcast %52 : vector<16x1xf32> to vector<16x128xf32>
    %54 = arith.mulf %44, %53 : vector<16x128xf32>
    %c0_22 = arith.constant 0 : index
    %c640 = arith.constant 640 : index
    %55 = vector.load %arg11[%c0_22, %c640] : memref<1x3968xf32, #tpu.memory_space<vmem>>, vector<1x128xf32>
    %56 = vector.broadcast %55 : vector<1x128xf32> to vector<16x128xf32>
    %57 = arith.mulf %54, %56 : vector<16x128xf32>
    %58 = vector.extract_strided_slice %57 {offsets = [0, 0], sizes = [16, 64], strides = [1, 1]} : vector<16x128xf32> to vector<16x64xf32>
    %59 = vector.extract_strided_slice %57 {offsets = [0, 64], sizes = [16, 64], strides = [1, 1]} : vector<16x128xf32> to vector<16x64xf32>
    %60 = arith.truncf %59 : vector<16x64xf32> to vector<16x64xbf16>
    %c0_23 = arith.constant 0 : index
    %c0_24 = arith.constant 0 : index
    %61 = vector.load %arg5[%c0_23, %c0_24] : memref<64x64xbf16, #tpu.memory_space<vmem>>, vector<64x64xbf16>
    %cst_25 = arith.constant dense<0.000000e+00> : vector<16x64xf32>
    %62 = tpu.matmul %60, %61, %cst_25 {dimension_numbers = #tpu.dot_dimension_numbers<[1], [0], [0], [1], [0, 0, 1, 1], [], []>} : vector<16x64xbf16>, vector<64x64xbf16>, vector<16x64xf32> -> vector<16x64xf32>
    %c0_26 = arith.constant 0 : index
    %c768 = arith.constant 768 : index
    %63 = vector.load %arg11[%c0_26, %c768] : memref<1x3968xf32, #tpu.memory_space<vmem>>, vector<1x64xf32>
    %64 = vector.broadcast %63 : vector<1x64xf32> to vector<16x64xf32>
    %65 = arith.addf %62, %64 : vector<16x64xf32>
    %66 = arith.negf %65 : vector<16x64xf32>
    %67 = math.exp %66 : vector<16x64xf32>
    %cst_27 = arith.constant 1.000000e+00 : f32
    %68 = vector.broadcast %cst_27 : f32 to vector<16x64xf32>
    %69 = arith.addf %68, %67 : vector<16x64xf32>
    %70 = arith.divf %68, %69 : vector<16x64xf32>
    %71 = arith.mulf %65, %70 : vector<16x64xf32>
    %72 = arith.mulf %71, %71 : vector<16x64xf32>
    %cst_28 = arith.constant dense<0.000000e+00> : vector<16xf32>
    %73 = vector.multi_reduction <add>, %72, %cst_28 [1] : vector<16x64xf32> to vector<16xf32>
    %74 = vector.shape_cast %73 : vector<16xf32> to vector<16x1xf32>
    %cst_29 = arith.constant 6.400000e+01 : f32
    %75 = vector.broadcast %cst_29 : f32 to vector<16x1xf32>
    %76 = arith.divf %74, %75 : vector<16x1xf32>
    %cst_30 = arith.constant 9.99999997E-7 : f32
    %77 = vector.broadcast %cst_30 : f32 to vector<16x1xf32>
    %78 = arith.addf %76, %77 : vector<16x1xf32>
    %79 = math.rsqrt %78 : vector<16x1xf32>
    %80 = vector.broadcast %79 : vector<16x1xf32> to vector<16x64xf32>
    %81 = arith.mulf %71, %80 : vector<16x64xf32>
    %c0_31 = arith.constant 0 : index
    %c896 = arith.constant 896 : index
    %82 = vector.load %arg11[%c0_31, %c896] : memref<1x3968xf32, #tpu.memory_space<vmem>>, vector<1x64xf32>
    %83 = vector.broadcast %82 : vector<1x64xf32> to vector<16x64xf32>
    %84 = arith.mulf %81, %83 : vector<16x64xf32>
    %85 = vector.extract_strided_slice %84 {offsets = [0, 0], sizes = [16, 32], strides = [1, 1]} : vector<16x64xf32> to vector<16x32xf32>
    %86 = vector.extract_strided_slice %84 {offsets = [0, 32], sizes = [16, 32], strides = [1, 1]} : vector<16x64xf32> to vector<16x32xf32>
    %87 = arith.truncf %86 : vector<16x32xf32> to vector<16x32xbf16>
    %c0_32 = arith.constant 0 : index
    %c0_33 = arith.constant 0 : index
    %88 = vector.load %arg6[%c0_32, %c0_33] : memref<32x32xbf16, #tpu.memory_space<vmem>>, vector<32x32xbf16>
    %cst_34 = arith.constant dense<0.000000e+00> : vector<16x32xf32>
    %89 = tpu.matmul %87, %88, %cst_34 {dimension_numbers = #tpu.dot_dimension_numbers<[1], [0], [0], [1], [0, 0, 1, 1], [], []>} : vector<16x32xbf16>, vector<32x32xbf16>, vector<16x32xf32> -> vector<16x32xf32>
    %c0_35 = arith.constant 0 : index
    %c1024 = arith.constant 1024 : index
    %90 = vector.load %arg11[%c0_35, %c1024] : memref<1x3968xf32, #tpu.memory_space<vmem>>, vector<1x32xf32>
    %91 = vector.broadcast %90 : vector<1x32xf32> to vector<16x32xf32>
    %92 = arith.addf %89, %91 : vector<16x32xf32>
    %93 = arith.negf %92 : vector<16x32xf32>
    %94 = math.exp %93 : vector<16x32xf32>
    %cst_36 = arith.constant 1.000000e+00 : f32
    %95 = vector.broadcast %cst_36 : f32 to vector<16x32xf32>
    %96 = arith.addf %95, %94 : vector<16x32xf32>
    %97 = arith.divf %95, %96 : vector<16x32xf32>
    %98 = arith.mulf %92, %97 : vector<16x32xf32>
    %99 = arith.mulf %98, %98 : vector<16x32xf32>
    %cst_37 = arith.constant dense<0.000000e+00> : vector<16xf32>
    %100 = vector.multi_reduction <add>, %99, %cst_37 [1] : vector<16x32xf32> to vector<16xf32>
    %101 = vector.shape_cast %100 : vector<16xf32> to vector<16x1xf32>
    %cst_38 = arith.constant 3.200000e+01 : f32
    %102 = vector.broadcast %cst_38 : f32 to vector<16x1xf32>
    %103 = arith.divf %101, %102 : vector<16x1xf32>
    %cst_39 = arith.constant 9.99999997E-7 : f32
    %104 = vector.broadcast %cst_39 : f32 to vector<16x1xf32>
    %105 = arith.addf %103, %104 : vector<16x1xf32>
    %106 = math.rsqrt %105 : vector<16x1xf32>
    %107 = vector.broadcast %106 : vector<16x1xf32> to vector<16x32xf32>
    %108 = arith.mulf %98, %107 : vector<16x32xf32>
    %c0_40 = arith.constant 0 : index
    %c1152 = arith.constant 1152 : index
    %109 = vector.load %arg11[%c0_40, %c1152] : memref<1x3968xf32, #tpu.memory_space<vmem>>, vector<1x32xf32>
    %110 = vector.broadcast %109 : vector<1x32xf32> to vector<16x32xf32>
    %111 = arith.mulf %108, %110 : vector<16x32xf32>
    %112 = tpu.concatenate %31, %58, %85, %111 in 1 : vector<16x128xf32>, vector<16x64xf32>, vector<16x32xf32>, vector<16x32xf32> -> vector<16x256xf32>
    %113 = arith.truncf %112 : vector<16x256xf32> to vector<16x256xbf16>
    %c0_41 = arith.constant 0 : index
    %c0_42 = arith.constant 0 : index
    %114 = vector.load %arg7[%c0_41, %c0_42] : memref<256x768xbf16, #tpu.memory_space<vmem>>, vector<256x768xbf16>
    %cst_43 = arith.constant dense<0.000000e+00> : vector<16x768xf32>
    %115 = tpu.matmul %113, %114, %cst_43 {dimension_numbers = #tpu.dot_dimension_numbers<[1], [0], [0], [1], [0, 0, 1, 1], [], []>} : vector<16x256xbf16>, vector<256x768xbf16>, vector<16x768xf32> -> vector<16x768xf32>
    %c0_44 = arith.constant 0 : index
    %c1280 = arith.constant 1280 : index
    %116 = vector.load %arg11[%c0_44, %c1280] : memref<1x3968xf32, #tpu.memory_space<vmem>>, vector<1x768xf32>
    %117 = vector.broadcast %116 : vector<1x768xf32> to vector<16x768xf32>
    %118 = arith.addf %115, %117 : vector<16x768xf32>
    %119 = arith.truncf %5 : vector<16x256xf32> to vector<16x256xbf16>
    %c0_45 = arith.constant 0 : index
    %c0_46 = arith.constant 0 : index
    %120 = vector.load %arg8[%c0_45, %c0_46] : memref<256x768xbf16, #tpu.memory_space<vmem>>, vector<256x768xbf16>
    %cst_47 = arith.constant dense<0.000000e+00> : vector<16x768xf32>
    %121 = tpu.matmul %119, %120, %cst_47 {dimension_numbers = #tpu.dot_dimension_numbers<[1], [0], [0], [1], [0, 0, 1, 1], [], []>} : vector<16x256xbf16>, vector<256x768xbf16>, vector<16x768xf32> -> vector<16x768xf32>
    %c0_48 = arith.constant 0 : index
    %c2048 = arith.constant 2048 : index
    %122 = vector.load %arg11[%c0_48, %c2048] : memref<1x3968xf32, #tpu.memory_space<vmem>>, vector<1x768xf32>
    %123 = vector.broadcast %122 : vector<1x768xf32> to vector<16x768xf32>
    %124 = arith.addf %121, %123 : vector<16x768xf32>
    %125 = vector.extract_strided_slice %118 {offsets = [0, 0], sizes = [16, 256], strides = [1, 1]} : vector<16x768xf32> to vector<16x256xf32>
    %126 = vector.extract_strided_slice %124 {offsets = [0, 0], sizes = [16, 256], strides = [1, 1]} : vector<16x768xf32> to vector<16x256xf32>
    %127 = arith.addf %125, %126 : vector<16x256xf32>
    %128 = arith.negf %127 : vector<16x256xf32>
    %129 = math.exp %128 : vector<16x256xf32>
    %cst_49 = arith.constant 1.000000e+00 : f32
    %130 = vector.broadcast %cst_49 : f32 to vector<16x256xf32>
    %131 = arith.addf %130, %129 : vector<16x256xf32>
    %132 = arith.divf %130, %131 : vector<16x256xf32>
    %133 = vector.extract_strided_slice %118 {offsets = [0, 256], sizes = [16, 256], strides = [1, 1]} : vector<16x768xf32> to vector<16x256xf32>
    %134 = vector.extract_strided_slice %124 {offsets = [0, 256], sizes = [16, 256], strides = [1, 1]} : vector<16x768xf32> to vector<16x256xf32>
    %135 = arith.addf %133, %134 : vector<16x256xf32>
    %136 = arith.negf %135 : vector<16x256xf32>
    %137 = math.exp %136 : vector<16x256xf32>
    %cst_50 = arith.constant 1.000000e+00 : f32
    %138 = vector.broadcast %cst_50 : f32 to vector<16x256xf32>
    %139 = arith.addf %138, %137 : vector<16x256xf32>
    %140 = arith.divf %138, %139 : vector<16x256xf32>
    %141 = vector.extract_strided_slice %118 {offsets = [0, 512], sizes = [16, 256], strides = [1, 1]} : vector<16x768xf32> to vector<16x256xf32>
    %142 = vector.extract_strided_slice %124 {offsets = [0, 512], sizes = [16, 256], strides = [1, 1]} : vector<16x768xf32> to vector<16x256xf32>
    %143 = arith.mulf %132, %142 : vector<16x256xf32>
    %144 = arith.addf %141, %143 : vector<16x256xf32>
    %145 = math.tanh %144 : vector<16x256xf32>
    %cst_51 = arith.constant 1.000000e+00 : f32
    %146 = vector.broadcast %cst_51 : f32 to vector<16x256xf32>
    %147 = arith.subf %146, %140 : vector<16x256xf32>
    %148 = arith.mulf %147, %145 : vector<16x256xf32>
    %149 = arith.mulf %140, %5 : vector<16x256xf32>
    %150 = arith.addf %148, %149 : vector<16x256xf32>
    %c0_52 = arith.constant 0 : index
    %c0_53 = arith.constant 0 : index
    %151 = vector.load %arg14[%c0_52, %c0_53] : memref<16x256xf32, #tpu.memory_space<vmem>>, vector<16x256xf32>
    tpu.vector_store %arg14[%c0_52, %c0_53], %150 {strides = array<i32>} : memref<16x256xf32, #tpu.memory_space<vmem>>, vector<16x256xf32>,
    %152 = arith.truncf %150 : vector<16x256xf32> to vector<16x256xbf16>
    %c0_54 = arith.constant 0 : index
    %c0_55 = arith.constant 0 : index
    %153 = vector.load %arg9[%c0_54, %c0_55] : memref<256x512xbf16, #tpu.memory_space<vmem>>, vector<256x512xbf16>
    %cst_56 = arith.constant dense<0.000000e+00> : vector<16x512xf32>
    %154 = tpu.matmul %152, %153, %cst_56 {dimension_numbers = #tpu.dot_dimension_numbers<[1], [0], [0], [1], [0, 0, 1, 1], [], []>} : vector<16x256xbf16>, vector<256x512xbf16>, vector<16x512xf32> -> vector<16x512xf32>
    %c0_57 = arith.constant 0 : index
    %c2816 = arith.constant 2816 : index
    %155 = vector.load %arg11[%c0_57, %c2816] : memref<1x3968xf32, #tpu.memory_space<vmem>>, vector<1x512xf32>
    %156 = vector.broadcast %155 : vector<1x512xf32> to vector<16x512xf32>
    %157 = arith.addf %154, %156 : vector<16x512xf32>
    %158 = arith.negf %157 : vector<16x512xf32>
    %159 = math.exp %158 : vector<16x512xf32>
    %cst_58 = arith.constant 1.000000e+00 : f32
    %160 = vector.broadcast %cst_58 : f32 to vector<16x512xf32>
    %161 = arith.addf %160, %159 : vector<16x512xf32>
    %162 = arith.divf %160, %161 : vector<16x512xf32>
    %163 = arith.mulf %157, %162 : vector<16x512xf32>
    %164 = vector.extract_strided_slice %163 {offsets = [0, 0], sizes = [16, 256], strides = [1, 1]} : vector<16x512xf32> to vector<16x256xf32>
    %165 = vector.extract_strided_slice %163 {offsets = [0, 256], sizes = [16, 256], strides = [1, 1]} : vector<16x512xf32> to vector<16x256xf32>
    %166 = arith.mulf %164, %164 : vector<16x256xf32>
    %cst_59 = arith.constant dense<0.000000e+00> : vector<16xf32>
    %167 = vector.multi_reduction <add>, %166, %cst_59 [1] : vector<16x256xf32> to vector<16xf32>
    %168 = vector.shape_cast %167 : vector<16xf32> to vector<16x1xf32>
    %cst_60 = arith.constant 2.560000e+02 : f32
    %169 = vector.broadcast %cst_60 : f32 to vector<16x1xf32>
    %170 = arith.divf %168, %169 : vector<16x1xf32>
    %cst_61 = arith.constant 9.99999997E-7 : f32
    %171 = vector.broadcast %cst_61 : f32 to vector<16x1xf32>
    %172 = arith.addf %170, %171 : vector<16x1xf32>
    %173 = math.rsqrt %172 : vector<16x1xf32>
    %174 = vector.broadcast %173 : vector<16x1xf32> to vector<16x256xf32>
    %175 = arith.mulf %164, %174 : vector<16x256xf32>
    %176 = arith.mulf %165, %165 : vector<16x256xf32>
    %cst_62 = arith.constant dense<0.000000e+00> : vector<16xf32>
    %177 = vector.multi_reduction <add>, %176, %cst_62 [1] : vector<16x256xf32> to vector<16xf32>
    %178 = vector.shape_cast %177 : vector<16xf32> to vector<16x1xf32>
    %cst_63 = arith.constant 2.560000e+02 : f32
    %179 = vector.broadcast %cst_63 : f32 to vector<16x1xf32>
    %180 = arith.divf %178, %179 : vector<16x1xf32>
    %cst_64 = arith.constant 9.99999997E-7 : f32
    %181 = vector.broadcast %cst_64 : f32 to vector<16x1xf32>
    %182 = arith.addf %180, %181 : vector<16x1xf32>
    %183 = math.rsqrt %182 : vector<16x1xf32>
    %184 = vector.broadcast %183 : vector<16x1xf32> to vector<16x256xf32>
    %185 = arith.mulf %165, %184 : vector<16x256xf32>
    %186 = tpu.concatenate %175, %185 in 1 : vector<16x256xf32>, vector<16x256xf32> -> vector<16x512xf32>
    %c0_65 = arith.constant 0 : index
    %c3328 = arith.constant 3328 : index
    %187 = vector.load %arg11[%c0_65, %c3328] : memref<1x3968xf32, #tpu.memory_space<vmem>>, vector<1x512xf32>
    %188 = vector.broadcast %187 : vector<1x512xf32> to vector<16x512xf32>
    %189 = arith.mulf %186, %188 : vector<16x512xf32>
    %c0_66 = arith.constant 0 : index
    %c0_67 = arith.constant 0 : index
    %190 = vector.load %arg10[%c0_66, %c0_67] : memref<512x8xf32, #tpu.memory_space<vmem>>, vector<512x8xf32>
    %cst_68 = arith.constant dense<0.000000e+00> : vector<16x8xf32>
    %191 = tpu.matmul %189, %190, %cst_68 {dimension_numbers = #tpu.dot_dimension_numbers<[1], [0], [0], [1], [0, 0, 1, 1], [], []>} : vector<16x512xf32>, vector<512x8xf32>, vector<16x8xf32> -> vector<16x8xf32>
    %c0_69 = arith.constant 0 : index
    %c3840 = arith.constant 3840 : index
    %192 = vector.load %arg11[%c0_69, %c3840] : memref<1x3968xf32, #tpu.memory_space<vmem>>, vector<1x8xf32>
    %193 = vector.broadcast %192 : vector<1x8xf32> to vector<16x8xf32>
    %194 = arith.addf %191, %193 : vector<16x8xf32>
    %c0_70 = arith.constant 0 : index
    %c0_71 = arith.constant 0 : index
    %c0_72 = arith.constant 0 : index
    %195 = vector.load %arg12[%c0_70, %c0_71, %c0_72] : memref<1x16x8xf32, #tpu.memory_space<vmem>>, vector<1x16x8xf32>
    %196 = vector.shape_cast %195 : vector<1x16x8xf32> to vector<16x8xf32>
    %197 = vector.shape_cast %194 : vector<16x8xf32> to vector<1x16x8xf32>
    tpu.vector_store %arg12[%c0_70, %c0_71, %c0_72], %197 {strides = array<i32>} : memref<1x16x8xf32, #tpu.memory_space<vmem>>, vector<1x16x8xf32>,
    %c0_73 = arith.constant 0 : index
    %c0_74 = arith.constant 0 : index
    %198 = vector.load %arg13[%c0_73, %c0_74] : memref<16x256xf32, #tpu.memory_space<vmem>>, vector<16x256xf32>
    tpu.vector_store %arg13[%c0_73, %c0_74], %150 {strides = array<i32>} : memref<16x256xf32, #tpu.memory_space<vmem>>, vector<16x256xf32>,
    return
  }
  func.func @transform_0(%arg0: i32) -> (i32, i32, i32) {
    %c0_i32 = arith.constant 0 : i32
    %c0_i32_0 = arith.constant 0 : i32
    %c0_i32_1 = arith.constant 0 : i32
    return %arg0, %c0_i32, %c0_i32_0 : i32, i32, i32
  }
  func.func @transform_1(%arg0: i32) -> (i32, i32) {
    %c0_i32 = arith.constant 0 : i32
    %c0_i32_0 = arith.constant 0 : i32
    %c0_i32_1 = arith.constant 0 : i32
    return %c0_i32, %c0_i32_0 : i32, i32
  }
  func.func @transform_2(%arg0: i32) -> (i32, i32) {
    %c0_i32 = arith.constant 0 : i32
    %c0_i32_0 = arith.constant 0 : i32
    %c0_i32_1 = arith.constant 0 : i32
    return %c0_i32, %c0_i32_0 : i32, i32
  }
  func.func @transform_3(%arg0: i32) -> (i32, i32) {
    %c0_i32 = arith.constant 0 : i32
    %c0_i32_0 = arith.constant 0 : i32
    %c0_i32_1 = arith.constant 0 : i32
    return %c0_i32, %c0_i32_0 : i32, i32
  }
  func.func @transform_4(%arg0: i32) -> (i32, i32) {
    %c0_i32 = arith.constant 0 : i32
    %c0_i32_0 = arith.constant 0 : i32
    %c0_i32_1 = arith.constant 0 : i32
    return %c0_i32, %c0_i32_0 : i32, i32
  }
  func.func @transform_5(%arg0: i32) -> (i32, i32) {
    %c0_i32 = arith.constant 0 : i32
    %c0_i32_0 = arith.constant 0 : i32
    %c0_i32_1 = arith.constant 0 : i32
    return %c0_i32, %c0_i32_0 : i32, i32
  }
  func.func @transform_6(%arg0: i32) -> (i32, i32) {
    %c0_i32 = arith.constant 0 : i32
    %c0_i32_0 = arith.constant 0 : i32
    %c0_i32_1 = arith.constant 0 : i32
    return %c0_i32, %c0_i32_0 : i32, i32
  }
  func.func @transform_7(%arg0: i32) -> (i32, i32) {
    %c0_i32 = arith.constant 0 : i32
    %c0_i32_0 = arith.constant 0 : i32
    %c0_i32_1 = arith.constant 0 : i32
    return %c0_i32, %c0_i32_0 : i32, i32
  }
  func.func @transform_8(%arg0: i32) -> (i32, i32) {
    %c0_i32 = arith.constant 0 : i32
    %c0_i32_0 = arith.constant 0 : i32
    %c0_i32_1 = arith.constant 0 : i32
    return %c0_i32, %c0_i32_0 : i32, i32
  }
  func.func @transform_9(%arg0: i32) -> (i32, i32) {
    %c0_i32 = arith.constant 0 : i32
    %c0_i32_0 = arith.constant 0 : i32
    %c0_i32_1 = arith.constant 0 : i32
    return %c0_i32, %c0_i32_0 : i32, i32
  }
  func.func @transform_10(%arg0: i32) -> (i32, i32) {
    %c0_i32 = arith.constant 0 : i32
    %c0_i32_0 = arith.constant 0 : i32
    %c0_i32_1 = arith.constant 0 : i32
    return %c0_i32, %c0_i32_0 : i32, i32
  }
  func.func @transform_11(%arg0: i32) -> (i32, i32, i32) {
    %c0_i32 = arith.constant 0 : i32
    %c0_i32_0 = arith.constant 0 : i32
    %c0_i32_1 = arith.constant 0 : i32
    return %arg0, %c0_i32, %c0_i32_0 : i32, i32, i32
  }
  func.func @transform_12(%arg0: i32) -> (i32, i32) {
    %c0_i32 = arith.constant 0 : i32
    %c0_i32_0 = arith.constant 0 : i32
    %c0_i32_1 = arith.constant 0 : i32
    return %c0_i32, %c0_i32_0 : i32, i32
  }
}

</mosaic_0001>

<bundles_post_ra>
// kernel: tpu_custom_call.1
= control target key start
LH: loop header
LB: loop body
LE: loop exit
PB: predicated region body
PF: predicated region fallthrough
CT: control target
= control target key end

     0   :  { %18 = vsyncpa [#allocation4], 0  ;;  %s6761_s0 = inlined_call_operand.hbm [shape: f32[1,16,16], index: 0, kind: input, shape index: {}]   ;;  %s6762_s1 = inlined_call_operand.vmem [shape: f32[16,256], index: 1, kind: input, shape index: {}]   ;;  %s6763_s2 = inlined_call_operand.hbm [shape: bf16[16,256], index: 2, kind: input, shape index: {}]   ;;  %s6764_s3 = inlined_call_operand.hbm [shape: bf16[128,128], index: 3, kind: input, shape index: {}]   ;;  %s6765_s4 = inlined_call_operand.hbm [shape: bf16[64,64], index: 4, kind: input, shape index: {}]   ;;  %s6766_s5 = inlined_call_operand.hbm [shape: bf16[32,32], index: 5, kind: input, shape index: {}]   ;;  %s6767_s6 = inlined_call_operand.hbm [shape: bf16[256,768], index: 6, kind: input, shape index: {}]   ;;  %s6768_s7 = inlined_call_operand.hbm [shape: bf16[256,768], index: 7, kind: input, shape index: {}]   ;;  %s6769_s8 = inlined_call_operand.vmem [shape: bf16[256,512], index: 8, kind: input, shape index: {}]   ;;  %s6770_s9 = inlined_call_operand.vmem [shape: f32[512,8], index: 9, kind: input, shape index: {}]   ;;  %s6771_s10 = inlined_call_operand.hbm [shape: f32[1,3968], index: 10, kind: input, shape index: {}]   ;;  %s6772_s11 = inlined_call_operand.vmem [shape: f32[1,16,8], index: 11, kind: output, shape index: {0}]   ;;  %s6773_s12 = inlined_call_operand.hbm [shape: f32[16,256], index: 12, kind: output, shape index: {1}]  }
   0x1   :  { %19 = vsyncpa [#allocation7], 0 }
   0x2   :  { %20 = vsyncpa [#allocation10], 0 }
   0x3   :  { %21 = vsyncpa [#allocation13], 0 }
   0x4   :  { %22 = vsyncpa [#allocation16], 0 }
   0x5   :  { %23 = vsyncpa [#allocation5], 0  ;;  %s43_s23 = sshll.u32 %s6763_s2, 4  ;;  %s5321_s24 = smov [#allocation6]   ;;  %s44_s23 = int_to_ptr.hbm [resolvable:$true] %s43_s23 }
   0x6   :  { %s45_s25 = sshll.u32 %s5321_s24, 4  ;;  %s5322_s26 = smov 128   ;;  %s46_s25 = int_to_ptr.vmem [resolvable:$true] %s45_s25 }
   0x7   :  { %s5323_s27 = smov 8   ;;  %s69_s30 = sshll.u32 %s6765_s4, 4  ;;  %s70_s30 = int_to_ptr.hbm [resolvable:$true] %s69_s30 }
   0x8   :  { %51 = dma.hbm_to_vmem [thread:$0]  %s44_s23, 256, %s46_s25, [#allocation7], %s5322_s26, %s5322_s26, %s5323_s27  }
   0x9   :  { %s5324_s13 = smov [#allocation9]   ;;  %s95_s17 = sshll.u32 %s6767_s6, 4  ;;  %s96_s17 = int_to_ptr.hbm [resolvable:$true] %s95_s17 }
   0xa   :  { %s71_s14 = sshll.u32 %s5324_s13, 4  ;;  %s5325_s2 = smov 64   ;;  %s72_s14 = int_to_ptr.vmem [resolvable:$true] %s71_s14 }
   0xb   :  { %s5326_s18 = smov 4   ;;  %s5327_s19 = smov [#allocation12]  }
   0xc   :  { %77 = dma.hbm_to_vmem [thread:$0]  %s70_s30, 512, %s72_s14, [#allocation10], %s5325_s2, %s5325_s2, %s5326_s18  }
   0xd   :  { %s97_s20 = sshll.u32 %s5327_s19, 4  ;;  %s28_s22 = sshll.u32 %s6761_s0, 4  ;;  %s98_s20 = int_to_ptr.vmem [resolvable:$true] %s97_s20  ;;  %s29_s22 = int_to_ptr.hbm [resolvable:$true] %s28_s22 }
   0xe   :  { %s5328_s23 = smov 384   ;;  %s5329_s24 = smov 24  }
   0xf   :  { %103 = dma.hbm_to_vmem [thread:$0]  %s96_s17, 12288, %s98_s20, [#allocation13], %s5328_s23, %s5328_s23, %s5329_s24  }
  0x10   :  { %s5330_s6 = smov [#allocation3]   ;;  %s56_s30 = sshll.u32 %s6764_s3, 4  ;;  %s57_s30 = int_to_ptr.hbm [resolvable:$true] %s56_s30 }
  0x11   :  { %s30_s25 = sshll.u32 %s5330_s6, 4  ;;  %s82_s0 = sshll.u32 %s6766_s5, 4  ;;  %s31_s25 = int_to_ptr.vmem [resolvable:$true] %s30_s25  ;;  %s83_s0 = int_to_ptr.hbm [resolvable:$true] %s82_s0 }
  0x12   :  { %36 = dma.hbm_to_vmem [thread:$0]  %s29_s22, 256, %s31_s25, [#allocation4], %s5322_s26, %s5322_s26, %s5323_s27  }
  0x13   :  { %s5331_s15 = smov [#allocation8]   ;;  %s5332_s17 = smov [#allocation11]  }
  0x14   :  { %s58_s16 = sshll.u32 %s5331_s15, 4  ;;  %s84_s19 = sshll.u32 %s5332_s17, 4  ;;  %s59_s16 = int_to_ptr.vmem [resolvable:$true] %s58_s16  ;;  %s85_s19 = int_to_ptr.vmem [resolvable:$true] %s84_s19 }
  0x15   :  { %64 = dma.hbm_to_vmem [thread:$0]  %s57_s30, 1024, %s59_s16, [#allocation7], %s5325_s2, %s5325_s2, %s5326_s18  }
  0x16   :  { %s108_s3 = sshll.u32 %s6768_s7, 4  ;;  %s126_s27 = sshll.u32 %s6771_s10, 4  ;;  %s109_s3 = int_to_ptr.hbm [resolvable:$true] %s108_s3  ;;  %s127_s27 = int_to_ptr.hbm [resolvable:$true] %s126_s27 }
  0x17   :  { %90 = dma.hbm_to_vmem [thread:$0]  %s83_s0, 256, %s85_s19, [#allocation10], %s5325_s2, %s5325_s2, %s5326_s18  }
  0x18   :  { %s5333_s4 = smov [#allocation14]   ;;  %s5334_s6 = smov [#allocation15]  }
  0x19   :  { %s110_s22 = sshll.u32 %s5333_s4, 4  ;;  %s128_s7 = sshll.u32 %s5334_s6, 4  ;;  %s111_s22 = int_to_ptr.vmem [resolvable:$true] %s110_s22  ;;  %s129_s7 = int_to_ptr.vmem [resolvable:$true] %s128_s7 }
  0x1a   :  { %116 = dma.hbm_to_vmem [thread:$0]  %s109_s3, 12288, %s111_s22, [#allocation13], %s5328_s23, %s5328_s23, %s5329_s24  }
  0x1b   :  { %131 = dma.hbm_to_vmem [thread:$0]  %s127_s27, 496, %s129_s7, [#allocation16]  }
  0x1c   :  { %5309 = dma.done.wait [#allocation4], 256  }
  0x1d   :  { %5310 = vsyncadd [#allocation4], 4294967040 }
  0x1e   :  { %5311 = dma.done.wait [#allocation7], 1280  }
  0x1f   :  { %5312 = vsyncadd [#allocation7], 4294966016 }
  0x20   :  { %5313 = dma.done.wait [#allocation10], 768  }
  0x21   :  { %5314 = vsyncadd [#allocation10], 4294966528 }
  0x22   :  { %5315 = dma.done.wait [#allocation13], 24576  }
  0x23   :  { %5316 = vsyncadd [#allocation13], 4294942720 }
  0x24   :  { %5317 = dma.done.wait [#allocation16], 496  }
  0x25   :  { %5318 = vsyncadd [#allocation16], 4294966800  ;;  %v3502_v0 = vld [vmem:[#allocation6] sm:$0xf]  ;;  %v4619_v1 = vld [vmem:[#allocation6 + $0x4] sm:$0xf0] }
  0x26   :  { %v4618_v2 = vld [vmem:[#allocation6 + $0x4] sm:$0xf]  ;;  %v3503_v3 = vor.u32 %v4619_v1, %v3502_v0  ;;  %v3504_v4 = vld [vmem:[#allocation6 + $0x8] sm:$0xf0]  ;;  %v177_v5 = vld [vmem:[#allocation3] sm:$0xff]  ;;  %vm202_vm0 = vcmask 130048  }
  0x27   :  { %v178_v6 = vld [vmem:[#allocation3 + $0x8] sm:$0xff]  ;;  %v3507_v7 = vor.u32 %v4618_v2, %v3504_v4  ;;  %v186_v9 = vld [vmem:[#allocation15] sm:$0x3]  ;;  %v3748_v31 = vld [vmem:[#allocation12 + $0x150] sm:$0xf]  ;;  %s5338_s10 = smov 96  }
  0x28   :  { %v183_v8 = vpack.c.bf16 %v178_v6, %v177_v5  ;;  %213 = vmatpush.bf16.msra.mxu0 %v3503_v3  ;;  %v188_v10 = vperm.slane %v186_v9, 0  ;;  %v189_v14 = vperm.slane %v186_v9, 1  ;;  %v4679_v32 = vld [vmem:[#allocation12 + $0x164] sm:$0xf0]  ;;  %v3724_v34 = vld [vmem:[#allocation12 + $0x120] sm:$0xf] }
  0x29   :  { %227 = vmatpush.bf16.msra.mxu3 %v3507_v7  ;;  %v4673_v35 = vld [vmem:[#allocation12 + $0x134] sm:$0xf0]  ;;  %v3749_v37 = vor.u32 %v4679_v32, %v3748_v31  ;;  %v3700_v41 = vld [vmem:[#allocation12 + $0xf0] sm:$0xf]  ;;  %v4667_v42 = vld [vmem:[#allocation12 + $0x104] sm:$0xf0] }
  0x2a   :  { %v3725_v39 = vor.u32 %v4673_v35, %v3724_v34  ;;  %v3701_v52 = vor.u32 %v4667_v42, %v3700_v41  ;;  %v3676_v55 = vld [vmem:[#allocation12 + $0xc0] sm:$0xf]  ;;  %v4661_v56 = vld [vmem:[#allocation12 + $0xd4] sm:$0xf0]  ;;  %v3652_v2 = vld [vmem:[#allocation12 + $0x90] sm:$0xf] }
  0x2b   :  { %3508 = vmatmul.msk.bf16.vlgmr.msra.gmra.mxu0 %vm202_vm0, %v183_v8  ;;  %1424 = vmatpush.bf16.msra.mxu1 %v3749_v37  ;;  %v3677_v0 = vor.u32 %v4661_v56, %v3676_v55  ;;  %v4655_v3 = vld [vmem:[#allocation12 + $0xa4] sm:$0xf0]  ;;  %v5335_v42 = vmov 256.0   ;;  %v4625_v55 = vld [vmem:[#allocation8 + $0x28] sm:$0xff]  ;;  %s3481_s18 = sshll.u32 %s6773_s12, 4  ;;  %s5341_s24 = smov 256   ;;  %s3482_s18 = int_to_ptr.hbm [resolvable:$true] %s3481_s18 }
  0x2c   :  { %3509 = vmatmul.msk.bf16.vlgmr.msra.gmra.mxu3 %vm202_vm0, %v183_v8  ;;  %v4643_v41 = vld [vmem:[#allocation12 + $0x44] sm:$0xf0]  ;;  %v3708_v56 = vld [vmem:[#allocation12 + $0xf8] sm:$0xf]  ;;  %s5342_s25 = smov 16  }
  0x2f   :  { %1425 = vmatpush.bf16.msra.mxu1 %v3725_v39 }
  0x33   :  { %1426 = vmatpush.bf16.msra.mxu1 %v3701_v52  ;;  %v4674_v52 = vld [vmem:[#allocation12 + $0x13c] sm:$0xf0] }
  0x37   :  { %1427 = vmatpush.bf16.msra.mxu1 %v3677_v0 }
  0xa8   :  { %v215_v11 = vpop.f32.mrf.mxu0 }
  0xa9   :  { %v5447_v12 = vadd.f32 %v215_v11, %v188_v10 }
  0xab   :  { %v3510_v13 = vmul.f32 -1.442695, %v5447_v12 }
  0xad   :  { %4945 = vpow2.f32 %v3510_v13 }
  0xaf   :  { %v229_v15 = vpop.f32.mrf.mxu3 }
  0xb0   :  { %v5450_v16 = vadd.f32 %v229_v15, %v189_v14  ;;  %v217_v17 = vpop.f32.mrf.mxu0  ;;  %v3653_v15 = vor.u32 %v4655_v3, %v3652_v2  ;;  %v3660_v2 = vld [vmem:[#allocation12 + $0x98] sm:$0xf]  ;;  %v4656_v3 = vld [vmem:[#allocation12 + $0xac] sm:$0xf0] }
  0xb1   :  { %v5452_v18 = vadd.f32 %v217_v17, %v188_v10 }
  0xb2   :  { %v3511_v19 = vmul.f32 -1.442695, %v5450_v16  ;;  %1428 = vmatpush.bf16.msra.mxu1 %v3653_v15 }
  0xb3   :  { %v4946_v20 = vpop.eup %4945  ;;  %v3512_v21 = vmul.f32 -1.442695, %v5452_v18 }
  0xb4   :  { %v246_v22 = vadd.f32 1.0, %v4946_v20  ;;  %4947 = vpow2.f32 %v3511_v19  ;;  %v3628_v20 = vld [vmem:[#allocation12 + $0x60] sm:$0xf] }
  0xb5   :  { %4949 = vpow2.f32 %v3512_v21  ;;  %v4649_v21 = vld [vmem:[#allocation12 + $0x74] sm:$0xf0] }
  0xb6   :  { %4951 = vrcp.f32 %v246_v22  ;;  %vm255_vm1 = vweird.f32 %v246_v22  ;;  %v261_v45 = vand.u32 2147483648, %v246_v22  ;;  %v259_v48 = vand.u32 2147483647, %v246_v22 }
  0xb7   :  { %v231_v23 = vpop.f32.mrf.mxu3 }
  0xb8   :  { %v5456_v24 = vadd.f32 %v231_v23, %v189_v14  ;;  %v262_v57 = vor.u32 1.1754944e-38, %v261_v45  ;;  %vm260_vm4 = vcmp.eq.f32.partialorder %v259_v48, 8.507059e+37  ;;  %v4637_v45 = vld [vmem:[#allocation12 + $0x14] sm:$0xf0]  ;;  %v4644_v14 = vld [vmem:[#allocation12 + $0x4c] sm:$0xf0] }
  0xba   :  { %v4948_v25 = vpop.eup %4947  ;;  %v3513_v26 = vmul.f32 -1.442695, %v5456_v24 }
  0xbb   :  { %v4950_v27 = vpop.eup %4949  ;;  %v5459_v28 = vadd.f32 1.0, %v4948_v25 }
  0xbc   :  { %v4952_v29 = vpop.eup %4951  ;;  %v5461_v30 = vadd.f32 1.0, %v4950_v27  ;;  %4953 = vpow2.f32 %v3513_v26 }
  0xbd   :  { %v251_v33 = vmul.f32 %v4952_v29, %v246_v22  ;;  %4955 = vrcp.f32 %v5459_v28  ;;  %vm256_vm2 = vweird.f32 %v4952_v29  ;;  %v276_v58 = vand.u32 2147483648, %v5459_v28 }
  0xbe   :  { %4957 = vrcp.f32 %v5461_v30  ;;  %vm5468_vm3 = vmor %vm255_vm1, %vm256_vm2  ;;  %v274_v61 = vand.u32 2147483647, %v5459_v28  ;;  %vm270_vm6 = vweird.f32 %v5459_v28  ;;  %vm285_vm7 = vweird.f32 %v5461_v30 }
  0xbf   :  { %v252_v36 = vsub.f32 1.0, %v251_v33  ;;  %v277_v5 = vor.u32 1.1754944e-38, %v276_v58  ;;  %v289_v7 = vand.u32 2147483647, %v5461_v30  ;;  %v291_v8 = vand.u32 2147483648, %v5461_v30 }
  0xc0   :  { %vm275_vm10 = vcmp.eq.f32.partialorder %v274_v61, 8.507059e+37  ;;  %v3684_v61 = vld [vmem:[#allocation12 + $0xc8] sm:$0xf] }
  0xc1   :  { %v253_v38 = vmul.f32 %v4952_v29, %v252_v36  ;;  %vm290_vm12 = vcmp.eq.f32.partialorder %v289_v7, 8.507059e+37  ;;  %v292_v22 = vor.u32 1.1754944e-38, %v291_v8  ;;  %v3636_v7 = vld [vmem:[#allocation12 + $0x68] sm:$0xf]  ;;  %v4650_v8 = vld [vmem:[#allocation12 + $0x7c] sm:$0xf0] }
  0xc2   :  { %v4954_v40 = vpop.eup %4953 }
  0xc3   :  { %v4956_v43 = vpop.eup %4955  ;;  %v254_v44 = vadd.f32 %v4952_v29, %v253_v38  ;;  %v5465_v46 = vadd.f32 1.0, %v4954_v40  ;;  %v3604_v40 = vld [vmem:[#allocation12 + $0x30] sm:$0xf] }
  0xc4   :  { %v4958_v47 = vpop.eup %4957  ;;  %v266_v49 = vmul.f32 %v4956_v43, %v5459_v28  ;;  %vm271_vm5 = vweird.f32 %v4956_v43 }
  0xc5   :  { %v281_v51 = vmul.f32 %v4958_v47, %v5461_v30  ;;  %4959 = vrcp.f32 %v5465_v46  ;;  %v258_v53 = vsel %vm5468_vm3, %v4952_v29, %v254_v44  ;;  %vm286_vm8 = vweird.f32 %v4958_v47  ;;  %vm272_vm9 = vmor %vm270_vm6, %vm271_vm5  ;;  %v3580_v44 = vld [vmem:[#allocation12] sm:$0xf] }
  0xc6   :  { %v267_v54 = vsub.f32 1.0, %v266_v49  ;;  %v263_v62 = vsel %vm260_vm4, %v262_v57, %v258_v53  ;;  %vm5488_vm11 = vmor %vm285_vm7, %vm286_vm8  ;;  %v304_v23 = vand.u32 2147483647, %v5465_v46  ;;  %v306_v25 = vand.u32 2147483648, %v5465_v46  ;;  %v4626_v49 = vld [vmem:[#allocation8 + $0x30] sm:$0xff] }
  0xc7   :  { %v282_v59 = vsub.f32 1.0, %v281_v51  ;;  %v5483_v9 = vmul.f32 %v263_v62, %v5447_v12  ;;  %v3629_v29 = vor.u32 %v4649_v21, %v3628_v20  ;;  %vm300_vm14 = vweird.f32 %v5465_v46  ;;  %v3732_v51 = vld [vmem:[#allocation12 + $0x128] sm:$0xf]  ;;  %v4668_v57 = vld [vmem:[#allocation12 + $0x10c] sm:$0xf0] }
  0xc8   :  { %v268_v60 = vmul.f32 %v4956_v43, %v267_v54  ;;  %v307_v32 = vor.u32 1.1754944e-38, %v306_v25  ;;  %vm305_vm0 = vcmp.eq.f32.partialorder %v304_v23, 8.507059e+37  ;;  %4961 = vrcp.f32 %v5335_v42  ;;  %v4662_v62 = vld [vmem:[#allocation12 + $0xdc] sm:$0xf0]  ;;  %v4620_v20 = vld [vmem:[#allocation8] sm:$0xff] }
  0xc9   :  { %v283_v63 = vmul.f32 %v4958_v47, %v282_v59  ;;  %v314_v27 = vmul.f32 %v5483_v9, %v5483_v9  ;;  %1429 = vmatpush.bf16.msra.mxu1 %v3629_v29  ;;  %v3733_v53 = vor.u32 %v4674_v52, %v3732_v51  ;;  %v3709_v58 = vor.u32 %v4668_v57, %v3708_v56  ;;  %v3588_v23 = vld [vmem:[#allocation12 + $0x8] sm:$0xf]  ;;  %v4638_v25 = vld [vmem:[#allocation12 + $0x1c] sm:$0xf0]  ;;  %v4681_v51 = vld [vmem:[#allocation12 + $0x174] sm:$0xf0] }
  0xca   :  { %v269_v1 = vadd.f32 %v4956_v43, %v268_v60  ;;  %v4624_v60 = vld [vmem:[#allocation8 + $0x20] sm:$0xff]  ;;  %v359_v42 = vld [vmem:[#allocation15 + $0x2] sm:$0x3] }
  0xcb   :  { %v4960_v4 = vpop.eup %4959  ;;  %v284_v6 = vadd.f32 %v4958_v47, %v283_v63  ;;  %v3685_v63 = vor.u32 %v4662_v62, %v3684_v61  ;;  %v3692_v61 = vld [vmem:[#allocation12 + $0xd0] sm:$0xf]  ;;  %v4663_v62 = vld [vmem:[#allocation12 + $0xe4] sm:$0xf0] }
  0xcc   :  { %v273_v10 = vsel %vm272_vm9, %v4956_v43, %v269_v1  ;;  %v296_v11 = vmul.f32 %v4960_v4, %v5465_v46  ;;  %vm301_vm13 = vweird.f32 %v4960_v4  ;;  %v4627_v43 = vld [vmem:[#allocation8 + $0x38] sm:$0xff]  ;;  %v3756_v46 = vld [vmem:[#allocation12 + $0x158] sm:$0xf] }
  0xcd   :  { %v278_v13 = vsel %vm275_vm10, %v277_v5, %v273_v10  ;;  %v288_v12 = vsel %vm5488_vm11, %v4958_v47, %v284_v6  ;;  %vm302_vm15 = vmor %vm300_vm14, %vm301_vm13  ;;  %438 = vmatpush.bf16.msra.mxu2 %v4627_v43  ;;  %v4680_v47 = vld [vmem:[#allocation12 + $0x16c] sm:$0xf0]  ;;  %v4623_v1 = vld [vmem:[#allocation8 + $0x18] sm:$0xff] }
  0xce   :  { %v5493_v17 = vmul.f32 %v278_v13, %v5450_v16  ;;  %v297_v19 = vsub.f32 1.0, %v296_v11  ;;  %v293_v28 = vsel %vm290_vm12, %v292_v22, %v288_v12  ;;  %v3757_v48 = vor.u32 %v4680_v47, %v3756_v46  ;;  %v4962_v50 = vpop.eup %4961  ;;  %v4622_v6 = vld [vmem:[#allocation8 + $0x10] sm:$0xff]  ;;  %v4621_v10 = vld [vmem:[#allocation8 + $0x8] sm:$0xff] }
  0xcf   :  { %v5505_v33 = vmul.f32 %v293_v28, %v5452_v18  ;;  %v3605_v18 = vor.u32 %v4643_v41, %v3604_v40  ;;  %v325_v54 = vmul.f32 256.0, %v4962_v50  ;;  %vm329_vm1 = vweird.f32 %v4962_v50  ;;  %v3612_v13 = vld [vmem:[#allocation12 + $0x38] sm:$0xf] }
  0xd0   :  { %v298_v26 = vmul.f32 %v4960_v4, %v297_v19  ;;  %v315_v16 = vmul.f32 %v5493_v17, %v5493_v17  ;;  %v3637_v11 = vor.u32 %v4650_v8, %v3636_v7  ;;  %v3613_v12 = vor.u32 %v4644_v14, %v3612_v13  ;;  %v4645_v7 = vld [vmem:[#allocation12 + $0x54] sm:$0xf0]  ;;  %v4938_v14 = vld [vmem:[#allocation15 + $0x4] ss:$0 sm:$0xff] }
  0xd1   :  { %v316_v37 = vmul.f32 %v5505_v33, %v5505_v33  ;;  %1430 = vmatpush.bf16.msra.mxu1 %v3605_v18  ;;  %439 = vmatpush.bf16.msra.mxu2 %v4626_v49  ;;  %v326_v59 = vsub.f32 1.0, %v325_v54  ;;  %v362_v46 = vperm.slane %v359_v42, 1 }
  0xd2   :  { %v299_v30 = vadd.f32 %v4960_v4, %v298_v26  ;;  %v318_v31 = vadd.f32 %v315_v16, %v314_v27  ;;  %v3589_v26 = vor.u32 %v4638_v25, %v3588_v23 }
  0xd3   :  { %v327_v0 = vmul.f32 %v4962_v50, %v326_v59  ;;  %v4675_v59 = vld [vmem:[#allocation12 + $0x144] sm:$0xf0] }
  0xd4   :  { %v303_v34 = vsel %vm302_vm15, %v4960_v4, %v299_v30  ;;  %319 = vadd.xlane.f32.xlu0 %v318_v31  ;;  %v3661_v4 = vor.u32 %v4656_v3, %v3660_v2  ;;  %v3644_v3 = vld [vmem:[#allocation12 + $0x70] sm:$0xf] }
  0xd5   :  { %v308_v35 = vsel %vm305_vm0, %v307_v32, %v303_v34  ;;  %440 = vmatpush.bf16.msra.mxu2 %v4625_v55  ;;  %v328_v5 = vadd.f32 %v4962_v50, %v327_v0  ;;  %v3668_v0 = vld [vmem:[#allocation12 + $0xa0] sm:$0xf] }
  0xd6   :  { %v5508_v36 = vmul.f32 %v308_v35, %v5456_v24  ;;  %v3581_v24 = vor.u32 %v4637_v45, %v3580_v44 }
  0xd7   :  { %v5514_v15 = vsel %vm329_vm1, %v4962_v50, %v328_v5  ;;  %v3764_v50 = vld [vmem:[#allocation12 + $0x160] sm:$0xf] }
  0xd8   :  { %v317_v38 = vmul.f32 %v5508_v36, %v5508_v36  ;;  %1431 = vmatpush.bf16.msra.mxu1 %v3581_v24  ;;  %v361_v24 = vperm.slane %v359_v42, 0  ;;  %v3765_v56 = vor.u32 %v4681_v51, %v3764_v50 }
  0xd9   :  { %441 = vmatpush.bf16.msra.mxu2 %v4624_v60  ;;  %v4669_v60 = vld [vmem:[#allocation12 + $0x114] sm:$0xf0] }
  0xda   :  { %v321_v39 = vadd.f32 %v317_v38, %v316_v37 }
  0xdc   :  { %322 = vadd.xlane.f32.xlu0 %v321_v39  ;;  %1480 = vmatpush.bf16.msrb.mxu1 %v3757_v48 }
  0xdd   :  { %442 = vmatpush.bf16.msra.mxu2 %v4623_v1  ;;  %v4657_v1 = vld [vmem:[#allocation12 + $0xb4] sm:$0xf0] }
  0xde   :  { %v3669_v2 = vor.u32 %v4657_v1, %v3668_v0  ;;  %v4629_v1 = vld [vmem:[#allocation9 + $0x8] sm:$0xff] }
  0xe0   :  { %1481 = vmatpush.bf16.msrb.mxu1 %v3733_v53 }
  0xe1   :  { %443 = vmatpush.bf16.msra.mxu2 %v4622_v6  ;;  %v3620_v6 = vld [vmem:[#allocation12 + $0x40] sm:$0xf] }
  0xe2   :  { %v3621_v8 = vor.u32 %v4645_v7, %v3620_v6 }
  0xe4   :  { %1482 = vmatpush.bf16.msrb.mxu1 %v3709_v58 }
  0xe5   :  { %444 = vmatpush.bf16.msra.mxu2 %v4621_v10  ;;  %v3596_v10 = vld [vmem:[#allocation12 + $0x10] sm:$0xf] }
  0xe8   :  { %1483 = vmatpush.bf16.msrb.mxu1 %v3685_v63  ;;  %v3693_v63 = vor.u32 %v4663_v62, %v3692_v61 }
  0xe9   :  { %445 = vmatpush.bf16.msra.mxu2 %v4620_v20 }
  0xec   :  { %1484 = vmatpush.bf16.msrb.mxu1 %v3661_v4  ;;  %v4651_v4 = vld [vmem:[#allocation12 + $0x84] sm:$0xf0] }
  0xed   :  { %v3645_v5 = vor.u32 %v4651_v4, %v3644_v3  ;;  %v4628_v4 = vld [vmem:[#allocation9] sm:$0xff] }
  0xf0   :  { %1485 = vmatpush.bf16.msrb.mxu1 %v3637_v11  ;;  %v4639_v11 = vld [vmem:[#allocation12 + $0x24] sm:$0xf0] }
  0xf1   :  { %v3597_v13 = vor.u32 %v4639_v11, %v3596_v10 }
  0xf4   :  { %1486 = vmatpush.bf16.msrb.mxu1 %v3613_v12 }
  0xf8   :  { %1487 = vmatpush.bf16.msrb.mxu1 %v3589_v26 }
 0x147   :  { %v320_v19 = vpop.xlane.xlu0 %319 }
 0x148   :  { %v331_v21 = vmul.f32 %v5514_v15, %v320_v19 }
 0x14a   :  { %v333_v22 = vadd.f32 1e-06, %v331_v21 }
 0x14c   :  { %4963 = vrsqrt.f32 %v333_v22  ;;  %vm341_vm3 = vweird.f32 %v333_v22 }
 0x14f   :  { %v323_v27 = vpop.xlane.xlu0 %322 }
 0x150   :  { %v332_v16 = vmul.f32 %v5514_v15, %v323_v27 }
 0x152   :  { %v4964_v28 = vpop.eup %4963  ;;  %v334_v29 = vadd.f32 1e-06, %v332_v16 }
 0x153   :  { %v336_v30 = vmul.f32 %v4964_v28, %v333_v22  ;;  %vm342_vm2 = vweird.f32 %v4964_v28 }
 0x154   :  { %4965 = vrsqrt.f32 %v334_v29  ;;  %vm343_vm4 = vmor %vm341_vm3, %vm342_vm2  ;;  %vm351_vm6 = vweird.f32 %v334_v29 }
 0x155   :  { %v337_v31 = vmul.f32 %v4964_v28, %v336_v30 }
 0x157   :  { %v338_v32 = vmul.f32 0.5, %v337_v31 }
 0x159   :  { %v339_v34 = vsub.f32 1.5, %v338_v32 }
 0x15a   :  { %v4966_v35 = vpop.eup %4965 }
 0x15b   :  { %v346_v37 = vmul.f32 %v4966_v35, %v334_v29  ;;  %v340_v38 = vmul.f32 %v4964_v28, %v339_v34  ;;  %vm352_vm5 = vweird.f32 %v4966_v35 }
 0x15c   :  { %vm353_vm7 = vmor %vm351_vm6, %vm352_vm5 }
 0x15d   :  { %v347_v39 = vmul.f32 %v4966_v35, %v346_v37  ;;  %v344_v18 = vsel %vm343_vm4, %v4964_v28, %v340_v38 }
 0x15e   :  { %v355_v44 = vmul.f32 %v344_v18, %v5483_v9  ;;  %v356_v45 = vmul.f32 %v344_v18, %v5493_v17  ;;  %v3740_v9 = vld [vmem:[#allocation12 + $0x130] sm:$0xf] }
 0x15f   :  { %v348_v40 = vmul.f32 0.5, %v347_v39  ;;  %v3741_v17 = vor.u32 %v4675_v59, %v3740_v9 }
 0x160   :  { %v365_v52 = vmul.f32 %v361_v24, %v355_v44  ;;  %v366_v53 = vmul.f32 %v362_v46, %v356_v45 }
 0x161   :  { %v349_v41 = vsub.f32 1.5, %v348_v40 }
 0x163   :  { %v350_v43 = vmul.f32 %v4966_v35, %v349_v41 }
 0x165   :  { %v354_v47 = vsel %vm353_vm7, %v4966_v35, %v350_v43  ;;  %vm577_vm7 = vcmask 523264  }
 0x166   :  { %v357_v48 = vmul.f32 %v354_v47, %v5505_v33  ;;  %v358_v49 = vmul.f32 %v354_v47, %v5508_v36  ;;  %v3716_v33 = vld [vmem:[#allocation12 + $0x100] sm:$0xf] }
 0x167   :  { %v3717_v36 = vor.u32 %v4669_v60, %v3716_v33  ;;  %v4631_v60 = vld [vmem:[#allocation9 + $0x18] sm:$0xff] }
 0x168   :  { %v367_v54 = vmul.f32 %v361_v24, %v357_v48  ;;  %v368_v55 = vmul.f32 %v362_v46, %v358_v49  ;;  %585 = vmatpush.bf16.msrb.mxu3 %v4631_v60 }
 0x16a   :  { %v369_v57 = vpack.c.bf16 %v368_v55, %v366_v53  ;;  %v5522_v58 = vpack.c.bf16 %v367_v54, %v365_v52  ;;  %v5336_v52 = vmov 128.0  }
 0x16c   :  { %446 = vmatmul.bf16.vlgmr.msra.gmra.mxu2 %v369_v57  ;;  %1432 = vmatmul.bf16.vlgmr.msra.gmra.mxu1 %v5522_v58 }
 0x16d   :  { %1536 = vmatpush.bf16.msra.mxu1 %v3765_v56 }
 0x171   :  { %1537 = vmatpush.bf16.msra.mxu1 %v3741_v17 }
 0x175   :  { %1538 = vmatpush.bf16.msra.mxu1 %v3717_v36  ;;  %v4630_v36 = vld [vmem:[#allocation9 + $0x10] sm:$0xff] }
 0x176   :  { %586 = vmatpush.bf16.msrb.mxu3 %v4630_v36 }
 0x179   :  { %1539 = vmatpush.bf16.msra.mxu1 %v3693_v63 }
 0x17a   :  { %587 = vmatpush.bf16.msrb.mxu3 %v4629_v1 }
 0x17c   :  { %1488 = vmatmul.bf16.vlgmr.msrb.gmra.mxu1 %v5522_v58 }
 0x17d   :  { %1540 = vmatpush.bf16.msra.mxu1 %v3669_v2 }
 0x17e   :  { %588 = vmatpush.bf16.msrb.mxu3 %v4628_v4 }
 0x181   :  { %1541 = vmatpush.bf16.msra.mxu1 %v3645_v5 }
 0x185   :  { %1542 = vmatpush.bf16.msra.mxu1 %v3621_v8 }
 0x189   :  { %1543 = vmatpush.bf16.msra.mxu1 %v3597_v13 }
 0x18c   :  { %1544 = vmatmul.bf16.vlgmr.msra.gmra.mxu1 %v5522_v58 }
 0x1ef   :  { %v447_v12 = vpop.f32.mrf.mxu2 }
 0x1f0   :  { %v448_v19 = vadd.f32 %v4938_v14, %v447_v12 }
 0x1f2   :  { %v3546_v20 = vmul.f32 -1.442695, %v448_v19 }
 0x1f4   :  { %4967 = vpow2.f32 %v3546_v20 }
 0x1f7   :  { %v449_v21 = vpop.f32.mrf.mxu2 }
 0x1f8   :  { %v450_v22 = vadd.f32 %v4938_v14, %v449_v21  ;;  %v4939_v21 = vld [vmem:[#allocation15 + $0x5] ss:$0 sm:$0xff] }
 0x1fa   :  { %v4968_v23 = vpop.eup %4967  ;;  %v3547_v25 = vmul.f32 -1.442695, %v450_v22 }
 0x1fb   :  { %v458_v26 = vadd.f32 1.0, %v4968_v23 }
 0x1fc   :  { %4969 = vpow2.f32 %v3547_v25 }
 0x1fd   :  { %4971 = vrcp.f32 %v458_v26  ;;  %v471_v31 = vand.u32 2147483648, %v458_v26  ;;  %v469_v34 = vand.u32 2147483647, %v458_v26  ;;  %vm465_vm9 = vweird.f32 %v458_v26 }
 0x1ff   :  { %v472_v38 = vor.u32 1.1754944e-38, %v471_v31  ;;  %vm470_vm11 = vcmp.eq.f32.partialorder %v469_v34, 8.507059e+37 }
 0x202   :  { %v4970_v27 = vpop.eup %4969 }
 0x203   :  { %v4972_v16 = vpop.eup %4971  ;;  %v459_v28 = vadd.f32 1.0, %v4970_v27 }
 0x204   :  { %v461_v29 = vmul.f32 %v4972_v16, %v458_v26  ;;  %vm466_vm8 = vweird.f32 %v4972_v16 }
 0x205   :  { %4973 = vrcp.f32 %v459_v28  ;;  %vm467_vm10 = vmor %vm465_vm9, %vm466_vm8  ;;  %v486_v43 = vand.u32 2147483648, %v459_v28  ;;  %v484_v45 = vand.u32 2147483647, %v459_v28  ;;  %vm480_vm13 = vweird.f32 %v459_v28 }
 0x206   :  { %v462_v30 = vsub.f32 1.0, %v461_v29  ;;  %4975 = vrcp.f32 %v5336_v52 }
 0x207   :  { %v487_v47 = vor.u32 1.1754944e-38, %v486_v43  ;;  %vm485_vm15 = vcmp.eq.f32.partialorder %v484_v45, 8.507059e+37 }
 0x208   :  { %v463_v32 = vmul.f32 %v4972_v16, %v462_v30 }
 0x20a   :  { %v464_v35 = vadd.f32 %v4972_v16, %v463_v32 }
 0x20b   :  { %v4974_v37 = vpop.eup %4973 }
 0x20c   :  { %v476_v39 = vmul.f32 %v4974_v37, %v459_v28  ;;  %v468_v40 = vsel %vm467_vm10, %v4972_v16, %v464_v35  ;;  %vm481_vm12 = vweird.f32 %v4974_v37  ;;  %v4976_v53 = vpop.eup %4975  ;;  %v4940_v28 = vld [vmem:[#allocation15 + $0x6] ss:$0 sm:$0xff] }
 0x20d   :  { %v473_v41 = vsel %vm470_vm11, %v472_v38, %v468_v40  ;;  %vm482_vm14 = vmor %vm480_vm13, %vm481_vm12  ;;  %v499_v54 = vmul.f32 128.0, %v4976_v53  ;;  %vm503_vm0 = vweird.f32 %v4976_v53 }
 0x20e   :  { %v477_v18 = vsub.f32 1.0, %v476_v39  ;;  %v490_v42 = vmul.f32 %v473_v41, %v448_v19 }
 0x20f   :  { %v500_v55 = vsub.f32 1.0, %v499_v54 }
 0x210   :  { %v478_v44 = vmul.f32 %v4974_v37, %v477_v18  ;;  %v492_v24 = vmul.f32 %v490_v42, %v490_v42 }
 0x211   :  { %v501_v56 = vmul.f32 %v4976_v53, %v500_v55 }
 0x212   :  { %v479_v46 = vadd.f32 %v4974_v37, %v478_v44  ;;  %494 = vadd.xlane.f32.xlu1 %v492_v24 }
 0x213   :  { %v502_v57 = vadd.f32 %v4976_v53, %v501_v56 }
 0x214   :  { %v483_v48 = vsel %vm482_vm14, %v4974_v37, %v479_v46 }
 0x215   :  { %v488_v49 = vsel %vm485_vm15, %v487_v47, %v483_v48  ;;  %v504_v9 = vsel %vm503_vm0, %v4976_v53, %v502_v57 }
 0x216   :  { %v491_v50 = vmul.f32 %v488_v49, %v450_v22 }
 0x218   :  { %v493_v51 = vmul.f32 %v491_v50, %v491_v50 }
 0x21a   :  { %496 = vadd.xlane.f32.xlu1 %v493_v51 }
 0x285   :  { %v495_v59 = vpop.xlane.xlu1 %494 }
 0x286   :  { %v505_v17 = vmul.f32 %v504_v9, %v495_v59 }
 0x288   :  { %v507_v33 = vadd.f32 1e-06, %v505_v17 }
 0x28a   :  { %4977 = vrsqrt.f32 %v507_v33  ;;  %vm515_vm2 = vweird.f32 %v507_v33 }
 0x28d   :  { %v497_v61 = vpop.xlane.xlu1 %496 }
 0x28e   :  { %v506_v62 = vmul.f32 %v504_v9, %v497_v61 }
 0x290   :  { %v4978_v63 = vpop.eup %4977  ;;  %v508_v0 = vadd.f32 1e-06, %v506_v62  ;;  %v5337_v62 = vmov 64.0  }
 0x291   :  { %v510_v2 = vmul.f32 %v4978_v63, %v507_v33  ;;  %vm516_vm1 = vweird.f32 %v4978_v63 }
 0x292   :  { %4979 = vrsqrt.f32 %v508_v0  ;;  %vm517_vm3 = vmor %vm515_vm2, %vm516_vm1  ;;  %vm525_vm5 = vweird.f32 %v508_v0 }
 0x293   :  { %v511_v3 = vmul.f32 %v4978_v63, %v510_v2 }
 0x295   :  { %v512_v5 = vmul.f32 0.5, %v511_v3 }
 0x297   :  { %v513_v6 = vsub.f32 1.5, %v512_v5 }
 0x298   :  { %v4980_v7 = vpop.eup %4979 }
 0x299   :  { %v520_v8 = vmul.f32 %v4980_v7, %v508_v0  ;;  %v514_v11 = vmul.f32 %v4978_v63, %v513_v6  ;;  %vm526_vm4 = vweird.f32 %v4980_v7 }
 0x29a   :  { %vm527_vm6 = vmor %vm525_vm5, %vm526_vm4 }
 0x29b   :  { %v521_v10 = vmul.f32 %v4980_v7, %v520_v8  ;;  %v518_v12 = vsel %vm517_vm3, %v4978_v63, %v514_v11  ;;  %v4633_v8 = vld [vmem:[#allocation11 + $0x8] sm:$0xff]  ;;  %v3750_v11 = vld [vmem:[#allocation12 + $0x168] sm:$0xf0] }
 0x29c   :  { %v529_v20 = vmul.f32 %v518_v12, %v490_v42  ;;  %716 = vmatpush.bf16.msrb.mxu0 %v4633_v8  ;;  %v4659_v8 = vld [vmem:[#allocation12 + $0xcc] sm:$0xf] }
 0x29d   :  { %v522_v13 = vmul.f32 0.5, %v521_v10  ;;  %v4676_v10 = vld [vmem:[#allocation12 + $0x154] sm:$0xf] }
 0x29e   :  { %v5527_v25 = vmul.f32 %v4939_v21, %v529_v20  ;;  %v3753_v12 = vor.u32 %v4676_v10, %v3750_v11  ;;  %v4670_v20 = vld [vmem:[#allocation12 + $0x124] sm:$0xf] }
 0x29f   :  { %v523_v14 = vsub.f32 1.5, %v522_v13  ;;  %v4632_v13 = vld [vmem:[#allocation11] sm:$0xff]  ;;  %v3686_v10 = vld [vmem:[#allocation12 + $0xe0] sm:$0xf0] }
 0x2a0   :  { %717 = vmatpush.bf16.msrb.mxu0 %v4632_v13  ;;  %v3689_v11 = vor.u32 %v4659_v8, %v3686_v10  ;;  %v4653_v13 = vld [vmem:[#allocation12 + $0x9c] sm:$0xf] }
 0x2a1   :  { %v524_v19 = vmul.f32 %v4980_v7, %v523_v14 }
 0x2a3   :  { %v528_v22 = vsel %vm527_vm6, %v4980_v7, %v524_v19 }
 0x2a4   :  { %v530_v23 = vmul.f32 %v528_v22, %v491_v50  ;;  %1452 = vmatpush.bf16.msra.mxu0 %v3753_v12 }
 0x2a6   :  { %v5529_v26 = vmul.f32 %v4939_v21, %v530_v23  ;;  %v3726_v21 = vld [vmem:[#allocation12 + $0x138] sm:$0xf0] }
 0x2a8   :  { %v537_v27 = vpack.c.bf16 %v5529_v26, %v5527_v25 }
 0x2aa   :  { %551 = vrot.lane.b32.xlu2 %v537_v27, %s5325_s2 }
 0x304   :  { %v552_v16 = vpop.permute.xlu2 %551 }
 0x305   :  { %3564 = vmatmul.msk.bf16.vlgmr.msrb.gmra.mxu3 %vm577_vm7, %v552_v16  ;;  %v3729_v16 = vor.u32 %v4670_v20, %v3726_v21  ;;  %v3638_v20 = vld [vmem:[#allocation12 + $0x80] sm:$0xf0] }
 0x307   :  { %1453 = vmatpush.bf16.msra.mxu0 %v3729_v16  ;;  %v4635_v16 = vld [vmem:[#allocation12 + $0xc] sm:$0xf] }
 0x388   :  { %v590_v29 = vpop.f32.mrf.mxu3 }
 0x389   :  { %v591_v30 = vadd.f32 %v4940_v28, %v590_v29  ;;  %v3702_v29 = vld [vmem:[#allocation12 + $0x108] sm:$0xf0] }
 0x38b   :  { %v3565_v31 = vmul.f32 -1.442695, %v591_v30 }
 0x38d   :  { %4981 = vpow2.f32 %v3565_v31 }
 0x390   :  { %v592_v32 = vpop.f32.mrf.mxu3 }
 0x391   :  { %v593_v34 = vadd.f32 %v4940_v28, %v592_v32  ;;  %v4664_v28 = vld [vmem:[#allocation12 + $0xf4] sm:$0xf] }
 0x392   :  { %v3705_v32 = vor.u32 %v4664_v28, %v3702_v29  ;;  %v3590_v28 = vld [vmem:[#allocation12 + $0x20] sm:$0xf0] }
 0x393   :  { %v4982_v35 = vpop.eup %4981  ;;  %v3566_v37 = vmul.f32 -1.442695, %v593_v34  ;;  %v4678_v29 = vld [vmem:[#allocation12 + $0x164] sm:$0xf] }
 0x394   :  { %v601_v38 = vadd.f32 1.0, %v4982_v35  ;;  %v3678_v35 = vld [vmem:[#allocation12 + $0xd8] sm:$0xf0]  ;;  %1454 = vmatpush.bf16.msra.mxu0 %v3705_v32 }
 0x395   :  { %4983 = vpow2.f32 %v3566_v37 }
 0x396   :  { %4985 = vrcp.f32 %v601_v38  ;;  %v614_v43 = vand.u32 2147483648, %v601_v38  ;;  %v612_v45 = vand.u32 2147483647, %v601_v38  ;;  %vm608_vm9 = vweird.f32 %v601_v38 }
 0x398   :  { %v615_v47 = vor.u32 1.1754944e-38, %v614_v43  ;;  %vm613_vm11 = vcmp.eq.f32.partialorder %v612_v45, 8.507059e+37 }
 0x39b   :  { %v4984_v39 = vpop.eup %4983 }
 0x39c   :  { %v4986_v40 = vpop.eup %4985  ;;  %v602_v41 = vadd.f32 1.0, %v4984_v39 }
 0x39d   :  { %v604_v18 = vmul.f32 %v4986_v40, %v601_v38  ;;  %vm609_vm8 = vweird.f32 %v4986_v40 }
 0x39e   :  { %4987 = vrcp.f32 %v602_v41  ;;  %vm610_vm10 = vmor %vm608_vm9, %vm609_vm8  ;;  %v629_v53 = vand.u32 2147483648, %v602_v41  ;;  %v627_v55 = vand.u32 2147483647, %v602_v41  ;;  %vm623_vm13 = vweird.f32 %v602_v41 }
 0x39f   :  { %v605_v42 = vsub.f32 1.0, %v604_v18  ;;  %4989 = vrcp.f32 %v5337_v62  ;;  %v3654_v18 = vld [vmem:[#allocation12 + $0xa8] sm:$0xf0]  ;;  %vm706_vm8 = vcmask 261120  }
 0x3a0   :  { %v630_v59 = vor.u32 1.1754944e-38, %v629_v53  ;;  %vm628_vm15 = vcmp.eq.f32.partialorder %v627_v55, 8.507059e+37  ;;  %v3606_v55 = vld [vmem:[#allocation12 + $0x48] sm:$0xf0] }
 0x3a1   :  { %v606_v44 = vmul.f32 %v4986_v40, %v605_v42 }
 0x3a3   :  { %v607_v24 = vadd.f32 %v4986_v40, %v606_v44 }
 0x3a4   :  { %v4988_v46 = vpop.eup %4987 }
 0x3a5   :  { %v611_v48 = vsel %vm610_vm10, %v4986_v40, %v607_v24  ;;  %v619_v49 = vmul.f32 %v4988_v46, %v602_v41  ;;  %vm624_vm12 = vweird.f32 %v4988_v46  ;;  %v4990_v63 = vpop.eup %4989  ;;  %v4652_v41 = vld [vmem:[#allocation12 + $0x94] sm:$0xf]  ;;  %v4646_v24 = vld [vmem:[#allocation12 + $0x64] sm:$0xf] }
 0x3a6   :  { %v616_v50 = vsel %vm613_vm11, %v615_v47, %v611_v48  ;;  %vm625_vm14 = vmor %vm623_vm13, %vm624_vm12  ;;  %v644_v0 = vmul.f32 64.0, %v4990_v63  ;;  %vm648_vm0 = vweird.f32 %v4990_v63  ;;  %v3657_v45 = vor.u32 %v4652_v41, %v3654_v18  ;;  %v4660_v41 = vld [vmem:[#allocation12 + $0xd4] sm:$0xf]  ;;  %v3694_v18 = vld [vmem:[#allocation12 + $0xe8] sm:$0xf0] }
 0x3a7   :  { %v5535_v51 = vmul.f32 %v616_v50, %v591_v30  ;;  %v620_v52 = vsub.f32 1.0, %v619_v49  ;;  %v4941_v50 = vld [vmem:[#allocation15 + $0x7] ss:$0 sm:$0xff] }
 0x3a8   :  { %v645_v1 = vsub.f32 1.0, %v644_v0 }
 0x3a9   :  { %v621_v54 = vmul.f32 %v4988_v46, %v620_v52  ;;  %v635_v56 = vmul.f32 %v5535_v51, %v5535_v51 }
 0x3aa   :  { %v646_v2 = vmul.f32 %v4990_v63, %v645_v1  ;;  %v4671_v1 = vld [vmem:[#allocation12 + $0x12c] sm:$0xf] }
 0x3ab   :  { %v622_v57 = vadd.f32 %v4988_v46, %v621_v54  ;;  %v637_v9 = vsel %vm577_vm7, %v635_v56, 0.0  ;;  %v4640_v54 = vld [vmem:[#allocation12 + $0x34] sm:$0xf] }
 0x3ac   :  { %638 = vadd.xlane.f32.xlu2 %v637_v9  ;;  %v647_v3 = vadd.f32 %v4990_v63, %v646_v2  ;;  %v3609_v9 = vor.u32 %v4640_v54, %v3606_v55  ;;  %v3734_v2 = vld [vmem:[#allocation12 + $0x140] sm:$0xf0]  ;;  %v4942_v55 = vld [vmem:[#allocation15 + $0x8] ss:$0 sm:$0xff] }
 0x3ad   :  { %v626_v17 = vsel %vm625_vm14, %v4988_v46, %v622_v57  ;;  %v3630_v46 = vld [vmem:[#allocation12 + $0x78] sm:$0xf0] }
 0x3ae   :  { %v631_v33 = vsel %vm628_vm15, %v630_v59, %v626_v17  ;;  %v649_v4 = vsel %vm648_vm0, %v4990_v63, %v647_v3  ;;  %v3633_v52 = vor.u32 %v4646_v24, %v3630_v46  ;;  %v3758_v63 = vld [vmem:[#allocation12 + $0x170] sm:$0xf0]  ;;  %v3646_v46 = vld [vmem:[#allocation12 + $0x88] sm:$0xf0] }
 0x3af   :  { %v5540_v60 = vmul.f32 %v631_v33, %v593_v34  ;;  %v4658_v34 = vld [vmem:[#allocation12 + $0xc4] sm:$0xf]  ;;  %v4648_v24 = vld [vmem:[#allocation12 + $0x74] sm:$0xf] }
 0x3b0   :  { %v3681_v40 = vor.u32 %v4658_v34, %v3678_v35  ;;  %v4634_v33 = vld [vmem:[#allocation12 + $0x4] sm:$0xf]  ;;  %v4672_v34 = vld [vmem:[#allocation12 + $0x134] sm:$0xf]  ;;  %v3742_v35 = vld [vmem:[#allocation12 + $0x148] sm:$0xf0] }
 0x3b1   :  { %v636_v36 = vmul.f32 %v5540_v60, %v5540_v60 }
 0x3b2   :  { %1455 = vmatpush.bf16.msra.mxu0 %v3681_v40 }
 0x3b3   :  { %v640_v61 = vsel %vm577_vm7, %v636_v36, 0.0  ;;  %v3582_v36 = vld [vmem:[#allocation12 + $0x18] sm:$0xf0] }
 0x3b4   :  { %641 = vadd.xlane.f32.xlu0 %v640_v61 }
 0x3b6   :  { %1456 = vmatpush.bf16.msra.mxu0 %v3657_v45 }
 0x3ba   :  { %1457 = vmatpush.bf16.msra.mxu0 %v3633_v52  ;;  %v4636_v52 = vld [vmem:[#allocation12 + $0x14] sm:$0xf] }
 0x3be   :  { %1458 = vmatpush.bf16.msra.mxu0 %v3609_v9 }
 0x41f   :  { %v639_v5 = vpop.xlane.xlu2 %638 }
 0x420   :  { %v650_v6 = vmul.f32 %v649_v4, %v639_v5  ;;  %v4665_v5 = vld [vmem:[#allocation12 + $0xfc] sm:$0xf] }
 0x422   :  { %v652_v7 = vadd.f32 1e-06, %v650_v6  ;;  %v3710_v6 = vld [vmem:[#allocation12 + $0x110] sm:$0xf0] }
 0x424   :  { %4991 = vrsqrt.f32 %v652_v7  ;;  %vm660_vm2 = vweird.f32 %v652_v7 }
 0x427   :  { %v642_v14 = vpop.xlane.xlu0 %641 }
 0x428   :  { %v651_v19 = vmul.f32 %v649_v4, %v642_v14  ;;  %v3737_v4 = vor.u32 %v4671_v1, %v3734_v2  ;;  %v3662_v14 = vld [vmem:[#allocation12 + $0xb0] sm:$0xf0] }
 0x429   :  { %v3665_v12 = vor.u32 %v4653_v13, %v3662_v14 }
 0x42a   :  { %v4992_v22 = vpop.eup %4991  ;;  %v653_v23 = vadd.f32 1e-06, %v651_v19  ;;  %v4647_v19 = vld [vmem:[#allocation12 + $0x6c] sm:$0xf] }
 0x42b   :  { %v655_v27 = vmul.f32 %v4992_v22, %v652_v7  ;;  %vm661_vm1 = vweird.f32 %v4992_v22  ;;  %v3713_v7 = vor.u32 %v4665_v5, %v3710_v6  ;;  %v3641_v21 = vor.u32 %v4647_v19, %v3638_v20 }
 0x42c   :  { %4993 = vrsqrt.f32 %v653_v23  ;;  %vm662_vm3 = vmor %vm660_vm2, %vm661_vm1  ;;  %vm670_vm5 = vweird.f32 %v653_v23 }
 0x42d   :  { %v656_v30 = vmul.f32 %v4992_v22, %v655_v27 }
 0x42f   :  { %v657_v31 = vmul.f32 0.5, %v656_v30  ;;  %v3766_v30 = vld [vmem:[#allocation12 + $0x178] sm:$0xf0] }
 0x430   :  { %v3769_v32 = vor.u32 %v4678_v29, %v3766_v30 }
 0x431   :  { %v658_v37 = vsub.f32 1.5, %v657_v31  ;;  %v3593_v31 = vor.u32 %v4635_v16, %v3590_v28 }
 0x432   :  { %v4994_v38 = vpop.eup %4993 }
 0x433   :  { %v665_v39 = vmul.f32 %v4994_v38, %v653_v23  ;;  %v659_v42 = vmul.f32 %v4992_v22, %v658_v37  ;;  %vm671_vm4 = vweird.f32 %v4994_v38  ;;  %v3614_v23 = vld [vmem:[#allocation12 + $0x50] sm:$0xf0]  ;;  %v3745_v37 = vor.u32 %v4672_v34, %v3742_v35 }
 0x434   :  { %vm672_vm6 = vmor %vm670_vm5, %vm671_vm4  ;;  %v5339_v34 = vmov 32.0  }
 0x435   :  { %v666_v43 = vmul.f32 %v4994_v38, %v665_v39  ;;  %v663_v47 = vsel %vm662_vm3, %v4992_v22, %v659_v42  ;;  %v4641_v22 = vld [vmem:[#allocation12 + $0x3c] sm:$0xf]  ;;  %v3697_v42 = vor.u32 %v4660_v41, %v3694_v18 }
 0x436   :  { %v674_v53 = vmul.f32 %v663_v47, %v5535_v51  ;;  %v3585_v51 = vor.u32 %v4634_v33, %v3582_v36  ;;  %v3617_v27 = vor.u32 %v4641_v22, %v3614_v23  ;;  %v3718_v39 = vld [vmem:[#allocation12 + $0x118] sm:$0xf0]  ;;  %v3649_v47 = vor.u32 %v4648_v24, %v3646_v46  ;;  %v4724_v24 = vld [vmem:[#allocation12 + $0x2d4] sm:$0xf] }
 0x437   :  { %v667_v44 = vmul.f32 0.5, %v666_v43  ;;  %v4654_v43 = vld [vmem:[#allocation12 + $0xa4] sm:$0xf] }
 0x438   :  { %v5547_v59 = vmul.f32 %v4941_v50, %v674_v53  ;;  %1459 = vmatpush.bf16.msra.mxu0 %v3585_v51  ;;  %v3598_v53 = vld [vmem:[#allocation12 + $0x28] sm:$0xf0] }
 0x439   :  { %v668_v48 = vsub.f32 1.5, %v667_v44  ;;  %v3670_v44 = vld [vmem:[#allocation12 + $0xb8] sm:$0xf0]  ;;  %v3601_v54 = vor.u32 %v4636_v52, %v3598_v53 }
 0x43a   :  { %v3673_v45 = vor.u32 %v4654_v43, %v3670_v44  ;;  %v3940_v44 = vld [vmem:[#allocation12 + $0x2d0] sm:$0xf] }
 0x43b   :  { %v669_v49 = vmul.f32 %v4994_v38, %v668_v48  ;;  %v4642_v48 = vld [vmem:[#allocation12 + $0x44] sm:$0xf] }
 0x43d   :  { %v673_v56 = vsel %vm672_vm6, %v4994_v38, %v669_v49  ;;  %v4666_v38 = vld [vmem:[#allocation12 + $0x104] sm:$0xf]  ;;  %v3622_v49 = vld [vmem:[#allocation12 + $0x58] sm:$0xf0] }
 0x43e   :  { %v675_v57 = vmul.f32 %v673_v56, %v5540_v60  ;;  %v4677_v60 = vld [vmem:[#allocation12 + $0x15c] sm:$0xf]  ;;  %v3721_v40 = vor.u32 %v4666_v38, %v3718_v39 }
 0x43f   :  { %v3761_v0 = vor.u32 %v4677_v60, %v3758_v63 }
 0x440   :  { %v5549_v17 = vmul.f32 %v4941_v50, %v675_v57  ;;  %v3625_v50 = vor.u32 %v4642_v48, %v3622_v49  ;;  %v4718_v48 = vld [vmem:[#allocation12 + $0x2a4] sm:$0xf]  ;;  %v3918_v49 = vld [vmem:[#allocation12 + $0x2b8] sm:$0xf0] }
 0x442   :  { %v682_v61 = vpack.c.bf16 %v5549_v17, %v5547_v59  ;;  %v4928_v62 = vpack.i.bf16 %v5549_v17, %v5547_v59  ;;  %v3916_v59 = vld [vmem:[#allocation12 + $0x2a0] sm:$0xf]  ;;  %v4721_v17 = vld [vmem:[#allocation12 + $0x2b4] sm:$0xf0] }
 0x443   :  { %v3917_v52 = vor.u32 %v4721_v17, %v3916_v59  ;;  %v4682_v59 = vld [vmem:[#allocation12 + $0x184] sm:$0xf]  ;;  %v3774_v17 = vld [vmem:[#allocation12 + $0x198] sm:$0xf0] }
 0x444   :  { %692 = vrot.lane.b32.xlu1 %v682_v61, %s5338_s10 }
 0x4b6   :  { %v693_v3 = vpop.permute.xlu1 %692 }
 0x4b7   :  { %3575 = vmatmul.msk.bf16.vlgmr.msrb.gmra.mxu0 %vm706_vm8, %v693_v3 }
 0x4b8   :  { %1508 = vmatpush.bf16.msrb.mxu0 %v3761_v0 }
 0x4bc   :  { %1509 = vmatpush.bf16.msrb.mxu0 %v3737_v4 }
 0x4c0   :  { %1510 = vmatpush.bf16.msrb.mxu0 %v3713_v7 }
 0x4c4   :  { %1511 = vmatpush.bf16.msrb.mxu0 %v3689_v11 }
 0x4c7   :  { %1460 = vmatmul.bf16.vlgmr.msra.gmra.mxu0 %v5522_v58 }
 0x4c8   :  { %1512 = vmatpush.bf16.msrb.mxu0 %v3665_v12 }
 0x4cc   :  { %1513 = vmatpush.bf16.msrb.mxu0 %v3641_v21 }
 0x4d0   :  { %1514 = vmatpush.bf16.msrb.mxu0 %v3617_v27 }
 0x4d4   :  { %1515 = vmatpush.bf16.msrb.mxu0 %v3593_v31 }
 0x4d7   :  { %1516 = vmatmul.bf16.vlgmr.msrb.gmra.mxu0 %v5522_v58 }
 0x4d8   :  { %1564 = vmatpush.bf16.msra.mxu0 %v3769_v32 }
 0x4dc   :  { %1565 = vmatpush.bf16.msra.mxu0 %v3745_v37 }
 0x4e0   :  { %1566 = vmatpush.bf16.msra.mxu0 %v3721_v40 }
 0x4e4   :  { %1567 = vmatpush.bf16.msra.mxu0 %v3697_v42 }
 0x4e8   :  { %1568 = vmatpush.bf16.msra.mxu0 %v3673_v45  ;;  %v4727_v45 = vld [vmem:[#allocation12 + $0x2e4] sm:$0xf0] }
 0x4e9   :  { %v3941_v46 = vor.u32 %v4727_v45, %v3940_v44 }
 0x4eb   :  { %1438 = vmatpush.bf16.msra.mxu3 %v3941_v46  ;;  %v4685_v46 = vld [vmem:[#allocation12 + $0x194] sm:$0xf0] }
 0x4ec   :  { %1569 = vmatpush.bf16.msra.mxu0 %v3649_v47  ;;  %v3942_v47 = vld [vmem:[#allocation12 + $0x2e8] sm:$0xf0] }
 0x4ef   :  { %1439 = vmatpush.bf16.msra.mxu3 %v3917_v52  ;;  %v3950_v52 = vld [vmem:[#allocation12 + $0x2f0] sm:$0xf0] }
 0x4f0   :  { %1570 = vmatpush.bf16.msra.mxu0 %v3625_v50 }
 0x4f4   :  { %1571 = vmatpush.bf16.msra.mxu0 %v3601_v54  ;;  %v3921_v54 = vor.u32 %v4718_v48, %v3918_v49  ;;  %v4728_v49 = vld [vmem:[#allocation12 + $0x2ec] sm:$0xf0] }
 0x4f7   :  { %1572 = vmatmul.bf16.vlgmr.msra.gmra.mxu0 %v5522_v58 }
 0x534   :  { %v719_v56 = vpop.f32.mrf.mxu0 }
 0x535   :  { %v720_v57 = vadd.f32 %v4942_v55, %v719_v56  ;;  %v4715_v56 = vld [vmem:[#allocation12 + $0x284] sm:$0xf0] }
 0x537   :  { %v3576_v9 = vmul.f32 -1.442695, %v720_v57 }
 0x539   :  { %4995 = vpow2.f32 %v3576_v9  ;;  %v3894_v9 = vld [vmem:[#allocation12 + $0x288] sm:$0xf0] }
 0x53c   :  { %v721_v33 = vpop.f32.mrf.mxu0 }
 0x53d   :  { %v722_v36 = vadd.f32 %v4942_v55, %v721_v33  ;;  %v3892_v55 = vld [vmem:[#allocation12 + $0x270] sm:$0xf] }
 0x53f   :  { %v4996_v61 = vpop.eup %4995  ;;  %v3577_v51 = vmul.f32 -1.442695, %v722_v36 }
 0x540   :  { %v730_v60 = vadd.f32 1.0, %v4996_v61 }
 0x541   :  { %4997 = vpow2.f32 %v3577_v51  ;;  %v3893_v51 = vor.u32 %v4715_v56, %v3892_v55  ;;  %v3777_v56 = vor.u32 %v4682_v59, %v3774_v17  ;;  %v3956_v59 = vld [vmem:[#allocation12 + $0x2e0] sm:$0xf]  ;;  %v4729_v17 = vld [vmem:[#allocation12 + $0x2f4] sm:$0xf0] }
 0x542   :  { %4999 = vrcp.f32 %v730_v60  ;;  %v743_v4 = vand.u32 2147483648, %v730_v60  ;;  %v741_v5 = vand.u32 2147483647, %v730_v60  ;;  %vm737_vm10 = vweird.f32 %v730_v60 }
 0x543   :  { %1440 = vmatpush.bf16.msra.mxu3 %v3893_v51  ;;  %v3926_v51 = vld [vmem:[#allocation12 + $0x2c0] sm:$0xf0] }
 0x544   :  { %v744_v8 = vor.u32 1.1754944e-38, %v743_v4  ;;  %vm742_vm12 = vcmp.eq.f32.partialorder %v741_v5, 8.507059e+37 }
 0x547   :  { %v4998_v63 = vpop.eup %4997 }
 0x548   :  { %v5000_v0 = vpop.eup %4999  ;;  %v731_v1 = vadd.f32 1.0, %v4998_v63  ;;  %v3868_v63 = vld [vmem:[#allocation12 + $0x240] sm:$0xf] }
 0x549   :  { %v733_v2 = vmul.f32 %v5000_v0, %v730_v60  ;;  %vm738_vm9 = vweird.f32 %v5000_v0 }
 0x54a   :  { %5001 = vrcp.f32 %v731_v1  ;;  %vm739_vm11 = vmor %vm737_vm10, %vm738_vm9  ;;  %v758_v19 = vand.u32 2147483648, %v731_v1  ;;  %v756_v21 = vand.u32 2147483647, %v731_v1  ;;  %vm752_vm14 = vweird.f32 %v731_v1 }
 0x54b   :  { %v734_v3 = vsub.f32 1.0, %v733_v2  ;;  %5003 = vrcp.f32 %v5339_v34  ;;  %v4706_v2 = vld [vmem:[#allocation12 + $0x244] sm:$0xf]  ;;  %vm829_vm9 = vcmask 785408  }
 0x54c   :  { %v759_v16 = vor.u32 1.1754944e-38, %v758_v19  ;;  %vm757_vm0 = vcmp.eq.f32.partialorder %v756_v21, 8.507059e+37  ;;  %v3820_v21 = vld [vmem:[#allocation12 + $0x1e0] sm:$0xf] }
 0x54d   :  { %v735_v58 = vmul.f32 %v5000_v0, %v734_v3  ;;  %v3870_v3 = vld [vmem:[#allocation12 + $0x258] sm:$0xf0] }
 0x54e   :  { %v3873_v5 = vor.u32 %v4706_v2, %v3870_v3  ;;  %v3902_v2 = vld [vmem:[#allocation12 + $0x290] sm:$0xf0] }
 0x54f   :  { %v736_v6 = vadd.f32 %v5000_v0, %v735_v58 }
 0x550   :  { %v5002_v7 = vpop.eup %5001 }
 0x551   :  { %v740_v10 = vsel %vm739_vm11, %v5000_v0, %v736_v6  ;;  %v748_v11 = vmul.f32 %v5002_v7, %v731_v1  ;;  %vm753_vm13 = vweird.f32 %v5002_v7  ;;  %v5004_v35 = vpop.eup %5003  ;;  %v4709_v0 = vld [vmem:[#allocation12 + $0x254] sm:$0xf0]  ;;  %v3844_v6 = vld [vmem:[#allocation12 + $0x210] sm:$0xf] }
 0x552   :  { %v745_v13 = vsel %vm742_vm12, %v744_v8, %v740_v10  ;;  %vm754_vm15 = vmor %vm752_vm14, %vm753_vm13  ;;  %v773_v37 = vmul.f32 32.0, %v5004_v35  ;;  %vm777_vm1 = vweird.f32 %v5004_v35  ;;  %v3869_v58 = vor.u32 %v4709_v0, %v3868_v63  ;;  %v4700_v10 = vld [vmem:[#allocation12 + $0x214] sm:$0xf]  ;;  %v3900_v63 = vld [vmem:[#allocation12 + $0x278] sm:$0xf] }
 0x553   :  { %v5560_v14 = vmul.f32 %v745_v13, %v720_v57  ;;  %v749_v12 = vsub.f32 1.0, %v748_v11  ;;  %v4712_v57 = vld [vmem:[#allocation12 + $0x274] sm:$0xf]  ;;  %v3846_v11 = vld [vmem:[#allocation12 + $0x228] sm:$0xf0] }
 0x554   :  { %v774_v38 = vsub.f32 1.0, %v773_v37  ;;  %v3897_v60 = vor.u32 %v4712_v57, %v3894_v9  ;;  %1441 = vmatpush.bf16.msra.mxu3 %v3869_v58  ;;  %v4691_v37 = vld [vmem:[#allocation12 + $0x1c4] sm:$0xf0]  ;;  %v4716_v0 = vld [vmem:[#allocation12 + $0x28c] sm:$0xf0] }
 0x555   :  { %v750_v20 = vmul.f32 %v5002_v7, %v749_v12  ;;  %v764_v22 = vmul.f32 %v5560_v14, %v5560_v14  ;;  %v3924_v9 = vld [vmem:[#allocation12 + $0x2a8] sm:$0xf]  ;;  %v3901_v3 = vor.u32 %v4716_v0, %v3900_v63 }
 0x556   :  { %v775_v39 = vmul.f32 %v5004_v35, %v774_v38  ;;  %v3876_v58 = vld [vmem:[#allocation12 + $0x248] sm:$0xf] }
 0x557   :  { %v751_v23 = vadd.f32 %v5002_v7, %v750_v20  ;;  %v766_v27 = vsel %vm706_vm8, %v764_v22, 0.0  ;;  %v3849_v20 = vor.u32 %v4700_v10, %v3846_v11  ;;  %v4697_v22 = vld [vmem:[#allocation12 + $0x1f4] sm:$0xf0]  ;;  %v4723_v0 = vld [vmem:[#allocation12 + $0x2c4] sm:$0xf0] }
 0x558   :  { %767 = vadd.xlane.f32.xlu0 %v766_v27  ;;  %v776_v40 = vadd.f32 %v5004_v35, %v775_v39  ;;  %v3852_v11 = vld [vmem:[#allocation12 + $0x218] sm:$0xf] }
 0x559   :  { %v755_v28 = vsel %vm754_vm15, %v5002_v7, %v751_v23  ;;  %v4703_v7 = vld [vmem:[#allocation12 + $0x224] sm:$0xf0] }
 0x55a   :  { %v760_v29 = vsel %vm757_vm0, %v759_v16, %v755_v28  ;;  %v778_v41 = vsel %vm777_vm1, %v5004_v35, %v776_v40  ;;  %v3845_v19 = vor.u32 %v4703_v7, %v3844_v6  ;;  %v4694_v16 = vld [vmem:[#allocation12 + $0x1e4] sm:$0xf]  ;;  %v3822_v28 = vld [vmem:[#allocation12 + $0x1f8] sm:$0xf0]  ;;  %v3796_v35 = vld [vmem:[#allocation12 + $0x1b0] sm:$0xf] }
 0x55b   :  { %v5565_v30 = vmul.f32 %v760_v29, %v722_v36  ;;  %v3825_v34 = vor.u32 %v4694_v16, %v3822_v28  ;;  %v4688_v40 = vld [vmem:[#allocation12 + $0x1b4] sm:$0xf]  ;;  %v4707_v6 = vld [vmem:[#allocation12 + $0x24c] sm:$0xf]  ;;  %v3878_v7 = vld [vmem:[#allocation12 + $0x260] sm:$0xf0] }
 0x55c   :  { %1442 = vmatpush.bf16.msra.mxu3 %v3845_v19  ;;  %v3881_v10 = vor.u32 %v4707_v6, %v3878_v7  ;;  %v3854_v19 = vld [vmem:[#allocation12 + $0x230] sm:$0xf0]  ;;  %v3830_v16 = vld [vmem:[#allocation12 + $0x200] sm:$0xf0]  ;;  %v4717_v6 = vld [vmem:[#allocation12 + $0x294] sm:$0xf0] }
 0x55d   :  { %v765_v31 = vmul.f32 %v5565_v30, %v5565_v30 }
 0x55f   :  { %v769_v32 = vsel %vm706_vm8, %v765_v31, 0.0  ;;  %v3821_v31 = vor.u32 %v4697_v22, %v3820_v21  ;;  %v3828_v22 = vld [vmem:[#allocation12 + $0x1e8] sm:$0xf] }
 0x560   :  { %770 = vadd.xlane.f32.xlu0 %v769_v32  ;;  %v4692_v32 = vld [vmem:[#allocation12 + $0x1cc] sm:$0xf0] }
 0x561   :  { %1443 = vmatpush.bf16.msra.mxu3 %v3821_v31  ;;  %v3804_v31 = vld [vmem:[#allocation12 + $0x1b8] sm:$0xf] }
 0x574   :  { %4929 = vrot.lane.b32.xlu0 %v4928_v62, %s5325_s2  ;;  %v3945_v62 = vor.u32 %v4724_v24, %v3942_v47  ;;  %v3772_v24 = vld [vmem:[#allocation12 + $0x180] sm:$0xf] }
 0x576   :  { %1466 = vmatpush.bf16.msrb.mxu2 %v3945_v62  ;;  %v3948_v62 = vld [vmem:[#allocation12 + $0x2d8] sm:$0xf] }
 0x57a   :  { %1467 = vmatpush.bf16.msrb.mxu2 %v3921_v54 }
 0x57e   :  { %1468 = vmatpush.bf16.msrb.mxu2 %v3897_v60 }
 0x582   :  { %1469 = vmatpush.bf16.msrb.mxu2 %v3873_v5  ;;  %v4710_v5 = vld [vmem:[#allocation12 + $0x25c] sm:$0xf0] }
 0x586   :  { %1470 = vmatpush.bf16.msrb.mxu2 %v3849_v20 }
 0x58a   :  { %1471 = vmatpush.bf16.msrb.mxu2 %v3825_v34  ;;  %v4689_v34 = vld [vmem:[#allocation12 + $0x1bc] sm:$0xf] }
 0x5cb   :  { %v768_v18 = vpop.xlane.xlu0 %767 }
 0x5cc   :  { %v779_v42 = vmul.f32 %v778_v41, %v768_v18 }
 0x5ce   :  { %v781_v43 = vadd.f32 1e-06, %v779_v42  ;;  %v4943_v42 = vld [vmem:[#allocation15 + $0x9] ss:$0 sm:$0xff] }
 0x5d0   :  { %5005 = vrsqrt.f32 %v781_v43  ;;  %vm789_vm3 = vweird.f32 %v781_v43 }
 0x5d3   :  { %v771_v50 = vpop.xlane.xlu0 %770 }
 0x5d4   :  { %v780_v53 = vmul.f32 %v778_v41, %v771_v50  ;;  %v3798_v41 = vld [vmem:[#allocation12 + $0x1c8] sm:$0xf0]  ;;  %v4725_v50 = vld [vmem:[#allocation12 + $0x2dc] sm:$0xf] }
 0x5d5   :  { %v3801_v45 = vor.u32 %v4688_v40, %v3798_v41  ;;  %v3953_v57 = vor.u32 %v4725_v50, %v3950_v52  ;;  %v4686_v40 = vld [vmem:[#allocation12 + $0x19c] sm:$0xf0]  ;;  %v4683_v41 = vld [vmem:[#allocation12 + $0x18c] sm:$0xf]  ;;  %v3958_v50 = vld [vmem:[#allocation12 + $0x2f8] sm:$0xf0] }
 0x5d6   :  { %v5006_v33 = vpop.eup %5005  ;;  %v782_v36 = vadd.f32 1e-06, %v780_v53  ;;  %v3773_v53 = vor.u32 %v4685_v46, %v3772_v24  ;;  %v4772_v46 = vld [vmem:[#allocation14 + $0x154] sm:$0xf] }
 0x5d7   :  { %v784_v61 = vmul.f32 %v5006_v33, %v781_v43  ;;  %vm790_vm2 = vweird.f32 %v5006_v33  ;;  %v3797_v43 = vor.u32 %v4691_v37, %v3796_v35  ;;  %1472 = vmatpush.bf16.msrb.mxu2 %v3801_v45  ;;  %v3805_v35 = vor.u32 %v4692_v32, %v3804_v31  ;;  %v3806_v37 = vld [vmem:[#allocation12 + $0x1d0] sm:$0xf0]  ;;  %v3886_v32 = vld [vmem:[#allocation12 + $0x268] sm:$0xf0] }
 0x5d8   :  { %5007 = vrsqrt.f32 %v782_v36  ;;  %vm5574_vm4 = vmor %vm789_vm3, %vm790_vm2  ;;  %vm799_vm6 = vweird.f32 %v782_v36  ;;  %v4708_v31 = vld [vmem:[#allocation12 + $0x254] sm:$0xf] }
 0x5d9   :  { %v785_v1 = vmul.f32 %v5006_v33, %v784_v61  ;;  %1444 = vmatpush.bf16.msra.mxu3 %v3797_v43  ;;  %v4719_v61 = vld [vmem:[#allocation12 + $0x2ac] sm:$0xf] }
 0x5da   :  { %v3929_v60 = vor.u32 %v4719_v61, %v3926_v51  ;;  %v3932_v61 = vld [vmem:[#allocation12 + $0x2b0] sm:$0xf] }
 0x5db   :  { %v786_v4 = vmul.f32 0.5, %v785_v1  ;;  %1473 = vmatpush.bf16.msrb.mxu2 %v3777_v56  ;;  %v4713_v1 = vld [vmem:[#allocation12 + $0x27c] sm:$0xf]  ;;  %v3957_v56 = vor.u32 %v4729_v17, %v3956_v59  ;;  %v4742_v17 = vld [vmem:[#allocation14 + $0x64] sm:$0xf] }
 0x5dd   :  { %v787_v8 = vsub.f32 1.5, %v786_v4  ;;  %1445 = vmatpush.bf16.msra.mxu3 %v3773_v53  ;;  %v3905_v4 = vor.u32 %v4713_v1, %v3902_v2  ;;  %v4720_v1 = vld [vmem:[#allocation12 + $0x2b4] sm:$0xf]  ;;  %v3934_v2 = vld [vmem:[#allocation12 + $0x2c8] sm:$0xf0] }
 0x5de   :  { %v5008_v13 = vpop.eup %5007 }
 0x5df   :  { %v794_v12 = vmul.f32 %v5008_v13, %v782_v36  ;;  %v788_v23 = vmul.f32 %v5006_v33, %v787_v8  ;;  %vm800_vm5 = vweird.f32 %v5008_v13  ;;  %v4722_v36 = vld [vmem:[#allocation12 + $0x2bc] sm:$0xf0]  ;;  %1522 = vmatpush.bf16.msra.mxu2 %v3953_v57  ;;  %v3877_v8 = vor.u32 %v4710_v5, %v3876_v58  ;;  %v4775_v57 = vld [vmem:[#allocation14 + $0x164] sm:$0xf0] }
 0x5e0   :  { %vm801_vm8 = vmor %vm799_vm6, %vm800_vm5  ;;  %v3933_v58 = vor.u32 %v4723_v0, %v3932_v61  ;;  %v3937_v5 = vor.u32 %v4720_v1, %v3934_v2  ;;  %v3814_v0 = vld [vmem:[#allocation12 + $0x1d8] sm:$0xf0]  ;;  %v3988_v2 = vld [vmem:[#allocation14 + $0x30] sm:$0xf] }
 0x5e1   :  { %v795_v27 = vmul.f32 %v5008_v13, %v794_v12  ;;  %v792_v38 = vsel %vm5574_vm4, %v5006_v33, %v788_v23  ;;  %v4701_v12 = vld [vmem:[#allocation12 + $0x21c] sm:$0xf]  ;;  %v4698_v23 = vld [vmem:[#allocation12 + $0x1fc] sm:$0xf0] }
 0x5e2   :  { %v803_v44 = vmul.f32 %v792_v38, %v5560_v14  ;;  %v3949_v14 = vor.u32 %v4728_v49, %v3948_v62  ;;  %v3857_v21 = vor.u32 %v4701_v12, %v3854_v19  ;;  %v3829_v28 = vor.u32 %v4698_v23, %v3828_v22  ;;  %v4726_v49 = vld [vmem:[#allocation12 + $0x2e4] sm:$0xf]  ;;  %v4084_v19 = vld [vmem:[#allocation14 + $0xf0] sm:$0xf]  ;;  %v4062_v23 = vld [vmem:[#allocation14 + $0xd8] sm:$0xf0] }
 0x5e3   :  { %v796_v29 = vmul.f32 0.5, %v795_v27  ;;  %1523 = vmatpush.bf16.msra.mxu2 %v3929_v60  ;;  %v4695_v27 = vld [vmem:[#allocation12 + $0x1ec] sm:$0xf]  ;;  %v3809_v38 = vor.u32 %v4689_v34, %v3806_v37  ;;  %v4110_v60 = vld [vmem:[#allocation14 + $0x138] sm:$0xf0] }
 0x5e4   :  { %v809_v54 = vmul.f32 %v4943_v42, %v803_v44  ;;  %1494 = vmatpush.bf16.msrb.mxu3 %v3949_v14  ;;  %v4132_v14 = vld [vmem:[#allocation14 + $0x150] sm:$0xf]  ;;  %v4754_v22 = vld [vmem:[#allocation14 + $0xc4] sm:$0xf]  ;;  %v4757_v37 = vld [vmem:[#allocation14 + $0xd4] sm:$0xf0] }
 0x5e5   :  { %v797_v39 = vsub.f32 1.5, %v796_v29  ;;  %v3833_v29 = vor.u32 %v4695_v27, %v3830_v16  ;;  %v4133_v51 = vor.u32 %v4775_v57, %v4132_v14  ;;  %v4065_v34 = vor.u32 %v4754_v22, %v4062_v23  ;;  %v4745_v14 = vld [vmem:[#allocation14 + $0x74] sm:$0xf0]  ;;  %v4823_v22 = vld [vmem:[#allocation14 + $0x2e4] sm:$0xf0] }
 0x5e6   :  { %v4930_v44 = vpop.permute.xlu0 %4929  ;;  %v4820_v23 = vld [vmem:[#allocation14 + $0x2d4] sm:$0xf] }
 0x5e7   :  { %v798_v18 = vmul.f32 %v5008_v13, %v797_v39  ;;  %1524 = vmatpush.bf16.msra.mxu2 %v3905_v4  ;;  %v3780_v39 = vld [vmem:[#allocation12 + $0x188] sm:$0xf]  ;;  %v4932_v45 = vunpack.i.h.bf16 %v4930_v44  ;;  %v4931_v24 = vunpack.i.l.bf16 %v4930_v44  ;;  %2184 = vmatpush.bf16.msrb.mxu1 %v4133_v51  ;;  %v4769_v4 = vld [vmem:[#allocation14 + $0x134] sm:$0xf0]  ;;  %v4702_v44 = vld [vmem:[#allocation12 + $0x224] sm:$0xf] }
 0x5e8   :  { %v3812_v51 = vld [vmem:[#allocation12 + $0x1c0] sm:$0xf] }
 0x5e9   :  { %v802_v47 = vsel %vm801_vm8, %v5008_v13, %v798_v18  ;;  %v4704_v13 = vld [vmem:[#allocation12 + $0x22c] sm:$0xf0]  ;;  %v3781_v18 = vor.u32 %v4686_v40, %v3780_v39  ;;  %v4748_v39 = vld [vmem:[#allocation14 + $0x94] sm:$0xf]  ;;  %v4038_v40 = vld [vmem:[#allocation14 + $0xa8] sm:$0xf0] }
 0x5ea   :  { %v804_v48 = vmul.f32 %v802_v47, %v5565_v30  ;;  %v3925_v30 = vor.u32 %v4722_v36, %v3924_v9  ;;  %v3853_v20 = vor.u32 %v4704_v13, %v3852_v11  ;;  %v4134_v47 = vld [vmem:[#allocation14 + $0x168] sm:$0xf0]  ;;  %v3961_v36 = vor.u32 %v4726_v49, %v3958_v50  ;;  %v4714_v11 = vld [vmem:[#allocation12 + $0x284] sm:$0xf]  ;;  %v3910_v13 = vld [vmem:[#allocation12 + $0x298] sm:$0xf0] }
 0x5eb   :  { %1525 = vmatpush.bf16.msra.mxu2 %v3881_v10  ;;  %v4137_v62 = vor.u32 %v4772_v46, %v4134_v47  ;;  %v4086_v10 = vld [vmem:[#allocation14 + $0x108] sm:$0xf0]  ;;  %v3913_v16 = vor.u32 %v4714_v11, %v3910_v13  ;;  %v4036_v46 = vld [vmem:[#allocation14 + $0x90] sm:$0xf]  ;;  %v4751_v47 = vld [vmem:[#allocation14 + $0xa4] sm:$0xf0] }
 0x5ec   :  { %v810_v55 = vmul.f32 %v4943_v42, %v804_v48  ;;  %1495 = vmatpush.bf16.msrb.mxu3 %v3925_v30  ;;  %v3782_v42 = vld [vmem:[#allocation12 + $0x1a0] sm:$0xf0]  ;;  %v4037_v59 = vor.u32 %v4751_v47, %v4036_v46  ;;  %v3836_v50 = vld [vmem:[#allocation12 + $0x1f0] sm:$0xf]  ;;  %v4773_v11 = vld [vmem:[#allocation14 + $0x15c] sm:$0xf] }
 0x5ed   :  { %v3785_v43 = vor.u32 %v4683_v41, %v3782_v42  ;;  %2212 = vmatpush.bf16.msrb.mxu0 %v4137_v62  ;;  %v4766_v30 = vld [vmem:[#allocation14 + $0x124] sm:$0xf]  ;;  %v3860_v42 = vld [vmem:[#allocation12 + $0x220] sm:$0xf]  ;;  %v4014_v62 = vld [vmem:[#allocation14 + $0x78] sm:$0xf0] }
 0x5ee   :  { %v4933_v33 = vpack.i.bf16 %v810_v55, %v809_v54  ;;  %v828_v54 = vsel %vm577_vm7, %v5529_v26, %v4932_v45  ;;  %v827_v55 = vsel %vm577_vm7, %v5527_v25, %v4931_v24  ;;  %v3908_v25 = vld [vmem:[#allocation12 + $0x280] sm:$0xf]  ;;  %v3862_v45 = vld [vmem:[#allocation12 + $0x238] sm:$0xf0]  ;;  %v4041_v24 = vor.u32 %v4748_v39, %v4038_v40  ;;  %v4142_v13 = vld [vmem:[#allocation14 + $0x170] sm:$0xf0] }
 0x5ef   :  { %1526 = vmatpush.bf16.msra.mxu2 %v3857_v21  ;;  %v4108_v26 = vld [vmem:[#allocation14 + $0x120] sm:$0xf]  ;;  %v3909_v27 = vor.u32 %v4717_v6, %v3908_v25  ;;  %v3865_v49 = vor.u32 %v4702_v44, %v3862_v45  ;;  %v3966_v6 = vld [vmem:[#allocation14 + $0x18] sm:$0xf0]  ;;  %v4767_v40 = vld [vmem:[#allocation14 + $0x12c] sm:$0xf] }
 0x5f0   :  { %4934 = vrot.lane.b32.xlu1 %v4933_v33, %s5338_s10  ;;  %1496 = vmatpush.bf16.msrb.mxu3 %v3901_v3  ;;  %v4113_v3 = vor.u32 %v4766_v30, %v4110_v60  ;;  %v4109_v7 = vor.u32 %v4769_v4, %v4108_v26  ;;  %v4693_v30 = vld [vmem:[#allocation12 + $0x1d4] sm:$0xf0]  ;;  %v4690_v60 = vld [vmem:[#allocation12 + $0x1c4] sm:$0xf]  ;;  %v3788_v26 = vld [vmem:[#allocation12 + $0x190] sm:$0xf] }
 0x5f1   :  { %v4687_v4 = vld [vmem:[#allocation12 + $0x1a4] sm:$0xf0]  ;;  %v4276_v45 = vld [vmem:[#allocation14 + $0x270] sm:$0xf]  ;;  %v4770_v46 = vld [vmem:[#allocation14 + $0x13c] sm:$0xf0] }
 0x5f2   :  { %2213 = vmatpush.bf16.msrb.mxu0 %v4113_v3  ;;  %2185 = vmatpush.bf16.msrb.mxu1 %v4109_v7  ;;  %v4739_v3 = vld [vmem:[#allocation14 + $0x44] sm:$0xf0]  ;;  %v3813_v7 = vor.u32 %v4693_v30, %v3812_v51  ;;  %v4805_v30 = vld [vmem:[#allocation14 + $0x254] sm:$0xf0] }
 0x5f3   :  { %1527 = vmatpush.bf16.msra.mxu2 %v3833_v29  ;;  %v4711_v29 = vld [vmem:[#allocation12 + $0x264] sm:$0xf0]  ;;  %v3989_v25 = vor.u32 %v4739_v3, %v3988_v2  ;;  %v4758_v3 = vld [vmem:[#allocation14 + $0xdc] sm:$0xf0] }
 0x5f4   :  { %1497 = vmatpush.bf16.msrb.mxu3 %v3877_v8  ;;  %v4760_v8 = vld [vmem:[#allocation14 + $0xf4] sm:$0xf]  ;;  %v4068_v2 = vld [vmem:[#allocation14 + $0xc8] sm:$0xf] }
 0x5f5   :  { %v4089_v12 = vor.u32 %v4760_v8, %v4086_v10  ;;  %v3817_v8 = vor.u32 %v4690_v60, %v3814_v0  ;;  %v3790_v10 = vld [vmem:[#allocation12 + $0x1a8] sm:$0xf0]  ;;  %v4802_v60 = vld [vmem:[#allocation14 + $0x244] sm:$0xf] }
 0x5f6   :  { %v4070_v0 = vld [vmem:[#allocation14 + $0xe0] sm:$0xf0] }
 0x5f7   :  { %1528 = vmatpush.bf16.msra.mxu2 %v3809_v38  ;;  %2214 = vmatpush.bf16.msrb.mxu0 %v4089_v12  ;;  %v4324_v12 = vld [vmem:[#allocation14 + $0x2d0] sm:$0xf] }
 0x5f8   :  { %1498 = vmatpush.bf16.msrb.mxu3 %v3853_v20  ;;  %v4763_v20 = vld [vmem:[#allocation14 + $0x104] sm:$0xf0] }
 0x5f9   :  { %v4085_v21 = vor.u32 %v4763_v20, %v4084_v19  ;;  %v3964_v20 = vld [vmem:[#allocation14] sm:$0xf] }
 0x5fb   :  { %1529 = vmatpush.bf16.msra.mxu2 %v3785_v43  ;;  %2186 = vmatpush.bf16.msrb.mxu1 %v4085_v21  ;;  %v4705_v43 = vld [vmem:[#allocation12 + $0x234] sm:$0xf0] }
 0x5fc   :  { %1499 = vmatpush.bf16.msrb.mxu3 %v3829_v28  ;;  %v3884_v28 = vld [vmem:[#allocation12 + $0x250] sm:$0xf]  ;;  %2215 = vmatpush.bf16.msrb.mxu0 %v4065_v34  ;;  %v4733_v21 = vld [vmem:[#allocation14 + $0x14] sm:$0xf0] }
 0x5fd   :  { %v3885_v41 = vor.u32 %v4711_v29, %v3884_v28  ;;  %v3965_v28 = vor.u32 %v4733_v21, %v3964_v20  ;;  %v3789_v29 = vor.u32 %v4687_v4, %v3788_v26  ;;  %v4776_v34 = vld [vmem:[#allocation14 + $0x16c] sm:$0xf0]  ;;  %v4749_v26 = vld [vmem:[#allocation14 + $0x9c] sm:$0xf]  ;;  %v4046_v4 = vld [vmem:[#allocation14 + $0xb0] sm:$0xf0] }
 0x5fe   :  { %v4743_v20 = vld [vmem:[#allocation14 + $0x6c] sm:$0xf]  ;;  %v4022_v21 = vld [vmem:[#allocation14 + $0x80] sm:$0xf0] }
 0x600   :  { %1500 = vmatpush.bf16.msrb.mxu3 %v3805_v35  ;;  %v4060_v35 = vld [vmem:[#allocation14 + $0xc0] sm:$0xf]  ;;  %2216 = vmatpush.bf16.msrb.mxu0 %v4041_v24  ;;  %v4116_v24 = vld [vmem:[#allocation14 + $0x128] sm:$0xf] }
 0x601   :  { %v4061_v38 = vor.u32 %v4757_v37, %v4060_v35  ;;  %v4325_v35 = vor.u32 %v4823_v22, %v4324_v12  ;;  %v4752_v12 = vld [vmem:[#allocation14 + $0xac] sm:$0xf0] }
 0x603   :  { %2187 = vmatpush.bf16.msrb.mxu1 %v4061_v38  ;;  %v4300_v38 = vld [vmem:[#allocation14 + $0x2a0] sm:$0xf] }
 0x604   :  { %1501 = vmatpush.bf16.msrb.mxu3 %v3781_v18  ;;  %v3889_v18 = vor.u32 %v4708_v31, %v3886_v32  ;;  %v4140_v32 = vld [vmem:[#allocation14 + $0x158] sm:$0xf] }
 0x605   :  { %v4141_v39 = vor.u32 %v4776_v34, %v4140_v32  ;;  %v4020_v32 = vld [vmem:[#allocation14 + $0x68] sm:$0xf]  ;;  %v4746_v34 = vld [vmem:[#allocation14 + $0x7c] sm:$0xf0] }
 0x607   :  { %2188 = vmatpush.bf16.msrb.mxu1 %v4037_v59 }
 0x662   :  { %v4935_v48 = vpop.permute.xlu1 %4934 }
 0x663   :  { %v4937_v52 = vunpack.i.h.bf16 %v4935_v48  ;;  %v4936_v53 = vunpack.i.l.bf16 %v4935_v48  ;;  %v3861_v48 = vor.u32 %v4705_v43, %v3860_v42  ;;  %v4814_v42 = vld [vmem:[#allocation14 + $0x2a4] sm:$0xf]  ;;  %v4302_v43 = vld [vmem:[#allocation14 + $0x2b8] sm:$0xf0] }
 0x664   :  { %v4305_v59 = vor.u32 %v4814_v42, %v4302_v43  ;;  %v4784_v42 = vld [vmem:[#allocation14 + $0x1b4] sm:$0xf]  ;;  %v4182_v43 = vld [vmem:[#allocation14 + $0x1c8] sm:$0xf0] }
 0x665   :  { %v830_v9 = vsel %vm829_vm9, %v827_v55, %v4936_v53  ;;  %v831_v33 = vsel %vm829_vm9, %v828_v54, %v4937_v52  ;;  %v4699_v52 = vld [vmem:[#allocation12 + $0x204] sm:$0xf0]  ;;  %v4696_v53 = vld [vmem:[#allocation12 + $0x1f4] sm:$0xf]  ;;  %v3838_v54 = vld [vmem:[#allocation12 + $0x208] sm:$0xf0]  ;;  %v4017_v55 = vor.u32 %v4742_v17, %v4014_v62  ;;  %v4117_v62 = vor.u32 %v4770_v46, %v4116_v24 }
 0x666   :  { %v5587_v63 = vpack.c.bf16 %v831_v33, %v830_v9  ;;  %v4736_v9 = vld [vmem:[#allocation14 + $0x34] sm:$0xf]  ;;  %v3990_v33 = vld [vmem:[#allocation14 + $0x48] sm:$0xf0]  ;;  %v3841_v61 = vor.u32 %v4696_v53, %v3838_v54  ;;  %v4811_v17 = vld [vmem:[#allocation14 + $0x284] sm:$0xf0] }
 0x667   :  { %2217 = vmatpush.bf16.msrb.mxu0 %v4017_v55  ;;  %v3993_v1 = vor.u32 %v4736_v9, %v3990_v33  ;;  %v169_v54 = vld [vmem:[%s6762_s1] sm:$0xff]  ;;  %v171_v55 = vld [vmem:[%s6762_s1 + $0x10] sm:$0xff] }
 0x668   :  { %1446 = vmatmul.bf16.vlgmr.msra.gmra.mxu3 %v5587_v63  ;;  %1474 = vmatmul.bf16.vlgmr.msrb.gmra.mxu2 %v5587_v63  ;;  %v5601_v9 = vpack.c.bf16 %v171_v55, %v169_v54  ;;  %v4740_v24 = vld [vmem:[#allocation14 + $0x4c] sm:$0xf0]  ;;  %v4156_v46 = vld [vmem:[#allocation14 + $0x180] sm:$0xf]  ;;  %v4150_v54 = vld [vmem:[#allocation14 + $0x178] sm:$0xf0] }
 0x669   :  { %1550 = vmatpush.bf16.msra.mxu3 %v3957_v56  ;;  %1578 = vmatpush.bf16.msrb.mxu2 %v3961_v36  ;;  %v4012_v56 = vld [vmem:[#allocation14 + $0x60] sm:$0xf]  ;;  %v3837_v36 = vor.u32 %v4699_v52, %v3836_v50  ;;  %v4808_v50 = vld [vmem:[#allocation14 + $0x274] sm:$0xf]  ;;  %v4278_v52 = vld [vmem:[#allocation14 + $0x288] sm:$0xf0] }
 0x66a   :  { %v4013_v57 = vor.u32 %v4745_v14, %v4012_v56  ;;  %v4092_v56 = vld [vmem:[#allocation14 + $0xf8] sm:$0xf]  ;;  %v4764_v14 = vld [vmem:[#allocation14 + $0x10c] sm:$0xf0]  ;;  %v4281_v51 = vor.u32 %v4808_v50, %v4278_v52  ;;  %v4185_v50 = vor.u32 %v4784_v42, %v4182_v43  ;;  %v4158_v52 = vld [vmem:[#allocation14 + $0x198] sm:$0xf0] }
 0x66b   :  { %2218 = vmatpush.bf16.msrb.mxu0 %v3993_v1  ;;  %v4093_v33 = vor.u32 %v4764_v14, %v4092_v56  ;;  %v4332_v55 = vld [vmem:[#allocation14 + $0x2d8] sm:$0xf]  ;;  %v3972_v14 = vld [vmem:[#allocation14 + $0x8] sm:$0xf]  ;;  %v4803_v42 = vld [vmem:[#allocation14 + $0x24c] sm:$0xf] }
 0x66c   :  { %2189 = vmatpush.bf16.msrb.mxu1 %v4013_v57  ;;  %v4252_v57 = vld [vmem:[#allocation14 + $0x240] sm:$0xf]  ;;  %v4262_v43 = vld [vmem:[#allocation14 + $0x260] sm:$0xf0] }
 0x66d   :  { %1551 = vmatpush.bf16.msra.mxu3 %v3933_v58  ;;  %1579 = vmatpush.bf16.msrb.mxu2 %v3937_v5  ;;  %v4684_v58 = vld [vmem:[#allocation12 + $0x194] sm:$0xf]  ;;  %v4730_v5 = vld [vmem:[#allocation14 + $0x4] sm:$0xf] }
 0x66e   :  { %v3969_v19 = vor.u32 %v4730_v5, %v3966_v6  ;;  %v3793_v31 = vor.u32 %v4684_v58, %v3790_v10  ;;  %v4253_v58 = vor.u32 %v4805_v30, %v4252_v57  ;;  %v4228_v6 = vld [vmem:[#allocation14 + $0x210] sm:$0xf]  ;;  %v4230_v10 = vld [vmem:[#allocation14 + $0x228] sm:$0xf0]  ;;  %v4734_v57 = vld [vmem:[#allocation14 + $0x1c] sm:$0xf0] }
 0x66f   :  { %v170_v30 = vld [vmem:[%s6762_s1 + $0x8] sm:$0xff] }
 0x670   :  { %2190 = vmatpush.bf16.msrb.mxu1 %v3989_v25  ;;  %2219 = vmatpush.bf16.msrb.mxu0 %v3969_v19  ;;  %v4069_v25 = vor.u32 %v4758_v3, %v4068_v2  ;;  %v4148_v2 = vld [vmem:[#allocation14 + $0x160] sm:$0xf]  ;;  %v4777_v3 = vld [vmem:[#allocation14 + $0x174] sm:$0xf0] }
 0x671   :  { %1552 = vmatpush.bf16.msra.mxu3 %v3909_v27  ;;  %1580 = vmatpush.bf16.msrb.mxu2 %v3913_v16  ;;  %v4326_v27 = vld [vmem:[#allocation14 + $0x2e8] sm:$0xf0]  ;;  %v4145_v16 = vor.u32 %v4773_v11, %v4142_v13  ;;  %v4049_v11 = vor.u32 %v4749_v26, %v4046_v4  ;;  %v4044_v13 = vld [vmem:[#allocation14 + $0x98] sm:$0xf]  ;;  %v4308_v4 = vld [vmem:[#allocation14 + $0x2a8] sm:$0xf] }
 0x672   :  { %v4329_v37 = vor.u32 %v4820_v23, %v4326_v27  ;;  %v4045_v19 = vor.u32 %v4752_v12, %v4044_v13  ;;  %v4204_v27 = vld [vmem:[#allocation14 + $0x1e0] sm:$0xf]  ;;  %v4124_v12 = vld [vmem:[#allocation14 + $0x130] sm:$0xf] }
 0x673   :  { %2220 = vmatmul.bf16.vlgmr.msrb.gmra.mxu0 %v5601_v9 }
 0x674   :  { %2268 = vmatpush.bf16.msra.mxu0 %v4145_v16  ;;  %2191 = vmatpush.bf16.msrb.mxu1 %v3965_v28  ;;  %v4793_v16 = vld [vmem:[#allocation14 + $0x1f4] sm:$0xf0]  ;;  %v4790_v28 = vld [vmem:[#allocation14 + $0x1e4] sm:$0xf] }
 0x675   :  { %1553 = vmatpush.bf16.msra.mxu3 %v3885_v41  ;;  %1581 = vmatpush.bf16.msrb.mxu2 %v3889_v18  ;;  %v4118_v41 = vld [vmem:[#allocation14 + $0x140] sm:$0xf0]  ;;  %v4817_v18 = vld [vmem:[#allocation14 + $0x2b4] sm:$0xf0] }
 0x676   :  { %v4121_v44 = vor.u32 %v4767_v40, %v4118_v41  ;;  %v4301_v47 = vor.u32 %v4817_v18, %v4300_v38  ;;  %v3998_v38 = vld [vmem:[#allocation14 + $0x50] sm:$0xf0]  ;;  %v4180_v41 = vld [vmem:[#allocation14 + $0x1b0] sm:$0xf]  ;;  %v4787_v18 = vld [vmem:[#allocation14 + $0x1c4] sm:$0xf0] }
 0x677   :  { %2192 = vmatmul.bf16.vlgmr.msrb.gmra.mxu1 %v5601_v9 }
 0x678   :  { %1502 = vmatmul.bf16.vlgmr.msrb.gmra.mxu3 %v5587_v63  ;;  %1530 = vmatmul.bf16.vlgmr.msra.gmra.mxu2 %v5587_v63 }
 0x679   :  { %1554 = vmatpush.bf16.msra.mxu3 %v3861_v48  ;;  %1582 = vmatpush.bf16.msrb.mxu2 %v3865_v49  ;;  %v4761_v48 = vld [vmem:[#allocation14 + $0xfc] sm:$0xf]  ;;  %v4094_v49 = vld [vmem:[#allocation14 + $0x110] sm:$0xf0] }
 0x67a   :  { %2240 = vmatpush.bf16.msra.mxu1 %v4141_v39  ;;  %2269 = vmatpush.bf16.msra.mxu0 %v4121_v44  ;;  %v4097_v53 = vor.u32 %v4761_v48, %v4094_v49  ;;  %v4205_v39 = vor.u32 %v4793_v16, %v4204_v27  ;;  %v3974_v48 = vld [vmem:[#allocation14 + $0x20] sm:$0xf0]  ;;  %v4181_v49 = vor.u32 %v4787_v18, %v4180_v41  ;;  %v4102_v27 = vld [vmem:[#allocation14 + $0x118] sm:$0xf0]  ;;  %v4812_v16 = vld [vmem:[#allocation14 + $0x28c] sm:$0xf0] }
 0x67b   :  { %v4260_v41 = vld [vmem:[#allocation14 + $0x248] sm:$0xf]  ;;  %v4806_v18 = vld [vmem:[#allocation14 + $0x25c] sm:$0xf0] }
 0x67d   :  { %1555 = vmatpush.bf16.msra.mxu3 %v3837_v36  ;;  %1583 = vmatpush.bf16.msrb.mxu2 %v3841_v61  ;;  %v4755_v36 = vld [vmem:[#allocation14 + $0xcc] sm:$0xf]  ;;  %v4277_v61 = vor.u32 %v4811_v17, %v4276_v45  ;;  %v3996_v45 = vld [vmem:[#allocation14 + $0x38] sm:$0xf] }
 0x67e   :  { %2241 = vmatpush.bf16.msra.mxu1 %v4117_v62  ;;  %2270 = vmatpush.bf16.msra.mxu0 %v4097_v53  ;;  %v4073_v1 = vor.u32 %v4755_v36, %v4070_v0  ;;  %v3997_v17 = vor.u32 %v4740_v24, %v3996_v45  ;;  %v4731_v62 = vld [vmem:[#allocation14 + $0xc] sm:$0xf]  ;;  %v4774_v53 = vld [vmem:[#allocation14 + $0x164] sm:$0xf]  ;;  %v4821_v36 = vld [vmem:[#allocation14 + $0x2dc] sm:$0xf] }
 0x67f   :  { %v3977_v56 = vor.u32 %v4731_v62, %v3974_v48  ;;  %v4076_v24 = vld [vmem:[#allocation14 + $0xd0] sm:$0xf]  ;;  %v4265_v62 = vor.u32 %v4803_v42, %v4262_v43  ;;  %v4236_v48 = vld [vmem:[#allocation14 + $0x218] sm:$0xf] }
 0x680   :  { %v4316_v43 = vld [vmem:[#allocation14 + $0x2b0] sm:$0xf] }
 0x681   :  { %1556 = vmatpush.bf16.msra.mxu3 %v3813_v7  ;;  %1584 = vmatpush.bf16.msrb.mxu2 %v3817_v8  ;;  %v4799_v7 = vld [vmem:[#allocation14 + $0x224] sm:$0xf0]  ;;  %v4796_v8 = vld [vmem:[#allocation14 + $0x214] sm:$0xf] }
 0x682   :  { %2242 = vmatpush.bf16.msra.mxu1 %v4093_v33  ;;  %2271 = vmatpush.bf16.msra.mxu0 %v4073_v1  ;;  %v4229_v22 = vor.u32 %v4799_v7, %v4228_v6  ;;  %v4233_v23 = vor.u32 %v4796_v8, %v4230_v10  ;;  %v4824_v33 = vld [vmem:[#allocation14 + $0x2ec] sm:$0xf0]  ;;  %v172_v1 = vld [vmem:[%s6762_s1 + $0x18] sm:$0xff]  ;;  %v4818_v6 = vld [vmem:[#allocation14 + $0x2bc] sm:$0xf0]  ;;  %v4149_v10 = vor.u32 %v4777_v3, %v4148_v2 }
 0x683   :  { %v4815_v7 = vld [vmem:[#allocation14 + $0x2ac] sm:$0xf]  ;;  %v4310_v8 = vld [vmem:[#allocation14 + $0x2c0] sm:$0xf0]  ;;  %v5611_v13 = vpack.c.bf16 %v172_v1, %v170_v30  ;;  %v4028_v1 = vld [vmem:[#allocation14 + $0x70] sm:$0xf] }
 0x684   :  { %v4791_v30 = vld [vmem:[#allocation14 + $0x1ec] sm:$0xf]  ;;  %v4747_v2 = vld [vmem:[#allocation14 + $0x84] sm:$0xf0]  ;;  %v4738_v3 = vld [vmem:[#allocation14 + $0x44] sm:$0xf] }
 0x685   :  { %1557 = vmatpush.bf16.msra.mxu3 %v3789_v29  ;;  %1585 = vmatpush.bf16.msrb.mxu2 %v3793_v31  ;;  %v4206_v29 = vld [vmem:[#allocation14 + $0x1f8] sm:$0xf0]  ;;  %v4025_v31 = vor.u32 %v4743_v20, %v4022_v21  ;;  %v4309_v20 = vor.u32 %v4818_v6, %v4308_v4  ;;  %v4313_v21 = vor.u32 %v4815_v7, %v4310_v8  ;;  %v4190_v7 = vld [vmem:[#allocation14 + $0x1d0] sm:$0xf0] }
 0x686   :  { %2243 = vmatpush.bf16.msra.mxu1 %v4069_v25  ;;  %2272 = vmatpush.bf16.msra.mxu0 %v4049_v11  ;;  %v4209_v40 = vor.u32 %v4790_v28, %v4206_v29  ;;  %v4333_v25 = vor.u32 %v4824_v33, %v4332_v55  ;;  %v4809_v28 = vld [vmem:[#allocation14 + $0x27c] sm:$0xf]  ;;  %v4286_v29 = vld [vmem:[#allocation14 + $0x290] sm:$0xf0]  ;;  %v4052_v55 = vld [vmem:[#allocation14 + $0xa0] sm:$0xf]  ;;  %v4029_v8 = vor.u32 %v4747_v2, %v4028_v1 }
 0x687   :  { %v4785_v6 = vld [vmem:[#allocation14 + $0x1bc] sm:$0xf]  ;;  %v4792_v1 = vld [vmem:[#allocation14 + $0x1f4] sm:$0xf]  ;;  %v4222_v2 = vld [vmem:[#allocation14 + $0x208] sm:$0xf0] }
 0x688   :  { %1558 = vmatmul.bf16.vlgmr.msra.gmra.mxu3 %v5587_v63  ;;  %1586 = vmatmul.bf16.vlgmr.msrb.gmra.mxu2 %v5587_v63  ;;  %v4254_v63 = vld [vmem:[#allocation14 + $0x258] sm:$0xf0] }
 0x689   :  { %2198 = vmatpush.bf16.msrb.mxu3 %v4325_v35  ;;  %2226 = vmatpush.bf16.msra.mxu2 %v4329_v37  ;;  %v4257_v5 = vor.u32 %v4802_v60, %v4254_v63  ;;  %v4021_v35 = vor.u32 %v4746_v34, %v4020_v32  ;;  %v4737_v37 = vld [vmem:[#allocation14 + $0x3c] sm:$0xf]  ;;  %v3973_v60 = vor.u32 %v4734_v57, %v3972_v14  ;;  %v4100_v34 = vld [vmem:[#allocation14 + $0x100] sm:$0xf]  ;;  %v4744_v14 = vld [vmem:[#allocation14 + $0x74] sm:$0xf] }
 0x68a   :  { %2244 = vmatpush.bf16.msra.mxu1 %v4045_v19  ;;  %2273 = vmatpush.bf16.msra.mxu0 %v4025_v31  ;;  %v4001_v44 = vor.u32 %v4737_v37, %v3998_v38  ;;  %v4771_v19 = vld [vmem:[#allocation14 + $0x144] sm:$0xf0]  ;;  %v4756_v37 = vld [vmem:[#allocation14 + $0xd4] sm:$0xf]  ;;  %v4078_v38 = vld [vmem:[#allocation14 + $0xe8] sm:$0xf0] }
 0x68b   :  { %v4125_v31 = vor.u32 %v4771_v19, %v4124_v12  ;;  %v4081_v45 = vor.u32 %v4756_v37, %v4078_v38  ;;  %v4030_v57 = vld [vmem:[#allocation14 + $0x88] sm:$0xf0]  ;;  %v4741_v12 = vld [vmem:[#allocation14 + $0x54] sm:$0xf0]  ;;  %v4732_v19 = vld [vmem:[#allocation14 + $0x14] sm:$0xf] }
 0x68c   :  { %v4342_v37 = vld [vmem:[#allocation14 + $0x2f8] sm:$0xf0]  ;;  %v3980_v38 = vld [vmem:[#allocation14 + $0x10] sm:$0xf] }
 0x68d   :  { %2199 = vmatpush.bf16.msrb.mxu3 %v4301_v47  ;;  %2227 = vmatpush.bf16.msra.mxu2 %v4305_v59  ;;  %v4781_v47 = vld [vmem:[#allocation14 + $0x194] sm:$0xf0]  ;;  %v4778_v59 = vld [vmem:[#allocation14 + $0x184] sm:$0xf] }
 0x68e   :  { %2245 = vmatpush.bf16.msra.mxu1 %v4021_v35  ;;  %2274 = vmatpush.bf16.msra.mxu0 %v4001_v44  ;;  %v4157_v0 = vor.u32 %v4781_v47, %v4156_v46  ;;  %v4161_v63 = vor.u32 %v4778_v59, %v4158_v52  ;;  %v4765_v35 = vld [vmem:[#allocation14 + $0x114] sm:$0xf0]  ;;  %v4759_v46 = vld [vmem:[#allocation14 + $0xe4] sm:$0xf0]  ;;  %v4750_v47 = vld [vmem:[#allocation14 + $0xa4] sm:$0xf] }
 0x68f   :  { %v4101_v44 = vor.u32 %v4765_v35, %v4100_v34  ;;  %v4054_v59 = vld [vmem:[#allocation14 + $0xb8] sm:$0xf0]  ;;  %v4238_v52 = vld [vmem:[#allocation14 + $0x230] sm:$0xf0]  ;;  %v4825_v34 = vld [vmem:[#allocation14 + $0x2f4] sm:$0xf0] }
 0x690   :  { %v4822_v35 = vld [vmem:[#allocation14 + $0x2e4] sm:$0xf] }
 0x691   :  { %2200 = vmatpush.bf16.msrb.mxu3 %v4277_v61  ;;  %2228 = vmatpush.bf16.msra.mxu2 %v4281_v51  ;;  %v4334_v61 = vld [vmem:[#allocation14 + $0x2f0] sm:$0xf0]  ;;  %v4153_v51 = vor.u32 %v4774_v53, %v4150_v54  ;;  %v4077_v53 = vor.u32 %v4759_v46, %v4076_v24  ;;  %v4057_v54 = vor.u32 %v4750_v47, %v4054_v59  ;;  %v4318_v24 = vld [vmem:[#allocation14 + $0x2c8] sm:$0xf0] }
 0x692   :  { %2246 = vmatpush.bf16.msra.mxu1 %v3997_v17  ;;  %v4337_v26 = vor.u32 %v4821_v36, %v4334_v61  ;;  %2275 = vmatpush.bf16.msra.mxu0 %v3977_v56  ;;  %v4261_v17 = vor.u32 %v4806_v18, %v4260_v41  ;;  %v4753_v56 = vld [vmem:[#allocation14 + $0xb4] sm:$0xf0]  ;;  %v4212_v61 = vld [vmem:[#allocation14 + $0x1e8] sm:$0xf]  ;;  %v4345_v42 = vor.u32 %v4822_v35, %v4342_v37 }
 0x695   :  { %2201 = vmatpush.bf16.msrb.mxu3 %v4253_v58  ;;  %2229 = vmatpush.bf16.msra.mxu2 %v4257_v5  ;;  %v4768_v58 = vld [vmem:[#allocation14 + $0x134] sm:$0xf]  ;;  %v4126_v5 = vld [vmem:[#allocation14 + $0x148] sm:$0xf0] }
 0x696   :  { %2324 = vmatpush.bf16.msrb.mxu0 %v4153_v51  ;;  %v4129_v11 = vor.u32 %v4768_v58, %v4126_v5  ;;  %2247 = vmatpush.bf16.msra.mxu1 %v3973_v60  ;;  %v4794_v51 = vld [vmem:[#allocation14 + $0x1fc] sm:$0xf0]  ;;  %v4214_v60 = vld [vmem:[#allocation14 + $0x200] sm:$0xf0]  ;;  %v4188_v58 = vld [vmem:[#allocation14 + $0x1b8] sm:$0xf] }
 0x697   :  { %2276 = vmatmul.bf16.vlgmr.msra.gmra.mxu0 %v5601_v9  ;;  %v4217_v4 = vor.u32 %v4791_v30, %v4214_v60  ;;  %v4788_v5 = vld [vmem:[#allocation14 + $0x1cc] sm:$0xf0] }
 0x699   :  { %2202 = vmatpush.bf16.msrb.mxu3 %v4229_v22  ;;  %2230 = vmatpush.bf16.msra.mxu2 %v4233_v23  ;;  %v4284_v22 = vld [vmem:[#allocation14 + $0x278] sm:$0xf]  ;;  %v4762_v23 = vld [vmem:[#allocation14 + $0x104] sm:$0xf] }
 0x69a   :  { %2296 = vmatpush.bf16.msrb.mxu1 %v4149_v10  ;;  %2325 = vmatpush.bf16.msrb.mxu0 %v4129_v11  ;;  %v4105_v32 = vor.u32 %v4762_v23, %v4102_v27  ;;  %v4004_v11 = vld [vmem:[#allocation14 + $0x40] sm:$0xf]  ;;  %v4164_v23 = vld [vmem:[#allocation14 + $0x188] sm:$0xf] }
 0x69b   :  { %2248 = vmatmul.bf16.vlgmr.msra.gmra.mxu1 %v5601_v9  ;;  %v4782_v27 = vld [vmem:[#allocation14 + $0x19c] sm:$0xf0] }
 0x69d   :  { %2203 = vmatpush.bf16.msrb.mxu3 %v4205_v39  ;;  %2231 = vmatpush.bf16.msra.mxu2 %v4209_v40  ;;  %v4285_v39 = vor.u32 %v4812_v16, %v4284_v22  ;;  %v4289_v40 = vor.u32 %v4809_v28, %v4286_v29  ;;  %v4193_v22 = vor.u32 %v4785_v6, %v4190_v7  ;;  %v4779_v16 = vld [vmem:[#allocation14 + $0x18c] sm:$0xf]  ;;  %v4166_v28 = vld [vmem:[#allocation14 + $0x1a0] sm:$0xf0]  ;;  %v4340_v29 = vld [vmem:[#allocation14 + $0x2e0] sm:$0xf] }
 0x69e   :  { %2297 = vmatpush.bf16.msrb.mxu1 %v4125_v31  ;;  %2326 = vmatpush.bf16.msrb.mxu0 %v4105_v32  ;;  %v4005_v31 = vor.u32 %v4741_v12, %v4004_v11  ;;  %v4169_v41 = vor.u32 %v4779_v16, %v4166_v28  ;;  %v4341_v18 = vor.u32 %v4825_v34, %v4340_v29  ;;  %v4172_v7 = vld [vmem:[#allocation14 + $0x190] sm:$0xf]  ;;  %v4174_v11 = vld [vmem:[#allocation14 + $0x1a8] sm:$0xf0] }
 0x6a1   :  { %2204 = vmatpush.bf16.msrb.mxu3 %v4181_v49  ;;  %2232 = vmatpush.bf16.msra.mxu2 %v4185_v50  ;;  %v4800_v49 = vld [vmem:[#allocation14 + $0x22c] sm:$0xf0]  ;;  %v4797_v50 = vld [vmem:[#allocation14 + $0x21c] sm:$0xf] }
 0x6a2   :  { %2298 = vmatpush.bf16.msrb.mxu1 %v4101_v44  ;;  %2327 = vmatpush.bf16.msrb.mxu0 %v4081_v45  ;;  %v4237_v33 = vor.u32 %v4800_v49, %v4236_v48  ;;  %v4241_v36 = vor.u32 %v4797_v50, %v4238_v52  ;;  %v4819_v44 = vld [vmem:[#allocation14 + $0x2c4] sm:$0xf0]  ;;  %v4816_v45 = vld [vmem:[#allocation14 + $0x2b4] sm:$0xf]  ;;  %v4810_v48 = vld [vmem:[#allocation14 + $0x284] sm:$0xf] }
 0x6a3   :  { %v4317_v47 = vor.u32 %v4819_v44, %v4316_v43  ;;  %v4321_v59 = vor.u32 %v4816_v45, %v4318_v24  ;;  %v4294_v49 = vld [vmem:[#allocation14 + $0x298] sm:$0xf0]  ;;  %v5651_v45 = vld [vmem:[#allocation15 + $0x10] sm:$0x3f] }
 0x6a4   :  { %v4297_v52 = vor.u32 %v4810_v48, %v4294_v49  ;;  %v1693_v48 = vperm.slane %v5651_v45, 1 }
 0x6a5   :  { %2205 = vmatpush.bf16.msrb.mxu3 %v4157_v0  ;;  %2233 = vmatpush.bf16.msra.mxu2 %v4161_v63  ;;  %v4053_v0 = vor.u32 %v4753_v56, %v4052_v55  ;;  %v4033_v63 = vor.u32 %v4744_v14, %v4030_v57  ;;  %v4804_v55 = vld [vmem:[#allocation14 + $0x254] sm:$0xf]  ;;  %v4270_v56 = vld [vmem:[#allocation14 + $0x268] sm:$0xf0] }
 0x6a6   :  { %2299 = vmatpush.bf16.msrb.mxu1 %v4077_v53  ;;  %2328 = vmatpush.bf16.msrb.mxu0 %v4057_v54  ;;  %v4268_v53 = vld [vmem:[#allocation14 + $0x250] sm:$0xf]  ;;  %v4807_v54 = vld [vmem:[#allocation14 + $0x264] sm:$0xf0]  ;;  %v4273_v57 = vor.u32 %v4804_v55, %v4270_v56 }
 0x6a7   :  { %v4269_v14 = vor.u32 %v4807_v54, %v4268_v53 }
 0x6a8   :  { %2206 = vmatmul.bf16.vlgmr.msrb.gmra.mxu3 %v5611_v13  ;;  %2234 = vmatmul.bf16.vlgmr.msra.gmra.mxu2 %v5611_v13 }
 0x6a9   :  { %2254 = vmatpush.bf16.msra.mxu3 %v4333_v25  ;;  %2282 = vmatpush.bf16.msrb.mxu2 %v4337_v26  ;;  %v4006_v25 = vld [vmem:[#allocation14 + $0x58] sm:$0xf0]  ;;  %v4213_v26 = vor.u32 %v4794_v51, %v4212_v61  ;;  %v4798_v61 = vld [vmem:[#allocation14 + $0x224] sm:$0xf] }
 0x6aa   :  { %2300 = vmatpush.bf16.msrb.mxu1 %v4053_v0  ;;  %2329 = vmatpush.bf16.msrb.mxu0 %v4033_v63  ;;  %v4009_v10 = vor.u32 %v4738_v3, %v4006_v25  ;;  %v4246_v51 = vld [vmem:[#allocation14 + $0x238] sm:$0xf0]  ;;  %v4220_v0 = vld [vmem:[#allocation14 + $0x1f0] sm:$0xf]  ;;  %v4795_v63 = vld [vmem:[#allocation14 + $0x204] sm:$0xf0] }
 0x6ab   :  { %v4249_v60 = vor.u32 %v4798_v61, %v4246_v51  ;;  %v4221_v3 = vor.u32 %v4795_v63, %v4220_v0  ;;  %v4196_v25 = vld [vmem:[#allocation14 + $0x1c0] sm:$0xf] }
 0x6ad   :  { %2255 = vmatpush.bf16.msra.mxu3 %v4309_v20  ;;  %2283 = vmatpush.bf16.msrb.mxu2 %v4313_v21  ;;  %v3982_v20 = vld [vmem:[#allocation14 + $0x28] sm:$0xf0]  ;;  %v4189_v21 = vor.u32 %v4788_v5, %v4188_v58  ;;  %v4198_v58 = vld [vmem:[#allocation14 + $0x1d8] sm:$0xf0] }
 0x6ae   :  { %2301 = vmatpush.bf16.msrb.mxu1 %v4029_v8  ;;  %2330 = vmatpush.bf16.msrb.mxu0 %v4009_v10  ;;  %v3985_v32 = vor.u32 %v4732_v19, %v3982_v20  ;;  %v4783_v8 = vld [vmem:[#allocation14 + $0x1a4] sm:$0xf0]  ;;  %v4780_v10 = vld [vmem:[#allocation14 + $0x194] sm:$0xf]  ;;  %v1433_v20 = vpop.f32.mrf.mxu1 }
 0x6af   :  { %v4173_v12 = vor.u32 %v4783_v8, %v4172_v7  ;;  %v4177_v19 = vor.u32 %v4780_v10, %v4174_v11  ;;  %v4468_v8 = vld [vmem:[%s6769_s8 + $0xe0] sm:$0xf]  ;;  %v4856_v10 = vld [vmem:[%s6769_s8 + $0xec] sm:$0xf0] }
 0x6b0   :  { %v4596_v11 = vld [vmem:[%s6769_s8 + $0x1e0] sm:$0xf] }
 0x6b1   :  { %2256 = vmatpush.bf16.msra.mxu3 %v4285_v39  ;;  %2284 = vmatpush.bf16.msrb.mxu2 %v4289_v40  ;;  %v4735_v39 = vld [vmem:[#allocation14 + $0x24] sm:$0xf0]  ;;  %v4165_v40 = vor.u32 %v4782_v27, %v4164_v23 }
 0x6b2   :  { %2302 = vmatpush.bf16.msrb.mxu1 %v4005_v31  ;;  %2331 = vmatpush.bf16.msrb.mxu0 %v3985_v32  ;;  %v3981_v46 = vor.u32 %v4735_v39, %v3980_v38 }
 0x6b5   :  { %2257 = vmatpush.bf16.msra.mxu3 %v4261_v17  ;;  %2285 = vmatpush.bf16.msrb.mxu2 %v4265_v62  ;;  %v4292_v17 = vld [vmem:[#allocation14 + $0x280] sm:$0xf]  ;;  %v4813_v62 = vld [vmem:[#allocation14 + $0x294] sm:$0xf0] }
 0x6b6   :  { %2332 = vmatmul.bf16.vlgmr.msrb.gmra.mxu0 %v5601_v9  ;;  %2303 = vmatpush.bf16.msrb.mxu1 %v3981_v46  ;;  %v4293_v50 = vor.u32 %v4813_v62, %v4292_v17  ;;  %v1435_v27 = vpop.f32.mrf.mxu1  ;;  %v1692_v62 = vperm.slane %v5651_v45, 0 }
 0x6b9   :  { %2258 = vmatpush.bf16.msra.mxu3 %v4237_v33  ;;  %2286 = vmatpush.bf16.msrb.mxu2 %v4241_v36  ;;  %v4244_v33 = vld [vmem:[#allocation14 + $0x220] sm:$0xf]  ;;  %v4801_v36 = vld [vmem:[#allocation14 + $0x234] sm:$0xf0] }
 0x6ba   :  { %2304 = vmatmul.bf16.vlgmr.msrb.gmra.mxu1 %v5601_v9  ;;  %v4245_v30 = vor.u32 %v4801_v36, %v4244_v33  ;;  %v4225_v9 = vor.u32 %v4792_v1, %v4222_v2 }
 0x6bd   :  { %2259 = vmatpush.bf16.msra.mxu3 %v4213_v26  ;;  %2287 = vmatpush.bf16.msrb.mxu2 %v4217_v4  ;;  %v4789_v26 = vld [vmem:[#allocation14 + $0x1d4] sm:$0xf0]  ;;  %v4786_v4 = vld [vmem:[#allocation14 + $0x1c4] sm:$0xf] }
 0x6be   :  { %v4197_v5 = vor.u32 %v4789_v26, %v4196_v25  ;;  %v4201_v6 = vor.u32 %v4786_v4, %v4198_v58  ;;  %v5623_v31 = vpop.f32.mrf.mxu1 }
 0x6c1   :  { %2260 = vmatpush.bf16.msra.mxu3 %v4189_v21  ;;  %2288 = vmatpush.bf16.msrb.mxu2 %v4193_v22  ;;  %v1461_v21 = vpop.f32.mrf.mxu0 }
 0x6c5   :  { %2261 = vmatpush.bf16.msra.mxu3 %v4165_v40  ;;  %2289 = vmatpush.bf16.msrb.mxu2 %v4169_v41 }
 0x6c6   :  { %v5631_v37 = vpop.f32.mrf.mxu1 }
 0x6c8   :  { %2262 = vmatmul.bf16.vlgmr.msra.gmra.mxu3 %v5611_v13  ;;  %2290 = vmatmul.bf16.vlgmr.msrb.gmra.mxu2 %v5611_v13 }
 0x6c9   :  { %2310 = vmatpush.bf16.msrb.mxu3 %v4341_v18  ;;  %2338 = vmatpush.bf16.msra.mxu2 %v4345_v42  ;;  %v1463_v16 = vpop.f32.mrf.mxu0 }
 0x6cd   :  { %2311 = vmatpush.bf16.msrb.mxu3 %v4317_v47  ;;  %2339 = vmatpush.bf16.msra.mxu2 %v4321_v59  ;;  %v5653_v47 = vld [vmem:[#allocation15 + $0xa] sm:$0x3f] }
 0x6ce   :  { %v5639_v40 = vpop.f32.mrf.mxu1  ;;  %v932_v49 = vperm.slane %v5653_v47, 0 }
 0x6d0   :  { %v1434_v54 = vadd.f32 %v1433_v20, %v932_v49  ;;  %v4469_v20 = vor.u32 %v4856_v10, %v4468_v8  ;;  %v4878_v8 = vld [vmem:[%s6769_s8 + $0x1a4] sm:$0xf]  ;;  %v4566_v10 = vld [vmem:[%s6769_s8 + $0x1b0] sm:$0xf0] }
 0x6d1   :  { %2312 = vmatpush.bf16.msrb.mxu3 %v4293_v50  ;;  %2340 = vmatpush.bf16.msra.mxu2 %v4297_v52  ;;  %v5625_v32 = vpop.f32.mrf.mxu0  ;;  %v933_v50 = vperm.slane %v5653_v47, 1 }
 0x6d2   :  { %2940 = vmatpush.bf16.msra.mxu1 %v4469_v20  ;;  %v1694_v20 = vperm.slane %v5651_v45, 2 }
 0x6d3   :  { %v1462_v55 = vadd.f32 %v1461_v21, %v933_v50  ;;  %v1464_v25 = vadd.f32 %v1463_v16, %v933_v50  ;;  %v4888_v21 = vld [vmem:[%s6769_s8 + $0x1ec] sm:$0xf0] }
 0x6d5   :  { %2313 = vmatpush.bf16.msrb.mxu3 %v4269_v14  ;;  %2341 = vmatpush.bf16.msra.mxu2 %v4273_v57 }
 0x6d6   :  { %v5647_v43 = vpop.f32.mrf.mxu1 }
 0x6d9   :  { %2314 = vmatpush.bf16.msrb.mxu3 %v4245_v30  ;;  %2342 = vmatpush.bf16.msra.mxu2 %v4249_v60  ;;  %v5633_v38 = vpop.f32.mrf.mxu0 }
 0x6dd   :  { %2315 = vmatpush.bf16.msrb.mxu3 %v4221_v3  ;;  %2343 = vmatpush.bf16.msra.mxu2 %v4225_v9  ;;  %v1436_v9 = vadd.f32 %v1435_v27, %v932_v49  ;;  %v4597_v27 = vor.u32 %v4888_v21, %v4596_v11  ;;  %v4569_v21 = vor.u32 %v4878_v8, %v4566_v10 }
 0x6e1   :  { %2316 = vmatpush.bf16.msrb.mxu3 %v4197_v5  ;;  %2344 = vmatpush.bf16.msra.mxu2 %v4201_v6  ;;  %v5641_v41 = vpop.f32.mrf.mxu0 }
 0x6e5   :  { %2317 = vmatpush.bf16.msrb.mxu3 %v4173_v12  ;;  %2345 = vmatpush.bf16.msra.mxu2 %v4177_v19 }
 0x6e8   :  { %2318 = vmatmul.bf16.vlgmr.msrb.gmra.mxu3 %v5611_v13  ;;  %2346 = vmatmul.bf16.vlgmr.msra.gmra.mxu2 %v5611_v13 }
 0x6e9   :  { %v5649_v44 = vpop.f32.mrf.mxu0  ;;  %2954 = vmatpush.bf16.msra.mxu3 %v4597_v27  ;;  %v1695_v27 = vperm.slane %v5651_v45, 3 }
 0x6eb   :  { %v1447_v22 = vpop.f32.mrf.mxu3  ;;  %v1475_v23 = vpop.f32.mrf.mxu2 }
 0x6ec   :  { %v1448_v57 = vadd.f32 %v1447_v22, %v1434_v54  ;;  %v1476_v33 = vadd.f32 %v1475_v23, %v1462_v55  ;;  %v4854_v22 = vld [vmem:[%s6769_s8 + $0xe4] sm:$0xf]  ;;  %v4470_v23 = vld [vmem:[%s6769_s8 + $0xf0] sm:$0xf0] }
 0x6ed   :  { %v4473_v16 = vor.u32 %v4854_v22, %v4470_v23 }
 0x6ef   :  { %2968 = vmatpush.bf16.msra.mxu0 %v4473_v16  ;;  %v4420_v16 = vld [vmem:[%s6769_s8 + $0x80] sm:$0xf] }
 0x6f1   :  { %v2221_v46 = vpop.f32.mrf.mxu0 }
 0x6f2   :  { %v2222_v53 = vadd.f32 %v2221_v46, %v1693_v48 }
 0x6f3   :  { %v1449_v28 = vpop.f32.mrf.mxu3  ;;  %v1477_v29 = vpop.f32.mrf.mxu2 }
 0x6f4   :  { %v2193_v24 = vpop.f32.mrf.mxu1  ;;  %v1450_v58 = vadd.f32 %v1449_v28, %v1436_v9  ;;  %v1478_v5 = vadd.f32 %v1477_v29, %v1464_v25  ;;  %v4886_v28 = vld [vmem:[%s6769_s8 + $0x1e4] sm:$0xf]  ;;  %v4598_v29 = vld [vmem:[%s6769_s8 + $0x1f0] sm:$0xf0]  ;;  %v4880_v9 = vld [vmem:[%s6769_s8 + $0x1ac] sm:$0xf0] }
 0x6f5   :  { %v2194_v52 = vadd.f32 %v2193_v24, %v1692_v62  ;;  %v4846_v25 = vld [vmem:[%s6769_s8 + $0xa4] sm:$0xf] }
 0x6f9   :  { %v2223_v30 = vpop.f32.mrf.mxu0 }
 0x6fa   :  { %v2224_v3 = vadd.f32 %v2223_v30, %v1693_v48  ;;  %v4601_v48 = vor.u32 %v4886_v28, %v4598_v29  ;;  %v4844_v28 = vld [vmem:[%s6769_s8 + $0x8c] sm:$0xf0] }
 0x6fb   :  { %v5627_v34 = vpop.f32.mrf.mxu3  ;;  %v5629_v35 = vpop.f32.mrf.mxu2  ;;  %v4421_v29 = vor.u32 %v4844_v28, %v4420_v16 }
 0x6fc   :  { %v2195_v51 = vpop.f32.mrf.mxu1  ;;  %2982 = vmatpush.bf16.msrb.mxu2 %v4601_v48 }
 0x6fd   :  { %v2196_v2 = vadd.f32 %v2195_v51, %v1692_v62 }
 0x703   :  { %v5635_v13 = vpop.f32.mrf.mxu3  ;;  %v5637_v39 = vpop.f32.mrf.mxu2 }
 0x70b   :  { %v5643_v18 = vpop.f32.mrf.mxu3  ;;  %v5645_v42 = vpop.f32.mrf.mxu2 }
 0x713   :  { %v5655_v59 = vpop.f32.mrf.mxu3  ;;  %v5657_v17 = vpop.f32.mrf.mxu2 }
 0x714   :  { %v2277_v51 = vpop.f32.mrf.mxu0 }
 0x72b   :  { %v2207_v56 = vpop.f32.mrf.mxu3  ;;  %v2235_v14 = vpop.f32.mrf.mxu2 }
 0x72c   :  { %v2208_v36 = vadd.f32 %v2207_v56, %v2194_v52  ;;  %v2236_v61 = vadd.f32 %v2235_v14, %v2222_v53  ;;  %v4452_v52 = vld [vmem:[%s6769_s8 + $0xc0] sm:$0xf]  ;;  %v4852_v53 = vld [vmem:[%s6769_s8 + $0xcc] sm:$0xf0] }
 0x72d   :  { %v4453_v55 = vor.u32 %v4852_v53, %v4452_v52  ;;  %v4580_v56 = vld [vmem:[%s6769_s8 + $0x1c0] sm:$0xf]  ;;  %v4884_v14 = vld [vmem:[%s6769_s8 + $0x1cc] sm:$0xf0]  ;;  %v4422_v53 = vld [vmem:[%s6769_s8 + $0x90] sm:$0xf0] }
 0x72e   :  { %v2352_v60 = vadd.f32 %v2208_v36, %v1448_v57  ;;  %v2353_v0 = vadd.f32 %v2236_v61, %v1476_v33  ;;  %v4581_v57 = vor.u32 %v4884_v14, %v4580_v56  ;;  %v4850_v33 = vld [vmem:[%s6769_s8 + $0xc4] sm:$0xf]  ;;  %v4454_v36 = vld [vmem:[%s6769_s8 + $0xd0] sm:$0xf0] }
 0x72f   :  { %v4882_v61 = vld [vmem:[%s6769_s8 + $0x1c4] sm:$0xf]  ;;  %2941 = vmatpush.bf16.msra.mxu1 %v4453_v55  ;;  %v4457_v30 = vor.u32 %v4850_v33, %v4454_v36  ;;  %v4550_v56 = vld [vmem:[%s6769_s8 + $0x190] sm:$0xf0] }
 0x730   :  { %v4346_v63 = vmul.f32 -1.442695, %v2352_v60  ;;  %v4347_v1 = vmul.f32 -1.442695, %v2353_v0  ;;  %v4582_v60 = vld [vmem:[%s6769_s8 + $0x1d0] sm:$0xf0]  ;;  %2955 = vmatpush.bf16.msra.mxu3 %v4581_v57 }
 0x731   :  { %v4585_v0 = vor.u32 %v4882_v61, %v4582_v60  ;;  %2969 = vmatpush.bf16.msra.mxu0 %v4457_v30  ;;  %v4874_v55 = vld [vmem:[%s6769_s8 + $0x184] sm:$0xf]  ;;  %v2278_v30 = vadd.f32 %v2277_v51, %v1695_v27 }
 0x732   :  { %5009 = vpow2.f32 %v4346_v63  ;;  %v4436_v63 = vld [vmem:[%s6769_s8 + $0xa0] sm:$0xf]  ;;  %v4553_v33 = vor.u32 %v4874_v55, %v4550_v56  ;;  %v4534_v55 = vld [vmem:[%s6769_s8 + $0x170] sm:$0xf0] }
 0x733   :  { %5011 = vpow2.f32 %v4347_v1  ;;  %v2209_v26 = vpop.f32.mrf.mxu3  ;;  %v2237_v4 = vpop.f32.mrf.mxu2  ;;  %v4848_v1 = vld [vmem:[%s6769_s8 + $0xac] sm:$0xf0]  ;;  %2983 = vmatpush.bf16.msrb.mxu2 %v4585_v0  ;;  %v4388_v56 = vld [vmem:[%s6769_s8 + $0x40] sm:$0xf] }
 0x734   :  { %v2210_v6 = vadd.f32 %v2209_v26, %v2196_v2  ;;  %v2238_v7 = vadd.f32 %v2237_v4, %v2224_v3  ;;  %v4564_v2 = vld [vmem:[%s6769_s8 + $0x1a0] sm:$0xf]  ;;  %v4437_v3 = vor.u32 %v4848_v1, %v4436_v63  ;;  %v4438_v26 = vld [vmem:[%s6769_s8 + $0xb0] sm:$0xf0]  ;;  %v934_v4 = vperm.slane %v5653_v47, 2 }
 0x736   :  { %v2354_v12 = vadd.f32 %v2210_v6, %v1450_v58  ;;  %v2355_v19 = vadd.f32 %v2238_v7, %v1478_v5  ;;  %v936_v58 = vperm.slane %v5653_v47, 4  ;;  %v2249_v5 = vpop.f32.mrf.mxu1  ;;  %v4565_v6 = vor.u32 %v4880_v9, %v4564_v2  ;;  %2942 = vmatpush.bf16.msra.mxu1 %v4437_v3 }
 0x737   :  { %v4441_v7 = vor.u32 %v4846_v25, %v4438_v26  ;;  %2984 = vmatpush.bf16.msrb.mxu2 %v4569_v21  ;;  %v1492_v14 = vadd.f32 %v5631_v37, %v934_v4  ;;  %v2250_v61 = vadd.f32 %v2249_v5, %v1694_v20  ;;  %v2279_v37 = vpop.f32.mrf.mxu0 }
 0x738   :  { %v5010_v24 = vpop.eup %5009  ;;  %v4348_v46 = vmul.f32 -1.442695, %v2354_v12  ;;  %v4349_v62 = vmul.f32 -1.442695, %v2355_v19  ;;  %v935_v12 = vperm.slane %v5653_v47, 3  ;;  %v937_v19 = vperm.slane %v5653_v47, 5  ;;  %2956 = vmatpush.bf16.msra.mxu3 %v4565_v6 }
 0x739   :  { %v5012_v49 = vpop.eup %5011  ;;  %v5687_v50 = vadd.f32 1.0, %v5010_v24  ;;  %2970 = vmatpush.bf16.msra.mxu0 %v4441_v7  ;;  %v4548_v24 = vld [vmem:[%s6769_s8 + $0x180] sm:$0xf]  ;;  %v1546_v36 = vadd.f32 %v5639_v40, %v936_v58  ;;  %v1548_v1 = vadd.f32 %v5647_v43, %v936_v58  ;;  %v5807_v25 = vadd.f32 %v5635_v13, %v1492_v14 }
 0x73a   :  { %v5695_v54 = vadd.f32 1.0, %v5012_v49  ;;  %5013 = vpow2.f32 %v4348_v46  ;;  %v4876_v46 = vld [vmem:[%s6769_s8 + $0x18c] sm:$0xf0]  ;;  %v1490_v49 = vadd.f32 %v5623_v31, %v934_v4  ;;  %2943 = vmatpush.bf16.msra.mxu1 %v4421_v29  ;;  %v1518_v0 = vadd.f32 %v5625_v32, %v935_v12 }
 0x73b   :  { %5015 = vrcp.f32 %v5687_v50  ;;  %v4549_v52 = vor.u32 %v4876_v46, %v4548_v24  ;;  %v2383_v60 = vand.u32 2147483648, %v5687_v50  ;;  %v1520_v51 = vadd.f32 %v5633_v38, %v935_v12  ;;  %2985 = vmatpush.bf16.msrb.mxu2 %v4553_v33  ;;  %v4840_v12 = vld [vmem:[%s6769_s8 + $0x6c] sm:$0xf0]  ;;  %v4838_v24 = vld [vmem:[%s6769_s8 + $0x64] sm:$0xf] }
 0x73c   :  { %5017 = vrcp.f32 %v5695_v54  ;;  %v1574_v2 = vadd.f32 %v5641_v41, %v937_v19  ;;  %v5802_v32 = vadd.f32 %v5649_v44, %v937_v19  ;;  %v1504_v3 = vadd.f32 %v5627_v34, %v1490_v49  ;;  %v4532_v19 = vld [vmem:[%s6769_s8 + $0x160] sm:$0xf]  ;;  %v4872_v29 = vld [vmem:[%s6769_s8 + $0x16c] sm:$0xf0] }
 0x73d   :  { %5019 = vpow2.f32 %v4349_v62  ;;  %v4842_v62 = vld [vmem:[%s6769_s8 + $0x84] sm:$0xf]  ;;  %2957 = vmatpush.bf16.msra.mxu3 %v4549_v52  ;;  %v1532_v9 = vadd.f32 %v5629_v35, %v1518_v0  ;;  %v2381_v41 = vand.u32 2147483647, %v5687_v50  ;;  %v5810_v5 = vor.u32 1.1754944e-38, %v2383_v60 }
 0x73e   :  { %v4425_v31 = vor.u32 %v4842_v62, %v4422_v53  ;;  %v2251_v38 = vpop.f32.mrf.mxu1  ;;  %v2396_v34 = vand.u32 2147483647, %v5695_v54  ;;  %v2398_v35 = vand.u32 2147483648, %v5695_v54  ;;  %v1534_v13 = vadd.f32 %v5637_v39, %v1520_v51  ;;  %v4516_v33 = vld [vmem:[%s6769_s8 + $0x140] sm:$0xf] }
 0x73f   :  { %v5818_v7 = vadd.f32 %v5643_v18, %v1546_v36  ;;  %v5832_v39 = vadd.f32 %v5645_v42, %v1574_v2  ;;  %v2252_v18 = vadd.f32 %v2251_v38, %v1694_v20  ;;  %v2280_v16 = vadd.f32 %v2279_v37, %v1695_v27  ;;  %v4406_v42 = vld [vmem:[%s6769_s8 + $0x70] sm:$0xf0]  ;;  %v4870_v27 = vld [vmem:[%s6769_s8 + $0x164] sm:$0xf]  ;;  %v5855_v53 = vpop.f32.mrf.mxu0  ;;  %v4868_v36 = vld [vmem:[%s6769_s8 + $0x14c] sm:$0xf0] }
 0x740   :  { %v5014_v11 = vpop.eup %5013  ;;  %2971 = vmatpush.bf16.msra.mxu0 %v4425_v31  ;;  %v4409_v49 = vor.u32 %v4838_v24, %v4406_v42  ;;  %v5853_v52 = vadd.f32 %v5655_v59, %v1548_v1  ;;  %vm2377_vm7 = vweird.f32 %v5687_v50  ;;  %vm2392_vm11 = vweird.f32 %v5695_v54  ;;  %v4836_v59 = vld [vmem:[%s6769_s8 + $0x4c] sm:$0xf0]  ;;  %v4390_v37 = vld [vmem:[%s6769_s8 + $0x50] sm:$0xf0] }
 0x741   :  { %v5746_v22 = vpop.eup %5015  ;;  %v5748_v23 = vadd.f32 1.0, %v5014_v11  ;;  %v4404_v11 = vld [vmem:[%s6769_s8 + $0x60] sm:$0xf]  ;;  %v4537_v14 = vor.u32 %v4870_v27, %v4534_v55  ;;  %v4389_v31 = vor.u32 %v4836_v59, %v4388_v56  ;;  %v4517_v0 = vor.u32 %v4868_v36, %v4516_v33  ;;  %v4518_v1 = vld [vmem:[%s6769_s8 + $0x150] sm:$0xf0] }
 0x742   :  { %v5757_v47 = vpop.eup %5017  ;;  %v5791_v63 = vmul.f32 %v5746_v22, %v5687_v50  ;;  %v4405_v28 = vor.u32 %v4840_v12, %v4404_v11  ;;  %vm2378_vm10 = vweird.f32 %v5746_v22  ;;  %v5897_v12 = vor.u32 1.1754944e-38, %v2398_v35  ;;  %v4372_v50 = vld [vmem:[%s6769_s8 + $0x20] sm:$0xf] }
 0x743   :  { %v5020_v48 = vpop.eup %5019  ;;  %5021 = vrcp.f32 %v5748_v23  ;;  %v5795_v40 = vmul.f32 %v5757_v47, %v5695_v54  ;;  %vm2393_vm12 = vweird.f32 %v5757_v47  ;;  %2986 = vmatpush.bf16.msrb.mxu2 %v4537_v14  ;;  %vm5907_vm14 = vmor %vm2377_vm7, %vm2378_vm10  ;;  %vm5921_vm15 = vcmp.eq.f32.partialorder %v2381_v41, 8.507059e+37  ;;  %v4832_v41 = vld [vmem:[%s6769_s8 + $0x2c] sm:$0xf0]  ;;  %v4500_v59 = vld [vmem:[%s6769_s8 + $0x120] sm:$0xf] }
 0x744   :  { %v5779_v57 = vadd.f32 1.0, %v5020_v48  ;;  %v2374_v6 = vsub.f32 1.0, %v5791_v63  ;;  %v4533_v48 = vor.u32 %v4872_v29, %v4532_v19  ;;  %2944 = vmatpush.bf16.msra.mxu1 %v4405_v28  ;;  %2972 = vmatpush.bf16.msra.mxu0 %v4409_v49  ;;  %v4866_v63 = vld [vmem:[%s6769_s8 + $0x144] sm:$0xf]  ;;  %vm5929_vm0 = vmor %vm2392_vm11, %vm2393_vm12  ;;  %vm2407_vm1 = vweird.f32 %v5748_v23  ;;  %v4864_v14 = vld [vmem:[%s6769_s8 + $0x12c] sm:$0xf0] }
 0x745   :  { %v2389_v44 = vsub.f32 1.0, %v5795_v40  ;;  %v4373_v56 = vor.u32 %v4832_v41, %v4372_v50  ;;  %vm5998_vm3 = vcmp.eq.f32.partialorder %v2396_v34, 8.507059e+37  ;;  %v4855_v50 = vld [vmem:[%s6769_s8 + $0xec] sm:$0xf]  ;;  %v4478_v41 = vld [vmem:[%s6769_s8 + $0xf8] sm:$0xf0] }
 0x746   :  { %5023 = vrcp.f32 %v5779_v57  ;;  %2958 = vmatpush.bf16.msra.mxu3 %v4533_v48  ;;  %v2375_v38 = vmul.f32 %v5746_v22, %v2374_v6  ;;  %v2428_v19 = vand.u32 2147483648, %v5779_v57  ;;  %v2426_v28 = vand.u32 2147483647, %v5779_v57  ;;  %v2305_v27 = vpop.f32.mrf.mxu1 }
 0x747   :  { %v2390_v35 = vmul.f32 %v5757_v47, %v2389_v44  ;;  %v2335_v36 = vpop.f32.mrf.mxu0  ;;  %vm2422_vm8 = vweird.f32 %v5779_v57 }
 0x748   :  { %2945 = vmatpush.bf16.msra.mxu1 %v4389_v31  ;;  %v5960_v31 = vadd.f32 %v5657_v17, %v5802_v32  ;;  %v4862_v17 = vld [vmem:[%s6769_s8 + $0x124] sm:$0xf]  ;;  %vm6024_vm6 = vcmp.eq.f32.partialorder %v2426_v28, 8.507059e+37 }
 0x749   :  { %v5829_v21 = vpop.eup %5021 }
 0x74a   :  { %v2403_v51 = vmul.f32 %v5829_v21, %v5748_v23  ;;  %2959 = vmatpush.bf16.msra.mxu3 %v4517_v0  ;;  %vm2408_vm13 = vweird.f32 %v5829_v21 }
 0x74b   :  { %v2263_v26 = vpop.f32.mrf.mxu3  ;;  %v2291_v4 = vpop.f32.mrf.mxu2  ;;  %vm5946_vm2 = vmor %vm2407_vm1, %vm2408_vm13 }
 0x74c   :  { %v2264_v43 = vadd.f32 %v2263_v26, %v2250_v61  ;;  %v2292_v58 = vadd.f32 %v2291_v4, %v2278_v30  ;;  %v5847_v46 = vpop.eup %5023  ;;  %v4834_v61 = vld [vmem:[%s6769_s8 + $0x44] sm:$0xf]  ;;  %v4521_v4 = vor.u32 %v4866_v63, %v4518_v1  ;;  %2946 = vmatpush.bf16.msra.mxu1 %v4373_v56  ;;  %v4356_v63 = vld [vmem:[%s6769_s8] sm:$0xf]  ;;  %v4828_v1 = vld [vmem:[%s6769_s8 + $0xc] sm:$0xf0] }
 0x74d   :  { %v2418_v2 = vmul.f32 %v5847_v46, %v5779_v57  ;;  %v4393_v26 = vor.u32 %v4834_v61, %v4390_v37  ;;  %v4502_v37 = vld [vmem:[%s6769_s8 + $0x130] sm:$0xf0]  ;;  %vm2423_vm5 = vweird.f32 %v5847_v46  ;;  %v4556_v57 = vld [vmem:[%s6769_s8 + $0x188] sm:$0xf] }
 0x74e   :  { %v2432_v8 = vadd.f32 %v2264_v43, %v1504_v3  ;;  %v2433_v10 = vadd.f32 %v2292_v58, %v1532_v9  ;;  %v1697_v43 = vperm.slane %v5651_v45, 5  ;;  %v1696_v58 = vperm.slane %v5651_v45, 4  ;;  %2987 = vmatpush.bf16.msrb.mxu2 %v4521_v4  ;;  %v4860_v4 = vld [vmem:[%s6769_s8 + $0x10c] sm:$0xf0]  ;;  %vm6068_vm9 = vmor %vm2422_vm8, %vm2423_vm5  ;;  %v2307_v55 = vpop.f32.mrf.mxu1  ;;  %v4879_v45 = vld [vmem:[%s6769_s8 + $0x1ac] sm:$0xf] }
 0x74f   :  { %2973 = vmatpush.bf16.msra.mxu0 %v4393_v26  ;;  %v4484_v26 = vld [vmem:[%s6769_s8 + $0x100] sm:$0xf] }
 0x750   :  { %v4350_v62 = vmul.f32 -1.442695, %v2432_v8  ;;  %v4351_v20 = vmul.f32 -1.442695, %v2433_v10  ;;  %v2413_v8 = vand.u32 2147483648, %v5748_v23  ;;  %v5966_v33 = vadd.f32 %v5855_v53, %v1697_v43 }
 0x751   :  { %v5981_v32 = vadd.f32 %v2305_v27, %v1696_v58  ;;  %v5984_v53 = vadd.f32 %v5757_v47, %v2390_v35  ;;  %v6013_v54 = vadd.f32 %v2335_v36, %v1697_v43  ;;  %v4358_v43 = vld [vmem:[%s6769_s8 + $0x10] sm:$0xf0]  ;;  %v4887_v36 = vld [vmem:[%s6769_s8 + $0x1ec] sm:$0xf] }
 0x752   :  { %5025 = vpow2.f32 %v4350_v62  ;;  %v5934_v44 = vor.u32 1.1754944e-38, %v2413_v8 }
 0x753   :  { %5027 = vpow2.f32 %v4351_v20  ;;  %v2265_v30 = vpop.f32.mrf.mxu3  ;;  %v2293_v60 = vpop.f32.mrf.mxu2  ;;  %v5917_v20 = vadd.f32 %v5746_v22, %v2375_v38  ;;  %v4826_v38 = vld [vmem:[%s6769_s8 + $0x4] sm:$0xf] }
 0x754   :  { %v2266_v3 = vadd.f32 %v2265_v30, %v2252_v18  ;;  %v2294_v9 = vadd.f32 %v2293_v60, %v2280_v16  ;;  %v2404_v18 = vsub.f32 1.0, %v2403_v51  ;;  %v2411_v16 = vand.u32 2147483647, %v5748_v23  ;;  %v4830_v30 = vld [vmem:[%s6769_s8 + $0x24] sm:$0xf] }
 0x755   :  { %v5950_v23 = vor.u32 1.1754944e-38, %v2428_v19  ;;  %v4374_v60 = vld [vmem:[%s6769_s8 + $0x30] sm:$0xf0]  ;;  %v2380_v34 = vsel %vm5907_vm14, %v5746_v22, %v5917_v20  ;;  %v4858_v19 = vld [vmem:[%s6769_s8 + $0x104] sm:$0xf]  ;;  %v4361_v28 = vor.u32 %v4826_v38, %v4358_v43  ;;  %v6157_v51 = vadd.f32 %v2307_v55, %v1696_v58 }
 0x756   :  { %v2434_v10 = vadd.f32 %v2266_v3, %v5807_v25  ;;  %v2435_v11 = vadd.f32 %v2294_v9, %v1534_v13  ;;  %v2419_v13 = vsub.f32 1.0, %v2418_v2  ;;  %v2405_v61 = vmul.f32 %v5829_v21, %v2404_v18  ;;  %v4486_v22 = vld [vmem:[%s6769_s8 + $0x110] sm:$0xf0]  ;;  %v4889_v20 = vld [vmem:[%s6769_s8 + $0x1f4] sm:$0xf0] }
 0x757   :  { %v4501_v2 = vor.u32 %v4864_v14, %v4500_v59  ;;  %v4377_v3 = vor.u32 %v4830_v30, %v4374_v60  ;;  %v4505_v9 = vor.u32 %v4862_v17, %v4502_v37  ;;  %vm6019_vm4 = vcmp.eq.f32.partialorder %v2411_v16, 8.507059e+37  ;;  %v4590_v43 = vld [vmem:[%s6769_s8 + $0x1d8] sm:$0xf0] }
 0x758   :  { %v5026_v6 = vpop.eup %5025  ;;  %v4352_v29 = vmul.f32 -1.442695, %v2434_v10  ;;  %v4353_v24 = vmul.f32 -1.442695, %v2435_v11  ;;  %v2420_v0 = vmul.f32 %v5847_v46, %v2419_v13  ;;  %v4357_v11 = vor.u32 %v4828_v1, %v4356_v63  ;;  %v4460_v1 = vld [vmem:[%s6769_s8 + $0xc8] sm:$0xf] }
 0x759   :  { %v5028_v42 = vpop.eup %5027  ;;  %v5914_v62 = vadd.f32 1.0, %v5026_v6  ;;  %v6038_v18 = vadd.f32 %v5829_v21, %v2405_v61  ;;  %2960 = vmatpush.bf16.msra.mxu3 %v4501_v2  ;;  %2974 = vmatpush.bf16.msra.mxu0 %v4377_v3  ;;  %v4485_v16 = vor.u32 %v4860_v4, %v4484_v26  ;;  %v4476_v6 = vld [vmem:[%s6769_s8 + $0xe8] sm:$0xf]  ;;  %v4489_v13 = vor.u32 %v4858_v19, %v4486_v22  ;;  %v4606_v61 = vld [vmem:[%s6769_s8 + $0x1f8] sm:$0xf0] }
 0x75a   :  { %v5942_v49 = vadd.f32 1.0, %v5028_v42  ;;  %5029 = vpow2.f32 %v4352_v29  ;;  %v4857_v29 = vld [vmem:[%s6769_s8 + $0xf4] sm:$0xf0]  ;;  %v6050_v35 = vadd.f32 %v5847_v46, %v2420_v0  ;;  %2988 = vmatpush.bf16.msrb.mxu2 %v4505_v9  ;;  %2947 = vmatpush.bf16.msra.mxu1 %v4357_v11  ;;  %v4481_v14 = vor.u32 %v4855_v50, %v4478_v41  ;;  %v4851_v9 = vld [vmem:[%s6769_s8 + $0xcc] sm:$0xf] }
 0x75b   :  { %5031 = vrcp.f32 %v5914_v62  ;;  %v4477_v42 = vor.u32 %v4857_v29, %v4476_v6  ;;  %v2463_v30 = vand.u32 2147483648, %v5914_v62  ;;  %v6086_v0 = vsel %vm5921_vm15, %v5810_v5, %v2380_v34  ;;  %v4853_v2 = vld [vmem:[%s6769_s8 + $0xd4] sm:$0xf0]  ;;  %v4588_v5 = vld [vmem:[%s6769_s8 + $0x1c8] sm:$0xf] }
 0x75c   :  { %5033 = vrcp.f32 %v5942_v49  ;;  %v2395_v37 = vsel %vm5929_vm0, %v5757_v47, %v5984_v53  ;;  %v4609_v63 = vor.u32 %v4887_v36, %v4606_v61  ;;  %v2410_v47 = vsel %vm5946_vm2, %v5829_v21, %v6038_v18  ;;  %v4885_v53 = vld [vmem:[%s6769_s8 + $0x1d4] sm:$0xf0]  ;;  %v4462_v26 = vld [vmem:[%s6769_s8 + $0xd8] sm:$0xf0]  ;;  %v4883_v11 = vld [vmem:[%s6769_s8 + $0x1cc] sm:$0xf] }
 0x75d   :  { %5035 = vpow2.f32 %v4353_v24  ;;  %v4604_v24 = vld [vmem:[%s6769_s8 + $0x1e8] sm:$0xf]  ;;  %2961 = vmatpush.bf16.msra.mxu3 %v4485_v16  ;;  %2975 = vmatpush.bf16.msra.mxu0 %v4361_v28  ;;  %v4461_v40 = vor.u32 %v4853_v2, %v4460_v1  ;;  %v2425_v21 = vsel %vm6068_vm9, %v5847_v46, %v6050_v35  ;;  %v4589_v34 = vor.u32 %v4885_v53, %v4588_v5  ;;  %v4849_v16 = vld [vmem:[%s6769_s8 + $0xb4] sm:$0xf0]  ;;  %v4574_v58 = vld [vmem:[%s6769_s8 + $0x1b8] sm:$0xf0] }
 0x75e   :  { %v4605_v59 = vor.u32 %v4889_v20, %v4604_v24  ;;  %2996 = vmatpush.bf16.msrb.mxu1 %v4477_v42  ;;  %2989 = vmatpush.bf16.msrb.mxu2 %v4489_v13  ;;  %v4465_v22 = vor.u32 %v4851_v9, %v4462_v26  ;;  %v4593_v18 = vor.u32 %v4883_v11, %v4590_v43  ;;  %v4444_v46 = vld [vmem:[%s6769_s8 + $0xa8] sm:$0xf]  ;;  %v6138_v28 = vor.u32 1.1754944e-38, %v2463_v30  ;;  %v4881_v35 = vld [vmem:[%s6769_s8 + $0x1b4] sm:$0xf0] }
 0x75f   :  { %v2400_v29 = vsel %vm5998_vm3, %v5897_v12, %v2395_v37  ;;  %v4445_v24 = vor.u32 %v4849_v16, %v4444_v46  ;;  %v4847_v13 = vld [vmem:[%s6769_s8 + $0xac] sm:$0xf]  ;;  %vm2457_vm7 = vweird.f32 %v5914_v62  ;;  %v6162_v12 = vsel %vm6019_vm4, %v5934_v44, %v2410_v47  ;;  %v4446_v20 = vld [vmem:[%s6769_s8 + $0xb8] sm:$0xf0]  ;;  %v4428_v50 = vld [vmem:[%s6769_s8 + $0x88] sm:$0xf] }
 0x760   :  { %v5030_v25 = vpop.eup %5029  ;;  %v6167_v42 = vsel %vm6024_vm6, %v5950_v23, %v2425_v21  ;;  %vm2472_vm10 = vweird.f32 %v5942_v49  ;;  %v4449_v23 = vor.u32 %v4847_v13, %v4446_v20  ;;  %v4845_v41 = vld [vmem:[%s6769_s8 + $0x94] sm:$0xf0]  ;;  %v4577_v30 = vor.u32 %v4879_v45, %v4574_v58  ;;  %v4843_v37 = vld [vmem:[%s6769_s8 + $0x8c] sm:$0xf] }
 0x761   :  { %v6062_v27 = vpop.eup %5031  ;;  %v6064_v56 = vadd.f32 1.0, %v5030_v25  ;;  %3010 = vmatpush.bf16.msrb.mxu3 %v4605_v59  ;;  %3024 = vmatpush.bf16.msrb.mxu0 %v4481_v14  ;;  %v4572_v25 = vld [vmem:[%s6769_s8 + $0x1a8] sm:$0xf]  ;;  %v4429_v1 = vor.u32 %v4845_v41, %v4428_v50  ;;  %v4875_v5 = vld [vmem:[%s6769_s8 + $0x18c] sm:$0xf] }
 0x762   :  { %v6079_v60 = vpop.eup %5033  ;;  %v2453_v17 = vmul.f32 %v6062_v27, %v5914_v62  ;;  %3038 = vmatpush.bf16.msra.mxu2 %v4609_v63  ;;  %2997 = vmatpush.bf16.msrb.mxu1 %v4461_v40  ;;  %v4573_v10 = vor.u32 %v4881_v35, %v4572_v25  ;;  %vm2458_vm11 = vweird.f32 %v6062_v27  ;;  %v4430_v63 = vld [vmem:[%s6769_s8 + $0x98] sm:$0xf0]  ;;  %v2461_v9 = vand.u32 2147483647, %v5914_v62  ;;  %v4839_v41 = vld [vmem:[%s6769_s8 + $0x6c] sm:$0xf] }
 0x763   :  { %v5036_v48 = vpop.eup %5035  ;;  %v6103_v3 = vmul.f32 %v6079_v60, %v5942_v49  ;;  %5037 = vrcp.f32 %v6064_v56  ;;  %vm2487_vm12 = vweird.f32 %v6064_v56  ;;  %vm2473_vm13 = vweird.f32 %v6079_v60  ;;  %vm6219_vm14 = vmor %vm2457_vm7, %vm2458_vm11  ;;  %v4869_v53 = vld [vmem:[%s6769_s8 + $0x154] sm:$0xf0]  ;;  %v4863_v25 = vld [vmem:[%s6769_s8 + $0x12c] sm:$0xf] }
 0x764   :  { %v2454_v4 = vsub.f32 1.0, %v2453_v17  ;;  %v6119_v38 = vadd.f32 1.0, %v5036_v48  ;;  %v4877_v17 = vld [vmem:[%s6769_s8 + $0x194] sm:$0xf0]  ;;  %v4558_v48 = vld [vmem:[%s6769_s8 + $0x198] sm:$0xf0]  ;;  %v4433_v40 = vor.u32 %v4843_v37, %v4430_v63  ;;  %vm6253_vm3 = vmor %vm2472_vm10, %vm2473_vm13 }
 0x765   :  { %v2469_v19 = vsub.f32 1.0, %v6103_v3  ;;  %3011 = vmatpush.bf16.msrb.mxu3 %v4589_v34  ;;  %3025 = vmatpush.bf16.msrb.mxu0 %v4465_v22  ;;  %v4557_v2 = vor.u32 %v4877_v17, %v4556_v57  ;;  %v4561_v55 = vor.u32 %v4875_v5, %v4558_v48  ;;  %v2491_v21 = vand.u32 2147483647, %v6064_v56  ;;  %v4414_v57 = vld [vmem:[%s6769_s8 + $0x78] sm:$0xf0] }
 0x766   :  { %v2455_v6 = vmul.f32 %v6062_v27, %v2454_v4  ;;  %5039 = vrcp.f32 %v6119_v38  ;;  %3039 = vmatpush.bf16.msra.mxu2 %v4593_v18  ;;  %2998 = vmatpush.bf16.msrb.mxu1 %v4445_v24  ;;  %vm2502_vm15 = vweird.f32 %v6119_v38  ;;  %vm2462_vm0 = vcmp.eq.f32.partialorder %v2461_v9, 8.507059e+37  ;;  %v4542_v63 = vld [vmem:[%s6769_s8 + $0x178] sm:$0xf0]  ;;  %v4524_v5 = vld [vmem:[%s6769_s8 + $0x148] sm:$0xf] }
 0x767   :  { %vm6239_vm2 = vcmp.eq.f32.partialorder %v2491_v21, 8.507059e+37  ;;  %v2478_v35 = vand.u32 2147483648, %v5942_v49  ;;  %v2506_v50 = vand.u32 2147483647, %v6119_v38  ;;  %v2508_v37 = vand.u32 2147483648, %v6119_v38 }
 0x768   :  { %v2456_v59 = vadd.f32 %v6062_v27, %v2455_v6  ;;  %v2476_v6 = vand.u32 2147483647, %v5942_v49  ;;  %v4412_v49 = vld [vmem:[%s6769_s8 + $0x68] sm:$0xf]  ;;  %v4835_v9 = vld [vmem:[%s6769_s8 + $0x4c] sm:$0xf]  ;;  %v4525_v18 = vor.u32 %v4869_v53, %v4524_v5 }
 0x769   :  { %v6190_v14 = vpop.eup %5037  ;;  %3012 = vmatpush.bf16.msrb.mxu3 %v4573_v10  ;;  %3026 = vmatpush.bf16.msrb.mxu0 %v4449_v23  ;;  %v4873_v10 = vld [vmem:[%s6769_s8 + $0x174] sm:$0xf0]  ;;  %v5089_v23 = vld [vmem:[%s6762_s1] sm:$0xff]  ;;  %v2509_v48 = vor.u32 1.1754944e-38, %v2508_v37  ;;  %v4867_v21 = vld [vmem:[%s6769_s8 + $0x14c] sm:$0xf] }
 0x76a   :  { %3040 = vmatpush.bf16.msra.mxu2 %v4577_v30  ;;  %2999 = vmatpush.bf16.msrb.mxu1 %v4429_v1  ;;  %vm2488_vm1 = vweird.f32 %v6190_v14  ;;  %vm2477_vm6 = vcmp.eq.f32.partialorder %v2476_v6, 8.507059e+37  ;;  %vm2507_vm9 = vcmp.eq.f32.partialorder %v2506_v50, 8.507059e+37  ;;  %v4865_v6 = vld [vmem:[%s6769_s8 + $0x134] sm:$0xf0]  ;;  %v4492_v50 = vld [vmem:[%s6769_s8 + $0x108] sm:$0xf] }
 0x76b   :  { %v2319_v44 = vpop.f32.mrf.mxu3  ;;  %v2347_v8 = vpop.f32.mrf.mxu2  ;;  %vm6262_vm4 = vmor %vm2487_vm12, %vm2488_vm1 }
 0x76c   :  { %v2320_v36 = vadd.f32 %v2319_v44, %v5981_v32  ;;  %v2348_v61 = vadd.f32 %v2347_v8, %v5966_v33  ;;  %v2470_v32 = vmul.f32 %v6079_v60, %v2469_v19  ;;  %v2483_v33 = vmul.f32 %v6190_v14, %v6064_v56  ;;  %v6224_v26 = vpop.eup %5039 }
 0x76d   :  { %v2498_v34 = vmul.f32 %v6224_v26, %v6119_v38  ;;  %3013 = vmatpush.bf16.msrb.mxu3 %v4557_v2  ;;  %3027 = vmatpush.bf16.msrb.mxu0 %v4433_v40  ;;  %vm2503_vm5 = vweird.f32 %v6224_v26  ;;  %v2479_v8 = vor.u32 1.1754944e-38, %v2478_v35  ;;  %v4837_v38 = vld [vmem:[%s6769_s8 + $0x54] sm:$0xf0]  ;;  %v4510_v35 = vld [vmem:[%s6769_s8 + $0x138] sm:$0xf0] }
 0x76e   :  { %v2512_v3 = vmul.f32 %v6086_v0, %v2320_v36  ;;  %v2513_v47 = vmul.f32 %v2400_v29, %v2348_v61  ;;  %v2484_v4 = vsub.f32 1.0, %v2483_v33  ;;  %v2460_v0 = vsel %vm6219_vm14, %v6062_v27, %v2456_v59  ;;  %3041 = vmatpush.bf16.msra.mxu2 %v4561_v55  ;;  %v4871_v59 = vld [vmem:[%s6769_s8 + $0x16c] sm:$0xf]  ;;  %vm6307_vm8 = vmor %vm2502_vm15, %vm2503_vm5 }
 0x76f   :  { %v2493_v27 = vand.u32 2147483648, %v6064_v56  ;;  %v2499_v19 = vsub.f32 1.0, %v2498_v34  ;;  %v2465_v22 = vsel %vm2462_vm0, %v6138_v28, %v2460_v0  ;;  %v2471_v16 = vadd.f32 %v6079_v60, %v2470_v32  ;;  %v4841_v56 = vld [vmem:[%s6769_s8 + $0x74] sm:$0xf0]  ;;  %v4398_v0 = vld [vmem:[%s6769_s8 + $0x58] sm:$0xf0] }
 0x770   :  { %v2516_v11 = vadd.f32 %v2512_v3, %v5818_v7  ;;  %v2517_v62 = vadd.f32 %v2513_v47, %v5832_v39  ;;  %v2485_v43 = vmul.f32 %v6190_v14, %v2484_v4  ;;  %v5090_v3 = vld [vmem:[%s6762_s1 + $0x8] sm:$0xff]  ;;  %v4413_v40 = vor.u32 %v4841_v56, %v4412_v49  ;;  %v4526_v34 = vld [vmem:[%s6769_s8 + $0x158] sm:$0xf0]  ;;  %v5091_v56 = vld [vmem:[%s6762_s1 + $0x10] sm:$0xff] }
 0x771   :  { %v2500_v29 = vmul.f32 %v6224_v26, %v2499_v19  ;;  %v2475_v20 = vsel %vm6253_vm3, %v6079_v60, %v2471_v16  ;;  %v4540_v60 = vld [vmem:[%s6769_s8 + $0x168] sm:$0xf]  ;;  %v4529_v16 = vor.u32 %v4867_v21, %v4526_v34 }
 0x772   :  { %5041 = vtanh.f32 %v2516_v11  ;;  %v2486_v46 = vadd.f32 %v6190_v14, %v2485_v43  ;;  %v2480_v30 = vsel %vm2477_vm6, %v2479_v8, %v2475_v20  ;;  %v4541_v55 = vor.u32 %v4873_v10, %v4540_v60  ;;  %3000 = vmatpush.bf16.msrb.mxu1 %v4413_v40  ;;  %v4364_v60 = vld [vmem:[%s6769_s8 + $0x8] sm:$0xf]  ;;  %v4829_v10 = vld [vmem:[%s6769_s8 + $0x14] sm:$0xf0] }
 0x773   :  { %5043 = vtanh.f32 %v2517_v62  ;;  %v2321_v7 = vpop.f32.mrf.mxu3  ;;  %v2349_v39 = vpop.f32.mrf.mxu2  ;;  %v2525_v2 = vsub.f32 1.0, %v2480_v30  ;;  %v2533_v47 = vmul.f32 %v5090_v3, %v2480_v30  ;;  %v4417_v11 = vor.u32 %v4839_v41, %v4414_v57  ;;  %v4861_v41 = vld [vmem:[%s6769_s8 + $0x114] sm:$0xf0]  ;;  %v4827_v57 = vld [vmem:[%s6769_s8 + $0xc] sm:$0xf] }
 0x774   :  { %v2322_v24 = vadd.f32 %v2321_v7, %v6157_v51  ;;  %v2350_v28 = vadd.f32 %v2349_v39, %v6013_v54  ;;  %v2494_v54 = vor.u32 1.1754944e-38, %v2493_v27  ;;  %v2524_v51 = vsub.f32 1.0, %v2465_v22  ;;  %v4380_v27 = vld [vmem:[%s6769_s8 + $0x28] sm:$0xf]  ;;  %3014 = vmatpush.bf16.msrb.mxu3 %v4541_v55  ;;  %v4833_v7 = vld [vmem:[%s6769_s8 + $0x34] sm:$0xf0] }
 0x775   :  { %v2490_v44 = vsel %vm6262_vm4, %v6190_v14, %v2486_v46  ;;  %v4545_v62 = vor.u32 %v4871_v59, %v4542_v63  ;;  %v4508_v39 = vld [vmem:[%s6769_s8 + $0x128] sm:$0xf]  ;;  %3028 = vmatpush.bf16.msrb.mxu0 %v4417_v11  ;;  %v4401_v46 = vor.u32 %v4835_v9, %v4398_v0  ;;  %v4365_v37 = vor.u32 %v4829_v10, %v4364_v60 }
 0x776   :  { %v2514_v45 = vmul.f32 %v6162_v12, %v2322_v24  ;;  %v2515_v58 = vmul.f32 %v6167_v42, %v2350_v28  ;;  %v2532_v12 = vmul.f32 %v5089_v23, %v2465_v22  ;;  %v2501_v42 = vadd.f32 %v6224_v26, %v2500_v29  ;;  %v4831_v29 = vld [vmem:[%s6769_s8 + $0x2c] sm:$0xf]  ;;  %v4382_v24 = vld [vmem:[%s6769_s8 + $0x38] sm:$0xf0] }
 0x777   :  { %v2495_v32 = vsel %vm6239_vm2, %v2494_v54, %v2490_v44  ;;  %3042 = vmatpush.bf16.msra.mxu2 %v4545_v62  ;;  %v4509_v8 = vor.u32 %v4865_v6, %v4508_v39  ;;  %v4493_v63 = vor.u32 %v4861_v41, %v4492_v50 }
 0x778   :  { %v5042_v14 = vpop.eup %5041  ;;  %v2518_v36 = vadd.f32 %v2514_v45, %v5853_v52  ;;  %v2519_v61 = vadd.f32 %v2515_v58, %v5960_v31  ;;  %v4396_v52 = vld [vmem:[%s6769_s8 + $0x48] sm:$0xf]  ;;  %v2505_v1 = vsel %vm6307_vm8, %v6224_v26, %v2501_v42  ;;  %v2526_v28 = vsub.f32 1.0, %v2495_v32  ;;  %v5092_v58 = vld [vmem:[%s6762_s1 + $0x18] sm:$0xff]  ;;  %3015 = vmatpush.bf16.msrb.mxu3 %v4525_v18  ;;  %s5340_s1 = smov [#allocation17]  }
 0x779   :  { %v5044_v31 = vpop.eup %5043  ;;  %v2528_v33 = vmul.f32 %v5042_v14, %v2524_v51  ;;  %v4397_v43 = vor.u32 %v4837_v38, %v4396_v52  ;;  %v2510_v19 = vsel %vm2507_vm9, %v2509_v48, %v2505_v1  ;;  %v4381_v51 = vor.u32 %v4833_v7, %v4380_v27  ;;  %3029 = vmatpush.bf16.msrb.mxu0 %v4401_v46  ;;  %v4366_v14 = vld [vmem:[%s6769_s8 + $0x18] sm:$0xf0]  ;;  %s3479_s23 = sshll.u32 %s5340_s1, 4  ;;  %s3480_s23 = int_to_ptr.vmem [resolvable:$true] %s3479_s23 }
 0x77a   :  { %5045 = vtanh.f32 %v2518_v36  ;;  %v2529_v4 = vmul.f32 %v5044_v31, %v2525_v2  ;;  %v2527_v54 = vsub.f32 1.0, %v2510_v19  ;;  %v2534_v45 = vmul.f32 %v5091_v56, %v2495_v32  ;;  %v4859_v36 = vld [vmem:[%s6769_s8 + $0x10c] sm:$0xf] }
 0x77b   :  { %5047 = vtanh.f32 %v2519_v61  ;;  %v2536_v26 = vadd.f32 %v2532_v12, %v2528_v33  ;;  %3001 = vmatpush.bf16.msrb.mxu1 %v4397_v43  ;;  %v2535_v44 = vmul.f32 %v5092_v58, %v2510_v19  ;;  %3043 = vmatpush.bf16.msra.mxu2 %v4529_v16  ;;  %v4385_v12 = vor.u32 %v4831_v29, %v4382_v24  ;;  %v4494_v61 = vld [vmem:[%s6769_s8 + $0x118] sm:$0xf0]  ;;  %v6401_v33 = vld [vmem:[#allocation15 + $0x16] sm:$0xf] }
 0x77c   :  { %v2537_v22 = vadd.f32 %v2533_v47, %v2529_v4  ;;  %v4513_v42 = vor.u32 %v4863_v25, %v4510_v35  ;;  %3016 = vmatpush.bf16.msrb.mxu3 %v4509_v8  ;;  %v4369_v31 = vor.u32 %v4827_v57, %v4366_v14  ;;  %v4497_v32 = vor.u32 %v4859_v36, %v4494_v61 }
 0x77d   :  { %3469 = vst [vmem:[#allocation17] sm:$0xff] %v2536_v26  ;;  %3030 = vmatpush.bf16.msrb.mxu0 %v4385_v12  ;;  %v2612_v38 = vperm.slane %v6401_v33, 0  ;;  %v2613_v5 = vperm.slane %v6401_v33, 1  ;;  %v2614_v18 = vperm.slane %v6401_v33, 2  ;;  %v2615_v7 = vperm.slane %v6401_v33, 3  ;;  %v3335_v33 = vld [vmem:[%s6770_s9 + $0xe8] sm:$0xff] }
 0x77e   :  { %3470 = vst [vmem:[#allocation17 + $0x8] sm:$0xff] %v2537_v22 }
 0x77f   :  { %3002 = vmatpush.bf16.msrb.mxu1 %v4381_v51  ;;  %3044 = vmatpush.bf16.msra.mxu2 %v4513_v42 }
 0x780   :  { %v5046_v13 = vpop.eup %5045  ;;  %3017 = vmatpush.bf16.msrb.mxu3 %v4493_v63 }
 0x781   :  { %v5048_v20 = vpop.eup %5047  ;;  %v2530_v49 = vmul.f32 %v5046_v13, %v2526_v28  ;;  %3031 = vmatpush.bf16.msrb.mxu0 %v4369_v31 }
 0x782   :  { %v2531_v23 = vmul.f32 %v5048_v20, %v2527_v54 }
 0x783   :  { %v2538_v59 = vadd.f32 %v2534_v45, %v2530_v49  ;;  %3003 = vmatpush.bf16.msrb.mxu1 %v4365_v37  ;;  %3045 = vmatpush.bf16.msra.mxu2 %v4497_v32 }
 0x784   :  { %v2539_v30 = vadd.f32 %v2535_v44, %v2531_v23 }
 0x785   :  { %v2544_v17 = vpack.c.bf16 %v2538_v59, %v2536_v26  ;;  %3471 = vst [vmem:[#allocation17 + $0x10] sm:$0xff] %v2538_v59 }
 0x786   :  { %v2545_v52 = vpack.c.bf16 %v2539_v30, %v2537_v22  ;;  %3472 = vst [vmem:[#allocation17 + $0x18] sm:$0xff] %v2539_v30 }
 0x787   :  { %2948 = vmatmul.bf16.vlgmr.msra.gmra.mxu1 %v2544_v17  ;;  %2976 = vmatmul.bf16.vlgmr.msra.gmra.mxu0 %v2544_v17  ;;  %3487 = dma.vmem_to_hbm [thread:$0]  %s3480_s23, 512, %s3482_s18, [#allocation5], %s5341_s24, %s5341_s24, %s5342_s25  }
 0x788   :  { %2962 = vmatmul.bf16.vlgmr.msra.gmra.mxu3 %v2545_v52  ;;  %2990 = vmatmul.bf16.vlgmr.msrb.gmra.mxu2 %v2545_v52 }
 0x797   :  { %3004 = vmatmul.bf16.vlgmr.msrb.gmra.mxu1 %v2544_v17  ;;  %3032 = vmatmul.bf16.vlgmr.msrb.gmra.mxu0 %v2544_v17 }
 0x798   :  { %3018 = vmatmul.bf16.vlgmr.msrb.gmra.mxu3 %v2545_v52  ;;  %3046 = vmatmul.bf16.vlgmr.msra.gmra.mxu2 %v2545_v52 }
 0x804   :  { %v2949_v1 = vpop.f32.mrf.mxu1  ;;  %v2977_v2 = vpop.f32.mrf.mxu0 }
 0x805   :  { %v2950_v48 = vadd.f32 %v2949_v1, %v2612_v38  ;;  %v2978_v3 = vadd.f32 %v2977_v2, %v2613_v5 }
 0x80b   :  { %v2963_v47 = vpop.f32.mrf.mxu3  ;;  %v2991_v40 = vpop.f32.mrf.mxu2 }
 0x80c   :  { %v6405_v53 = vadd.f32 %v2963_v47, %v2950_v48  ;;  %v6407_v9 = vadd.f32 %v2991_v40, %v2978_v3  ;;  %v2951_v26 = vpop.f32.mrf.mxu1  ;;  %v2979_v4 = vpop.f32.mrf.mxu0 }
 0x80d   :  { %v2952_v21 = vadd.f32 %v2951_v26, %v2612_v38  ;;  %v2980_v34 = vadd.f32 %v2979_v4, %v2613_v5 }
 0x80e   :  { %v4610_v55 = vmul.f32 -1.442695, %v6405_v53  ;;  %v4611_v0 = vmul.f32 -1.442695, %v6407_v9 }
 0x810   :  { %5049 = vpow2.f32 %v4610_v55 }
 0x811   :  { %5051 = vpow2.f32 %v4611_v0 }
 0x813   :  { %v2965_v11 = vpop.f32.mrf.mxu3  ;;  %v2993_v62 = vpop.f32.mrf.mxu2 }
 0x814   :  { %v6411_v43 = vadd.f32 %v2965_v11, %v2952_v21  ;;  %v6413_v27 = vadd.f32 %v2993_v62, %v2980_v34  ;;  %v3005_v6 = vpop.f32.mrf.mxu1  ;;  %v3033_v29 = vpop.f32.mrf.mxu0 }
 0x815   :  { %v3006_v28 = vadd.f32 %v3005_v6, %v2614_v18  ;;  %v3034_v25 = vadd.f32 %v3033_v29, %v2615_v7 }
 0x816   :  { %v5050_v19 = vpop.eup %5049  ;;  %v4614_v22 = vmul.f32 -1.442695, %v6411_v43  ;;  %v4615_v16 = vmul.f32 -1.442695, %v6413_v27 }
 0x817   :  { %v5052_v39 = vpop.eup %5051  ;;  %v3076_v46 = vadd.f32 1.0, %v5050_v19 }
 0x818   :  { %v3077_v24 = vadd.f32 1.0, %v5052_v39  ;;  %5053 = vpow2.f32 %v4614_v22 }
 0x819   :  { %5055 = vrcp.f32 %v3076_v46  ;;  %v3093_v10 = vand.u32 2147483647, %v3076_v46  ;;  %v3095_v50 = vand.u32 2147483648, %v3076_v46  ;;  %vm3089_vm7 = vweird.f32 %v3076_v46 }
 0x81a   :  { %5057 = vrcp.f32 %v3077_v24  ;;  %v3108_v41 = vand.u32 2147483647, %v3077_v24  ;;  %v3110_v14 = vand.u32 2147483648, %v3077_v24  ;;  %vm3104_vm12 = vweird.f32 %v3077_v24 }
 0x81b   :  { %5059 = vpow2.f32 %v4615_v16  ;;  %v3019_v35 = vpop.f32.mrf.mxu3  ;;  %v3047_v13 = vpop.f32.mrf.mxu2  ;;  %vm6431_vm11 = vcmp.eq.f32.partialorder %v3093_v10, 8.507059e+37  ;;  %v3096_v32 = vor.u32 1.1754944e-38, %v3095_v50 }
 0x81c   :  { %v6419_v54 = vadd.f32 %v3019_v35, %v3006_v28  ;;  %v6421_v51 = vadd.f32 %v3047_v13, %v3034_v25  ;;  %v3007_v12 = vpop.f32.mrf.mxu1  ;;  %v3035_v17 = vpop.f32.mrf.mxu0  ;;  %vm6435_vm14 = vcmp.eq.f32.partialorder %v3108_v41, 8.507059e+37  ;;  %v3111_v48 = vor.u32 1.1754944e-38, %v3110_v14  ;;  %v3319_v41 = vld [vmem:[%s6770_s9 + $0x68] sm:$0xff] }
 0x81d   :  { %v3008_v30 = vadd.f32 %v3007_v12, %v2614_v18  ;;  %v3036_v47 = vadd.f32 %v3035_v17, %v2615_v7 }
 0x81e   :  { %v5054_v20 = vpop.eup %5053  ;;  %v4612_v49 = vmul.f32 -1.442695, %v6419_v54  ;;  %v4613_v58 = vmul.f32 -1.442695, %v6421_v51 }
 0x81f   :  { %v5056_v56 = vpop.eup %5055  ;;  %v6424_v45 = vadd.f32 1.0, %v5054_v20 }
 0x820   :  { %v5058_v44 = vpop.eup %5057  ;;  %v3085_v8 = vmul.f32 %v5056_v56, %v3076_v46  ;;  %5061 = vpow2.f32 %v4612_v49  ;;  %vm3090_vm10 = vweird.f32 %v5056_v56 }
 0x821   :  { %v5060_v60 = vpop.eup %5059  ;;  %v3100_v23 = vmul.f32 %v5058_v44, %v3077_v24  ;;  %5063 = vrcp.f32 %v6424_v45  ;;  %vm3105_vm13 = vweird.f32 %v5058_v44  ;;  %vm3091_vm15 = vmor %vm3089_vm7, %vm3090_vm10  ;;  %v3155_v4 = vand.u32 2147483648, %v6424_v45 }
 0x822   :  { %v3086_v42 = vsub.f32 1.0, %v3085_v8  ;;  %v6428_v57 = vadd.f32 1.0, %v5060_v60  ;;  %5065 = vpow2.f32 %v4613_v58  ;;  %vm3106_vm0 = vmor %vm3104_vm12, %vm3105_vm13  ;;  %vm3149_vm1 = vweird.f32 %v6424_v45  ;;  %v3320_v8 = vld [vmem:[%s6770_s9 + $0x70] sm:$0xff] }
 0x823   :  { %v3101_v59 = vsub.f32 1.0, %v3100_v23  ;;  %v3021_v36 = vpop.f32.mrf.mxu3  ;;  %v3049_v2 = vpop.f32.mrf.mxu2  ;;  %v3153_v39 = vand.u32 2147483647, %v6424_v45 }
 0x824   :  { %v3087_v61 = vmul.f32 %v5056_v56, %v3086_v42  ;;  %5067 = vrcp.f32 %v6428_v57  ;;  %v6439_v1 = vadd.f32 %v3021_v36, %v3008_v30  ;;  %v6452_v11 = vadd.f32 %v3049_v2, %v3036_v47 }
 0x825   :  { %v3102_v63 = vmul.f32 %v5058_v44, %v3101_v59  ;;  %v3168_v25 = vand.u32 2147483647, %v6428_v57  ;;  %v3170_v35 = vand.u32 2147483648, %v6428_v57  ;;  %vm3154_vm5 = vcmp.eq.f32.partialorder %v3153_v39, 8.507059e+37 }
 0x826   :  { %v5062_v52 = vpop.eup %5061  ;;  %v3088_v31 = vadd.f32 %v5056_v56, %v3087_v61  ;;  %v4616_v55 = vmul.f32 -1.442695, %v6439_v1  ;;  %v4617_v24 = vmul.f32 -1.442695, %v6452_v11  ;;  %vm3164_vm6 = vweird.f32 %v6428_v57 }
 0x827   :  { %v5064_v38 = vpop.eup %5063  ;;  %v3103_v5 = vadd.f32 %v5058_v44, %v3102_v63  ;;  %v6443_v3 = vadd.f32 1.0, %v5062_v52  ;;  %v3171_v42 = vor.u32 1.1754944e-38, %v3170_v35  ;;  %vm3169_vm9 = vcmp.eq.f32.partialorder %v3168_v25, 8.507059e+37  ;;  %v3318_v63 = vld [vmem:[%s6770_s9 + $0x60] sm:$0xff] }
 0x828   :  { %v3092_v40 = vsel %vm3091_vm15, %v5056_v56, %v3088_v31  ;;  %v3145_v26 = vmul.f32 %v5064_v38, %v6424_v45  ;;  %v5066_v0 = vpop.eup %5065  ;;  %vm3150_vm2 = vweird.f32 %v5064_v38 }
 0x829   :  { %v3097_v21 = vsel %vm6431_vm11, %v3096_v32, %v3092_v40  ;;  %v3107_v34 = vsel %vm3106_vm0, %v5058_v44, %v3103_v5  ;;  %5069 = vrcp.f32 %v6443_v3  ;;  %v6465_v6 = vadd.f32 1.0, %v5066_v0  ;;  %vm3151_vm3 = vmor %vm3149_vm1, %vm3150_vm2  ;;  %v3321_v44 = vld [vmem:[%s6770_s9 + $0x78] sm:$0xff] }
 0x82a   :  { %v5068_v62 = vpop.eup %5067  ;;  %v6455_v19 = vmul.f32 %v3097_v21, %v6405_v53  ;;  %v3112_v22 = vsel %vm6435_vm14, %v3111_v48, %v3107_v34  ;;  %v3146_v18 = vsub.f32 1.0, %v3145_v26  ;;  %5071 = vpow2.f32 %v4616_v55  ;;  %3374 = vmatpush.msra.mxu1 %v3321_v44  ;;  %v3316_v55 = vld [vmem:[%s6770_s9 + $0x50] sm:$0xff] }
 0x82b   :  { %v6460_v7 = vmul.f32 %v3112_v22, %v6407_v9  ;;  %v3160_v46 = vmul.f32 %v5068_v62, %v6428_v57  ;;  %v3156_v53 = vor.u32 1.1754944e-38, %v3155_v4  ;;  %5073 = vrcp.f32 %v6465_v6  ;;  %v3336_v57 = vld [vmem:[%s6770_s9 + $0xf0] sm:$0xff] }
 0x82c   :  { %v3147_v16 = vmul.f32 %v5064_v38, %v3146_v18  ;;  %v3212_v28 = vmul.f32 %v6455_v19, %v6455_v19  ;;  %vm3165_vm4 = vweird.f32 %v5068_v62  ;;  %5075 = vpow2.f32 %v4617_v24  ;;  %3375 = vmatpush.msra.mxu1 %v3320_v8 }
 0x82d   :  { %v3161_v29 = vsub.f32 1.0, %v3160_v46  ;;  %v3213_v49 = vmul.f32 %v6460_v7, %v6460_v7  ;;  %vm3166_vm8 = vmor %vm3164_vm6, %vm3165_vm4  ;;  %v3125_v14 = vand.u32 2147483648, %v6443_v3  ;;  %v3123_v37 = vand.u32 2147483647, %v6443_v3 }
 0x82e   :  { %v3148_v9 = vadd.f32 %v5064_v38, %v3147_v16  ;;  %3376 = vmatpush.msra.mxu1 %v3319_v41  ;;  %vm3119_vm10 = vweird.f32 %v6443_v3  ;;  %v3140_v4 = vand.u32 2147483648, %v6465_v6  ;;  %vm3134_vm14 = vweird.f32 %v6465_v6 }
 0x82f   :  { %v5070_v13 = vpop.eup %5069  ;;  %v3162_v20 = vmul.f32 %v5068_v62, %v3161_v29  ;;  %v3216_v10 = vadd.f32 %v3213_v49, %v3212_v28  ;;  %v3126_v5 = vor.u32 1.1754944e-38, %v3125_v14  ;;  %vm3124_vm12 = vcmp.eq.f32.partialorder %v3123_v37, 8.507059e+37  ;;  %v3334_v37 = vld [vmem:[%s6770_s9 + $0xe0] sm:$0xff] }
 0x830   :  { %v3152_v56 = vsel %vm3151_vm3, %v5064_v38, %v3148_v9  ;;  %v3115_v58 = vmul.f32 %v5070_v13, %v6443_v3  ;;  %v5072_v23 = vpop.eup %5071  ;;  %vm3120_vm7 = vweird.f32 %v5070_v13  ;;  %3377 = vmatpush.msra.mxu1 %v3318_v63  ;;  %v3138_v3 = vand.u32 2147483647, %v6465_v6  ;;  %v3333_v63 = vld [vmem:[%s6770_s9 + $0xd8] sm:$0xff] }
 0x831   :  { %v3157_v45 = vsel %vm3154_vm5, %v3156_v53, %v3152_v56  ;;  %v3163_v60 = vadd.f32 %v5068_v62, %v3162_v20  ;;  %v6493_v36 = vadd.f32 1.0, %v5072_v23  ;;  %3217 = vadd.xlane.f32.xlu1 %v3216_v10  ;;  %v5074_v61 = vpop.eup %5073  ;;  %vm3121_vm11 = vmor %vm3119_vm10, %vm3120_vm7  ;;  %v3141_v46 = vor.u32 1.1754944e-38, %v3140_v4  ;;  %v3314_v53 = vld [vmem:[%s6770_s9 + $0x40] sm:$0xff]  ;;  %v3312_v56 = vld [vmem:[%s6770_s9 + $0x30] sm:$0xff] }
 0x832   :  { %v6486_v12 = vmul.f32 %v3157_v45, %v6411_v43  ;;  %v3116_v50 = vsub.f32 1.0, %v3115_v58  ;;  %v3337_v43 = vld [vmem:[%s6770_s9 + $0xf8] sm:$0xff]  ;;  %v5076_v52 = vpop.eup %5075  ;;  %v3130_v32 = vmul.f32 %v5074_v61, %v6465_v6  ;;  %vm3135_vm13 = vweird.f32 %v5074_v61  ;;  %v3368_v4 = vld [vmem:[%s6770_s9 + $0x1f0] sm:$0xff] }
 0x833   :  { %v3167_v59 = vsel %vm3166_vm8, %v5068_v62, %v3163_v60  ;;  %3397 = vmatpush.msra.mxu3 %v3337_v43  ;;  %5077 = vrcp.f32 %v6493_v36  ;;  %v6520_v47 = vadd.f32 1.0, %v5076_v52  ;;  %v3315_v62 = vld [vmem:[%s6770_s9 + $0x48] sm:$0xff]  ;;  %vm3136_vm15 = vmor %vm3134_vm14, %vm3135_vm13  ;;  %vm3139_vm0 = vcmp.eq.f32.partialorder %v3138_v3, 8.507059e+37  ;;  %v3309_v52 = vld [vmem:[%s6770_s9 + $0x18] sm:$0xff] }
 0x834   :  { %v3172_v30 = vsel %vm3169_vm9, %v3171_v42, %v3167_v59  ;;  %v3117_v17 = vmul.f32 %v5070_v13, %v3116_v50  ;;  %v3214_v38 = vmul.f32 %v6486_v12, %v6486_v12  ;;  %v3131_v48 = vsub.f32 1.0, %v3130_v32  ;;  %v3332_v32 = vld [vmem:[%s6770_s9 + $0xd0] sm:$0xff] }
 0x835   :  { %v6506_v31 = vmul.f32 %v3172_v30, %v6413_v27  ;;  %v3317_v27 = vld [vmem:[%s6770_s9 + $0x58] sm:$0xff]  ;;  %3398 = vmatpush.msra.mxu3 %v3336_v57  ;;  %5079 = vrcp.f32 %v6520_v47  ;;  %v3183_v25 = vand.u32 2147483647, %v6493_v36  ;;  %v3185_v35 = vand.u32 2147483648, %v6493_v36  ;;  %v3352_v3 = vld [vmem:[%s6770_s9 + $0x170] sm:$0xff] }
 0x836   :  { %v3118_v2 = vadd.f32 %v5070_v13, %v3117_v17  ;;  %v3132_v21 = vmul.f32 %v5074_v61, %v3131_v48  ;;  %3378 = vmatpush.msra.mxu1 %v3317_v27  ;;  %vm3179_vm2 = vweird.f32 %v6493_v36  ;;  %v3200_v45 = vand.u32 2147483648, %v6520_v47  ;;  %v3330_v27 = vld [vmem:[%s6770_s9 + $0xc0] sm:$0xff]  ;;  %v3329_v48 = vld [vmem:[%s6770_s9 + $0xb8] sm:$0xff] }
 0x837   :  { %v3215_v40 = vmul.f32 %v6506_v31, %v6506_v31  ;;  %3399 = vmatpush.msra.mxu3 %v3335_v33  ;;  %vm3184_vm4 = vcmp.eq.f32.partialorder %v3183_v25, 8.507059e+37  ;;  %v3186_v8 = vor.u32 1.1754944e-38, %v3185_v35  ;;  %v3198_v42 = vand.u32 2147483647, %v6520_v47  ;;  %v3308_v33 = vld [vmem:[%s6770_s9 + $0x10] sm:$0xff]  ;;  %v3323_v25 = vld [vmem:[%s6770_s9 + $0x88] sm:$0xff] }
 0x838   :  { %v3122_v26 = vsel %vm3121_vm11, %v5070_v13, %v3118_v2  ;;  %v3133_v39 = vadd.f32 %v5074_v61, %v3132_v21  ;;  %3379 = vmatpush.msra.mxu1 %v3316_v55  ;;  %vm3194_vm6 = vweird.f32 %v6520_v47  ;;  %v3201_v14 = vor.u32 1.1754944e-38, %v3200_v45  ;;  %v3331_v2 = vld [vmem:[%s6770_s9 + $0xc8] sm:$0xff] }
 0x839   :  { %v3127_v0 = vsel %vm3124_vm12, %v3126_v5, %v3122_v26  ;;  %v3219_v34 = vadd.f32 %v3215_v40, %v3214_v38  ;;  %v5078_v22 = vpop.eup %5077  ;;  %vm3199_vm9 = vcmp.eq.f32.partialorder %v3198_v42, 8.507059e+37  ;;  %3400 = vmatpush.msra.mxu3 %v3334_v37  ;;  %v3307_v38 = vld [vmem:[%s6770_s9 + $0x8] sm:$0xff]  ;;  %v3306_v5 = vld [vmem:[%s6770_s9] sm:$0xff]  ;;  %v3369_v40 = vld [vmem:[%s6770_s9 + $0x1f8] sm:$0xff] }
 0x83a   :  { %v6534_v18 = vmul.f32 %v3127_v0, %v6419_v54  ;;  %v3175_v16 = vmul.f32 %v5078_v22, %v6493_v36  ;;  %v3137_v29 = vsel %vm3136_vm15, %v5074_v61, %v3133_v39  ;;  %3380 = vmatpush.msra.mxu1 %v3315_v62  ;;  %v3313_v54 = vld [vmem:[%s6770_s9 + $0x38] sm:$0xff]  ;;  %vm3180_vm1 = vweird.f32 %v5078_v22  ;;  %v3328_v26 = vld [vmem:[%s6770_s9 + $0xb0] sm:$0xff]  ;;  %v3351_v55 = vld [vmem:[%s6770_s9 + $0x168] sm:$0xff]  ;;  %4890 = vmatpush.msrb.mxu2 %v3369_v40 }
 0x83b   :  { %3220 = vadd.xlane.f32.xlu2 %v3219_v34  ;;  %v3142_v24 = vsel %vm3139_vm0, %v3141_v46, %v3137_v29  ;;  %v5080_v6 = vpop.eup %5079  ;;  %vm3181_vm3 = vmor %vm3179_vm2, %vm3180_vm1  ;;  %3401 = vmatpush.msra.mxu3 %v3333_v63  ;;  %v3327_v0 = vld [vmem:[%s6770_s9 + $0xa8] sm:$0xff]  ;;  %v3326_v39 = vld [vmem:[%s6770_s9 + $0xa0] sm:$0xff] }
 0x83c   :  { %v3176_v28 = vsub.f32 1.0, %v3175_v16  ;;  %v6545_v9 = vmul.f32 %v3142_v24, %v6421_v51  ;;  %v3250_v13 = vmul.f32 %v6534_v18, %v6534_v18  ;;  %3381 = vmatpush.msra.mxu1 %v3314_v53  ;;  %v3190_v49 = vmul.f32 %v5080_v6, %v6520_v47  ;;  %v3353_v47 = vld [vmem:[%s6770_s9 + $0x178] sm:$0xff]  ;;  %v3367_v21 = vld [vmem:[%s6770_s9 + $0x1e8] sm:$0xff]  ;;  %4891 = vmatpush.msrb.mxu2 %v3368_v4  ;;  %v3350_v46 = vld [vmem:[%s6770_s9 + $0x160] sm:$0xff] }
 0x83d   :  { %vm3195_vm5 = vweird.f32 %v5080_v6  ;;  %3402 = vmatpush.msra.mxu3 %v3332_v32  ;;  %3420 = vmatpush.msra.mxu0 %v3353_v47  ;;  %v3366_v16 = vld [vmem:[%s6770_s9 + $0x1e0] sm:$0xff]  ;;  %v3325_v53 = vld [vmem:[%s6770_s9 + $0x98] sm:$0xff]  ;;  %v3347_v35 = vld [vmem:[%s6770_s9 + $0x148] sm:$0xff] }
 0x83e   :  { %v3177_v20 = vmul.f32 %v5078_v22, %v3176_v28  ;;  %v3251_v51 = vmul.f32 %v6545_v9, %v6545_v9  ;;  %3382 = vmatpush.msra.mxu1 %v3313_v54  ;;  %v3191_v44 = vsub.f32 1.0, %v3190_v49  ;;  %vm3196_vm8 = vmor %vm3194_vm6, %vm3195_vm5  ;;  %4892 = vmatpush.msrb.mxu2 %v3367_v21  ;;  %v3349_v29 = vld [vmem:[%s6770_s9 + $0x158] sm:$0xff]  ;;  %v3324_v28 = vld [vmem:[%s6770_s9 + $0x90] sm:$0xff]  ;;  %vm3466_vm5 = vcmask 64512  }
 0x83f   :  { %3403 = vmatpush.msra.mxu3 %v3331_v2  ;;  %3421 = vmatpush.msra.mxu0 %v3352_v3  ;;  %v3365_v24 = vld [vmem:[%s6770_s9 + $0x1d8] sm:$0xff]  ;;  %v3348_v54 = vld [vmem:[%s6770_s9 + $0x150] sm:$0xff]  ;;  %v3339_v3 = vld [vmem:[%s6770_s9 + $0x108] sm:$0xff] }
 0x840   :  { %v3178_v58 = vadd.f32 %v5078_v22, %v3177_v20  ;;  %v3254_v60 = vadd.f32 %v3251_v51, %v3250_v13  ;;  %3383 = vmatpush.msra.mxu1 %v3312_v56  ;;  %v3192_v23 = vmul.f32 %v5080_v6, %v3191_v44  ;;  %4893 = vmatpush.msrb.mxu2 %v3366_v16  ;;  %v3363_v13 = vld [vmem:[%s6770_s9 + $0x1c8] sm:$0xff]  ;;  %v3322_v51 = vld [vmem:[%s6770_s9 + $0x80] sm:$0xff]  ;;  %v3344_v42 = vld [vmem:[%s6770_s9 + $0x130] sm:$0xff] }
 0x841   :  { %3404 = vmatpush.msra.mxu3 %v3330_v27  ;;  %3422 = vmatpush.msra.mxu0 %v3351_v55  ;;  %v3362_v44 = vld [vmem:[%s6770_s9 + $0x1c0] sm:$0xff]  ;;  %v3357_v32 = vld [vmem:[%s6770_s9 + $0x198] sm:$0xff]  ;;  %v3340_v27 = vld [vmem:[%s6770_s9 + $0x110] sm:$0xff] }
 0x842   :  { %v3182_v10 = vsel %vm3181_vm3, %v5078_v22, %v3178_v58  ;;  %v3193_v59 = vadd.f32 %v5080_v6, %v3192_v23  ;;  %4894 = vmatpush.msrb.mxu2 %v3365_v24  ;;  %v3346_v58 = vld [vmem:[%s6770_s9 + $0x140] sm:$0xff]  ;;  %v3356_v47 = vld [vmem:[%s6770_s9 + $0x190] sm:$0xff] }
 0x843   :  { %v3187_v50 = vsel %vm3184_vm4, %v3186_v8, %v3182_v10  ;;  %3255 = vadd.xlane.f32.xlu2 %v3254_v60  ;;  %3405 = vmatpush.msra.mxu3 %v3329_v48  ;;  %v3345_v60 = vld [vmem:[%s6770_s9 + $0x138] sm:$0xff] }
 0x844   :  { %v6561_v41 = vmul.f32 %v3187_v50, %v6439_v1  ;;  %v3197_v36 = vsel %vm3196_vm8, %v5080_v6, %v3193_v59  ;;  %v3311_v1 = vld [vmem:[%s6770_s9 + $0x28] sm:$0xff]  ;;  %3423 = vmatpush.msra.mxu0 %v3350_v46  ;;  %v3364_v6 = vld [vmem:[%s6770_s9 + $0x1d0] sm:$0xff]  ;;  %v3361_v10 = vld [vmem:[%s6770_s9 + $0x1b8] sm:$0xff] }
 0x845   :  { %v3202_v43 = vsel %vm3199_vm9, %v3201_v14, %v3197_v36  ;;  %3384 = vmatpush.msra.mxu1 %v3311_v1  ;;  %3406 = vmatpush.msra.mxu3 %v3328_v26  ;;  %v3360_v50 = vld [vmem:[%s6770_s9 + $0x1b0] sm:$0xff]  ;;  %v3343_v59 = vld [vmem:[%s6770_s9 + $0x128] sm:$0xff]  ;;  %v3358_v1 = vld [vmem:[%s6770_s9 + $0x1a0] sm:$0xff] }
 0x846   :  { %v6565_v57 = vmul.f32 %v3202_v43, %v6452_v11  ;;  %v3252_v61 = vmul.f32 %v6561_v41, %v6561_v41  ;;  %v3310_v11 = vld [vmem:[%s6770_s9 + $0x20] sm:$0xff]  ;;  %3424 = vmatpush.msra.mxu0 %v3349_v29  ;;  %4895 = vmatpush.msrb.mxu2 %v3364_v6  ;;  %v3359_v36 = vld [vmem:[%s6770_s9 + $0x1a8] sm:$0xff] }
 0x847   :  { %3385 = vmatpush.msra.mxu1 %v3310_v11  ;;  %3407 = vmatpush.msra.mxu3 %v3327_v0  ;;  %v3342_v43 = vld [vmem:[%s6770_s9 + $0x120] sm:$0xff]  ;;  %v3341_v11 = vld [vmem:[%s6770_s9 + $0x118] sm:$0xff] }
 0x848   :  { %v3253_v30 = vmul.f32 %v6565_v57, %v6565_v57  ;;  %3425 = vmatpush.msra.mxu0 %v3348_v54  ;;  %4896 = vmatpush.msrb.mxu2 %v3363_v13 }
 0x849   :  { %3386 = vmatpush.msra.mxu1 %v3309_v52  ;;  %3408 = vmatpush.msra.mxu3 %v3326_v39 }
 0x84a   :  { %v3257_v17 = vadd.f32 %v3253_v30, %v3252_v61  ;;  %3426 = vmatpush.msra.mxu0 %v3347_v35  ;;  %4897 = vmatpush.msrb.mxu2 %v3362_v44 }
 0x84b   :  { %3387 = vmatpush.msra.mxu1 %v3308_v33  ;;  %3409 = vmatpush.msra.mxu3 %v3325_v53 }
 0x84c   :  { %3258 = vadd.xlane.f32.xlu0 %v3257_v17  ;;  %3427 = vmatpush.msra.mxu0 %v3346_v58  ;;  %v6706_v17 = vld [vmem:[#allocation15 + $0x1a] sm:$0xf] }
 0x84d   :  { %3388 = vmatpush.msra.mxu1 %v3307_v38  ;;  %3410 = vmatpush.msra.mxu3 %v3324_v28  ;;  %v3290_v38 = vperm.slane %v6706_v17, 0  ;;  %v3291_v48 = vperm.slane %v6706_v17, 1 }
 0x84e   :  { %3428 = vmatpush.msra.mxu0 %v3345_v60  ;;  %4898 = vmatpush.msrb.mxu2 %v3361_v10 }
 0x84f   :  { %3389 = vmatpush.msra.mxu1 %v3306_v5  ;;  %3411 = vmatpush.msra.mxu3 %v3323_v25 }
 0x850   :  { %3429 = vmatpush.msra.mxu0 %v3344_v42  ;;  %4899 = vmatpush.msrb.mxu2 %v3360_v50 }
 0x851   :  { %3443 = vmatpush.msrb.mxu1 %v3369_v40  ;;  %3412 = vmatpush.msra.mxu3 %v3322_v51 }
 0x852   :  { %3430 = vmatpush.msra.mxu0 %v3343_v59  ;;  %4900 = vmatpush.msrb.mxu2 %v3359_v36 }
 0x853   :  { %3444 = vmatpush.msrb.mxu1 %v3368_v4 }
 0x854   :  { %3431 = vmatpush.msra.mxu0 %v3342_v43  ;;  %4901 = vmatpush.msrb.mxu2 %v3358_v1 }
 0x855   :  { %3445 = vmatpush.msrb.mxu1 %v3367_v21  ;;  %v3355_v21 = vld [vmem:[%s6770_s9 + $0x188] sm:$0xff] }
 0x856   :  { %3432 = vmatpush.msra.mxu0 %v3341_v11  ;;  %4902 = vmatpush.msrb.mxu2 %v3357_v32 }
 0x857   :  { %3446 = vmatpush.msrb.mxu1 %v3366_v16 }
 0x858   :  { %3433 = vmatpush.msra.mxu0 %v3340_v27  ;;  %4903 = vmatpush.msrb.mxu2 %v3356_v47 }
 0x859   :  { %3447 = vmatpush.msrb.mxu1 %v3365_v24 }
 0x85a   :  { %3434 = vmatpush.msra.mxu0 %v3339_v3  ;;  %4904 = vmatpush.msrb.mxu2 %v3355_v21 }
 0x85b   :  { %3448 = vmatpush.msrb.mxu1 %v3364_v6 }
 0x85d   :  { %3449 = vmatpush.msrb.mxu1 %v3363_v13 }
 0x85f   :  { %3450 = vmatpush.msrb.mxu1 %v3362_v44 }
 0x861   :  { %3451 = vmatpush.msrb.mxu1 %v3361_v10 }
 0x863   :  { %3452 = vmatpush.msrb.mxu1 %v3360_v50 }
 0x865   :  { %3453 = vmatpush.msrb.mxu1 %v3359_v36 }
 0x867   :  { %3454 = vmatpush.msrb.mxu1 %v3358_v1 }
 0x869   :  { %3455 = vmatpush.msrb.mxu1 %v3357_v32 }
 0x86b   :  { %3456 = vmatpush.msrb.mxu1 %v3356_v47 }
 0x86d   :  { %3457 = vmatpush.msrb.mxu1 %v3355_v21 }
 0x8a4   :  { %v3218_v34 = vpop.xlane.xlu1 %3217 }
 0x8a5   :  { %v3222_v62 = vmul.f32 %v3218_v34, %v5514_v15 }
 0x8a7   :  { %v6632_v22 = vadd.f32 1e-06, %v3222_v62 }
 0x8a9   :  { %5081 = vrsqrt.f32 %v6632_v22  ;;  %vm3232_vm10 = vweird.f32 %v6632_v22 }
 0x8ae   :  { %v3221_v20 = vpop.xlane.xlu2 %3220 }
 0x8af   :  { %v3223_v49 = vmul.f32 %v3221_v20, %v5514_v15  ;;  %v5082_v56 = vpop.eup %5081 }
 0x8b0   :  { %v3227_v8 = vmul.f32 %v5082_v56, %v6632_v22  ;;  %vm3233_vm7 = vweird.f32 %v5082_v56 }
 0x8b1   :  { %v6682_v45 = vadd.f32 1e-06, %v3223_v49  ;;  %vm3234_vm11 = vmor %vm3232_vm10, %vm3233_vm7 }
 0x8b2   :  { %v3228_v23 = vmul.f32 %v5082_v56, %v3227_v8 }
 0x8b3   :  { %5083 = vrsqrt.f32 %v6682_v45  ;;  %vm3242_vm13 = vweird.f32 %v6682_v45 }
 0x8b4   :  { %v3229_v14 = vmul.f32 0.5, %v3228_v23 }
 0x8b6   :  { %v3230_v61 = vsub.f32 1.5, %v3229_v14  ;;  %v3256_v30 = vpop.xlane.xlu2 %3255 }
 0x8b7   :  { %v3260_v37 = vmul.f32 %v3256_v30, %v5514_v15 }
 0x8b8   :  { %v3231_v52 = vmul.f32 %v5082_v56, %v3230_v61 }
 0x8b9   :  { %v5084_v63 = vpop.eup %5083  ;;  %v3262_v2 = vadd.f32 1e-06, %v3260_v37 }
 0x8ba   :  { %v3237_v33 = vmul.f32 %v5084_v63, %v6682_v45  ;;  %v3235_v5 = vsel %vm3234_vm11, %v5082_v56, %v3231_v52  ;;  %vm3243_vm12 = vweird.f32 %v5084_v63  ;;  %v3293_v56 = vperm.slane %v6706_v17, 3 }
 0x8bb   :  { %5085 = vrsqrt.f32 %v3262_v2  ;;  %v3246_v26 = vmul.f32 %v3235_v5, %v6455_v19  ;;  %v3247_v4 = vmul.f32 %v3235_v5, %v6460_v7  ;;  %v3338_v19 = vld [vmem:[%s6770_s9 + $0x100] sm:$0xff]  ;;  %vm3244_vm14 = vmor %vm3242_vm13, %vm3243_vm12  ;;  %vm3270_vm0 = vweird.f32 %v3262_v2 }
 0x8bc   :  { %v3238_v40 = vmul.f32 %v5084_v63, %v3237_v33  ;;  %v3354_v7 = vld [vmem:[%s6770_s9 + $0x180] sm:$0xff]  ;;  %3435 = vmatpush.msra.mxu0 %v3338_v19 }
 0x8bd   :  { %v3298_v0 = vmul.f32 %v3290_v38, %v3246_v26  ;;  %v3299_v34 = vmul.f32 %v3291_v48, %v3247_v4  ;;  %4905 = vmatpush.msrb.mxu2 %v3354_v7  ;;  %3458 = vmatpush.msrb.mxu1 %v3354_v7 }
 0x8be   :  { %v3239_v55 = vmul.f32 0.5, %v3238_v40 }
 0x8bf   :  { %3390 = vmatmul.f32.vlgmr.msra.gmra.mxu1 %v3298_v0  ;;  %3413 = vmatmul.f32.vlgmr.msra.gmra.mxu3 %v3299_v34  ;;  %v3259_v39 = vpop.xlane.xlu0 %3258 }
 0x8c0   :  { %v3240_v62 = vsub.f32 1.5, %v3239_v55  ;;  %v3261_v53 = vmul.f32 %v3259_v39, %v5514_v15  ;;  %v3292_v15 = vperm.slane %v6706_v17, 2 }
 0x8c1   :  { %v5086_v22 = vpop.eup %5085 }
 0x8c2   :  { %v3241_v46 = vmul.f32 %v5084_v63, %v3240_v62  ;;  %v3265_v16 = vmul.f32 %v5086_v22, %v3262_v2  ;;  %v3263_v28 = vadd.f32 1e-06, %v3261_v53  ;;  %vm3271_vm15 = vweird.f32 %v5086_v22 }
 0x8c3   :  { %vm3272_vm1 = vmor %vm3270_vm0, %vm3271_vm15 }
 0x8c4   :  { %v3245_v29 = vsel %vm3244_vm14, %v5084_v63, %v3241_v46  ;;  %v3266_v24 = vmul.f32 %v5086_v22, %v3265_v16  ;;  %5087 = vrsqrt.f32 %v3263_v28  ;;  %vm3280_vm3 = vweird.f32 %v3263_v28 }
 0x8c5   :  { %v3248_v54 = vmul.f32 %v3245_v29, %v6486_v12  ;;  %v3249_v6 = vmul.f32 %v3245_v29, %v6506_v31 }
 0x8c6   :  { %v3267_v25 = vmul.f32 0.5, %v3266_v24 }
 0x8c7   :  { %v3302_v35 = vmul.f32 %v3290_v38, %v3248_v54  ;;  %v3303_v13 = vmul.f32 %v3291_v48, %v3249_v6 }
 0x8c8   :  { %v3268_v20 = vsub.f32 1.5, %v3267_v25 }
 0x8c9   :  { %3393 = vmatmul.f32.gmra.mxu1 %v3302_v35  ;;  %3416 = vmatmul.f32.gmra.mxu3 %v3303_v13 }
 0x8ca   :  { %v3269_v49 = vmul.f32 %v5086_v22, %v3268_v20  ;;  %v5088_v51 = vpop.eup %5087 }
 0x8cb   :  { %v3275_v12 = vmul.f32 %v5088_v51, %v3263_v28  ;;  %vm3281_vm2 = vweird.f32 %v5088_v51 }
 0x8cc   :  { %v3273_v58 = vsel %vm3272_vm1, %v5086_v22, %v3269_v49  ;;  %vm3282_vm4 = vmor %vm3280_vm3, %vm3281_vm2 }
 0x8cd   :  { %v3284_v31 = vmul.f32 %v3273_v58, %v6534_v18  ;;  %v3285_v44 = vmul.f32 %v3273_v58, %v6545_v9  ;;  %v3276_v8 = vmul.f32 %v5088_v51, %v3275_v12 }
 0x8cf   :  { %v3300_v45 = vmul.f32 %v3292_v15, %v3284_v31  ;;  %v3301_v60 = vmul.f32 %v3293_v56, %v3285_v44  ;;  %v3277_v10 = vmul.f32 0.5, %v3276_v8 }
 0x8d1   :  { %3436 = vmatmul.f32.vlgmr.msra.gmra.mxu0 %v3300_v45  ;;  %3459 = vmatmul.f32.vlgmr.msrb.gmra.mxu1 %v3301_v60  ;;  %v3278_v23 = vsub.f32 1.5, %v3277_v10 }
 0x8d3   :  { %v3279_v42 = vmul.f32 %v5088_v51, %v3278_v23 }
 0x8d5   :  { %v3283_v50 = vsel %vm3282_vm4, %v5088_v51, %v3279_v42 }
 0x8d6   :  { %v3286_v59 = vmul.f32 %v3283_v50, %v6561_v41  ;;  %v3287_v14 = vmul.f32 %v3283_v50, %v6565_v57  ;;  %v4944_v41 = vld [vmem:[#allocation15 + $0x1e] ss:$0 sm:$0xff] }
 0x8d8   :  { %v3304_v36 = vmul.f32 %v3292_v15, %v3286_v59  ;;  %v3305_v18 = vmul.f32 %v3293_v56, %v3287_v14 }
 0x8da   :  { %3439 = vmatmul.f32.gmra.mxu0 %v3304_v36  ;;  %3462 = vmatmul.f32.vlgmr.msrb.gmra.mxu2 %v3305_v18 }
 0x93c   :  { %v3391_v9 = vpop.f32.mrf.mxu1 }
 0x93d   :  { %v3392_v57 = vadd.f32 %v4944_v41, %v3391_v9 }
 0x942   :  { %v3414_v61 = vpop.f32.mrf.mxu3 }
 0x943   :  { %v3415_v30 = vadd.f32 %v3414_v61, %v3392_v57 }
 0x946   :  { %v3394_v43 = vpop.f32.mrf.mxu1 }
 0x947   :  { %v3395_v52 = vadd.f32 %v4944_v41, %v3394_v43 }
 0x94c   :  { %v3417_v63 = vpop.f32.mrf.mxu3 }
 0x94d   :  { %v3418_v33 = vadd.f32 %v3417_v63, %v3395_v52 }
 0x94e   :  { %v3437_v17 = vpop.f32.mrf.mxu0  ;;  %v3460_v37 = vpop.f32.mrf.mxu1 }
 0x94f   :  { %v3438_v1 = vadd.f32 %v3437_v17, %v3415_v30 }
 0x951   :  { %v3461_v11 = vadd.f32 %v3460_v37, %v3438_v1 }
 0x953   :  { %3467 = vst.msk [vmem:[%s6772_s11] sm:$0xff] %vm3466_vm5, %v3461_v11 }
 0x957   :  { %v3440_v32 = vpop.f32.mrf.mxu0 }
 0x958   :  { %v3441_v2 = vadd.f32 %v3440_v32, %v3418_v33 }
 0x95d   :  { %v3463_v38 = vpop.f32.mrf.mxu2 }
 0x95e   :  { %v3464_v27 = vadd.f32 %v3463_v38, %v3441_v2 }
 0x960   :  { %3468 = vst.msk [vmem:[%s6772_s11 + $0x8] sm:$0xff] %vm3466_vm5, %v3464_v27 }
 0x961   :  { %5319 = dma.done.wait [#allocation5], 512  }
 0x962   :  { %5320 = vsyncadd [#allocation5], 4294966784 }
 0x963   :  { %3494 = vsyncpa [#allocation4], 1 }
 0x964   :  { %3495 = vsyncpa [#allocation7], 1 }
 0x965   :  { %3496 = vsyncpa [#allocation10], 1 }
 0x966   :  { %3497 = vsyncpa [#allocation13], 1 }
 0x967   :  { %3498 = vsyncpa [#allocation16], 1 }
 0x968   :  { %3499 = vsyncpa [#allocation5], 1 }

</bundles_post_ra>
